<compile_context>
chip_gen: v7x
topology: tpu7x:2x2x1
jax: 0.10.0
libtpu: 0.0.40
codegen_flags: <defaults>
</compile_context>

<pallas_src>
import functools

import jax
import jax.numpy as jnp
from jax.experimental import pallas as pl
from jax.experimental.pallas import tpu as pltpu


# ----------------------------------------------------------------------------
# Pass 1: implicit-im2col conv GEMM + per-tile per-channel sum / sum-of-squares.
# ----------------------------------------------------------------------------
def _conv_stats_kernel(x_ref, w_ref, y_ref, stats_ref, *,
                       KH, KW, stride, dilation, TH, OW):
    # x_ref:    (Hp, Wp, Cin)        bf16, one image's padded NHWC slab
    # w_ref:    (KH*KW, Cin, Cout_p) bf16, per-tap weights (resident)
    # y_ref:    (TH*OW, Cout_p)      f32, conv output tile
    # stats_ref:(2, Cout_p)          f32, this tile's [sum; sumsq]
    t = pl.program_id(1)

    l_h = (TH - 1) * stride + 1          # input rows needed for TH output rows
    l_w = (OW - 1) * stride + 1          # input cols needed for OW output cols
    h_base = pl.multiple_of(t * (TH * stride), TH * stride)

    acc = jnp.zeros(y_ref.shape, jnp.float32)
    for ki in range(KH):
        # Rows of the padded input needed by tap-row ki for this output tile.
        rows = x_ref[pl.ds(h_base + ki * dilation, l_h)]       # (l_h, Wp, Cin)
        if stride > 1:
            rows = rows[::stride]                               # (TH, Wp, Cin)
        for kj in range(KW):
            w0 = kj * dilation
            if stride > 1:
                win = rows[:, w0:w0 + l_w:stride, :]            # (TH, OW, Cin)
            else:
                win = rows[:, w0:w0 + l_w, :]                   # (TH, OW, Cin)
            lhs = win.reshape(TH * OW, win.shape[-1])           # (TH*OW, Cin)
            acc = acc + jnp.dot(lhs, w_ref[ki * KW + kj],
                                preferred_element_type=jnp.float32)

    y_ref[...] = acc
    stats_ref[...] = jnp.concatenate(
        [jnp.sum(acc, axis=0, keepdims=True),
         jnp.sum(acc * acc, axis=0, keepdims=True)], axis=0)    # (2, Cout_p)


# ----------------------------------------------------------------------------
# Pass 2: apply folded BN scale/bias (single broadcasted FMA per element).
# ----------------------------------------------------------------------------
def _bn_apply_kernel(y_ref, scale_ref, bias_ref, out_ref):
    out_ref[...] = y_ref[...] * scale_ref[...] + bias_ref[...]


# ----------------------------------------------------------------------------
# Tiling helpers.
# ----------------------------------------------------------------------------
def _pick_tile_rows(OH, OW, target_rows=512):
    """Largest divisor TH of OH with TH*OW a multiple of 8 and <= target."""
    cands = [th for th in range(1, OH + 1)
             if OH % th == 0 and (th * OW) % 8 == 0]
    if not cands:
        return OH   # TODO(synk): pad M to a multiple of 8 for odd shapes.
    fitting = [th for th in cands if th * OW <= target_rows]
    return max(fitting) if fitting else min(cands)


def _pick_apply_rows(M, m_tile, target_rows):
    """Largest multiple of m_tile that divides M and is <= target."""
    n_blocks = M // m_tile
    best = m_tile
    for k in range(1, n_blocks + 1):
        if n_blocks % k == 0 and m_tile * k <= target_rows:
            best = m_tile * k
    return best


# ----------------------------------------------------------------------------
# Wrapper.
# ----------------------------------------------------------------------------
@functools.partial(jax.jit,
                   static_argnames=("stride", "padding", "dilation",
                                    "compute_dtype"))
def conv_bn_forward(x, weight, gamma, beta, *, stride=1, padding=0, dilation=1,
                    eps=1e-5, compute_dtype=jnp.bfloat16):
    """x: (N, Cin, H, W) NCHW; weight: (Cout, Cin, KH, KW) OIHW. Returns NCHW."""
    N, Cin, H, W = x.shape
    Cout, Cin_w, KH, KW = weight.shape
    assert Cin_w == Cin, "groups > 1 not supported"   # TODO(synk): grouped conv

    OH = (H + 2 * padding - dilation * (KH - 1) - 1) // stride + 1
    OW = (W + 2 * padding - dilation * (KW - 1) - 1) // stride + 1
    M = N * OH * OW
    LANE = 128
    Cout_p = ((Cout + LANE - 1) // LANE) * LANE       # lane-dense output channels

    # --- single cheap pass over x: NCHW -> NHWC, zero pad, bf16 for the MXU.
    x_nhwc = jnp.transpose(x, (0, 2, 3, 1)).astype(compute_dtype)
    x_pad = jnp.pad(x_nhwc,
                    ((0, 0), (padding, padding), (padding, padding), (0, 0)))
    Hp, Wp = H + 2 * padding, W + 2 * padding

    # --- weights: pad Cout -> Cout_p, reorder to (KH*KW, Cin, Cout_p).
    w_p = jnp.pad(weight.astype(compute_dtype),
                  ((0, Cout_p - Cout), (0, 0), (0, 0), (0, 0)))
    w_taps = jnp.transpose(w_p, (2, 3, 1, 0)).reshape(KH * KW, Cin, Cout_p)

    # --- tiling over M.
    TH = _pick_tile_rows(OH, OW)
    num_t = OH // TH
    M_tile = TH * OW
    n_tiles = N * num_t

    # --- VMEM budget (portable to v7x's smaller VMEM) + cost estimate.
    elt = jnp.dtype(compute_dtype).itemsize
    x_blk_bytes = Hp * Wp * Cin * elt
    y_blk_bytes = M_tile * Cout_p * 4
    w_bytes = KH * KW * Cin * Cout_p * elt
    # 2x (double-buffer) input slab + output tile, resident weights, f32 acc temp.
    vmem_need = 2 * (x_blk_bytes + y_blk_bytes) + w_bytes + 2 * y_blk_bytes
    vmem_limit = int(min(64 * 2 ** 20, max(32 * 2 ** 20, 2 * vmem_need)))

    flops1 = 2 * M * (Cin * KH * KW) * Cout_p
    bytes1 = (x_pad.size * elt + w_taps.size * elt
              + M * Cout_p * 4 + n_tiles * 2 * Cout_p * 4)

    kernel1 = functools.partial(_conv_stats_kernel, KH=KH, KW=KW,
                                stride=stride, dilation=dilation, TH=TH, OW=OW)

    y_flat, stats_tiles = pl.pallas_call(
        kernel1,
        out_shape=(jax.ShapeDtypeStruct((M, Cout_p), jnp.float32),
                   jax.ShapeDtypeStruct((n_tiles, 2, Cout_p), jnp.float32)),
        grid=(N, num_t),
        in_specs=[
            # one image's padded slab (revisited, so DMA'd once per image)
            pl.BlockSpec((None, Hp, Wp, Cin), lambda n, t: (n, 0, 0, 0)),
            # full per-tap weights, resident
            pl.BlockSpec((KH * KW, Cin, Cout_p), lambda n, t: (0, 0, 0)),
        ],
        out_specs=(
            pl.BlockSpec((M_tile, Cout_p), lambda n, t: (n * num_t + t, 0)),
            # per-tile stats -> every grid step owns its own block => both grid
            # axes can be "parallel" (megacore sharding on v7x).
            pl.BlockSpec((None, 2, Cout_p), lambda n, t: (n * num_t + t, 0, 0)),
        ),
        compiler_params=pltpu.CompilerParams(
            dimension_semantics=("parallel", "parallel"),
            vmem_limit_bytes=vmem_limit),
        cost_estimate=pl.CostEstimate(flops=flops1, transcendentals=0,
                                      bytes_accessed=bytes1),
    )(x_pad, w_taps)

    # --- fold BN (training-mode batch stats) into one per-channel scale/bias.
    stats = jnp.sum(stats_tiles, axis=0)                 # (2, Cout_p)
    mean = stats[0] / M
    var = jnp.maximum(stats[1] / M - mean * mean, 0.0)   # biased variance
    inv_std = jax.lax.rsqrt(var + eps)
    gamma_p = jnp.pad(gamma.astype(jnp.float32), (0, Cout_p - Cout))
    beta_p = jnp.pad(beta.astype(jnp.float32), (0, Cout_p - Cout))
    scale = (gamma_p * inv_std).reshape(1, Cout_p)
    bias = (beta_p - mean * gamma_p * inv_std).reshape(1, Cout_p)

    # --- pass 2: tiled, parallel, lane-dense elementwise normalize.
    # Aim for ~2 MiB per (input) block (bigger tiles amortize per-step overhead).
    target2 = max(M_tile, min(8192, (2 * 1024 * 1024) // (Cout_p * 4)))
    TM2 = _pick_apply_rows(M, M_tile, target2)
    out_flat = pl.pallas_call(
        _bn_apply_kernel,
        out_shape=jax.ShapeDtypeStruct((M, Cout_p), jnp.float32),
        grid=(M // TM2,),
        in_specs=[
            pl.BlockSpec((TM2, Cout_p), lambda i: (i, 0)),
            pl.BlockSpec((1, Cout_p), lambda i: (0, 0)),
            pl.BlockSpec((1, Cout_p), lambda i: (0, 0)),
        ],
        out_specs=pl.BlockSpec((TM2, Cout_p), lambda i: (i, 0)),
        compiler_params=pltpu.CompilerParams(
            dimension_semantics=("parallel",),
            vmem_limit_bytes=vmem_limit),
        cost_estimate=pl.CostEstimate(flops=2 * M * Cout_p, transcendentals=0,
                                      bytes_accessed=2 * M * Cout_p * 4
                                      + 2 * Cout_p * 4),
    )(y_flat, scale, bias)

    # (M, Cout_p) -> slice padding -> (N, OH, OW, Cout) -> NCHW.
    out = out_flat[:, :Cout].reshape(N, OH, OW, Cout)
    return jnp.transpose(out, (0, 3, 1, 2))


# ----------------------------------------------------------------------------
# Pure-JAX reference (lax conv + BN) for a correctness check.
# ----------------------------------------------------------------------------
def conv_bn_reference(x, weight, gamma, beta, *, stride=1, padding=0,
                      dilation=1, eps=1e-5):
    y = jax.lax.conv_general_dilated(
        x.astype(jnp.float32), weight.astype(jnp.float32),
        window_strides=(stride, stride),
        padding=((padding, padding), (padding, padding)),
        rhs_dilation=(dilation, dilation),
        dimension_numbers=("NCHW", "OIHW", "NCHW"),
    )
    mean = jnp.mean(y, axis=(0, 2, 3), keepdims=True)
    var = jnp.var(y, axis=(0, 2, 3), keepdims=True)   # biased, like BN training
    g = gamma.reshape(1, -1, 1, 1)
    b = beta.reshape(1, -1, 1, 1)
    return (y - mean) * jax.lax.rsqrt(var + eps) * g + b


if __name__ == "__main__":
    # Shapes consistent with ConvBN(in_channels=4, out_channels=8,
    # kernel_size=3, stride=1, padding=1).
    N, Cin, H, W = 2, 4, 16, 16
    Cout, KH, KW = 8, 3, 3
    stride, padding, dilation = 1, 1, 1

    key = jax.random.PRNGKey(0)
    kx, kw_ = jax.random.split(key)
    x = jax.random.normal(kx, (N, Cin, H, W), dtype=jnp.float32)
    fan_in = Cin * KH * KW
    weight = jax.random.normal(kw_, (Cout, Cin, KH, KW), dtype=jnp.float32) * (
        1.0 / jnp.sqrt(fan_in))
    gamma = jnp.ones((Cout,), dtype=jnp.float32)
    beta = jnp.zeros((Cout,), dtype=jnp.float32)

    out = conv_bn_forward(x, weight, gamma, beta, stride=stride,
                          padding=padding, dilation=dilation)
    out = jax.block_until_ready(out)

    ref = conv_bn_reference(x, weight, gamma, beta, stride=stride,
                            padding=padding, dilation=dilation)
    ref = jax.block_until_ready(ref)

    assert out.shape == (N, Cout, H, W), out.shape
    max_err = float(jnp.max(jnp.abs(out - ref)))
    # bf16 MXU inputs -> slightly wider tolerance than a pure-f32 GEMM.
    assert jnp.allclose(out, ref, atol=3e-2, rtol=3e-2), max_err
    print("KERNEL_OK")
</pallas_src>

<mosaic_0001>
module attributes {stable_mosaic.version = 11 : i64} {
  func.func @_conv_stats_kernel(%arg0: i32, %arg1: i32, %arg2: memref<1x18x18x4xbf16, #tpu.memory_space<vmem>>, %arg3: memref<9x4x128xbf16, #tpu.memory_space<vmem>>, %arg4: memref<256x128xf32, #tpu.memory_space<vmem>>, %arg5: memref<1x2x128xf32, #tpu.memory_space<vmem>>) attributes {dimension_semantics = [#tpu.dimension_semantics<parallel>, #tpu.dimension_semantics<parallel>], iteration_bounds = array<i64: 2, 1>, scalar_prefetch = 0 : i64, scratch_operands = 0 : i64, tpu.core_type = #tpu.core_type<tc>, window_params = [{transform_indices = @transform_0, window_bounds = array<i64: 1, 18, 18, 4>}, {pipeline_mode = #tpu.pipeline_mode<synchronous>, transform_indices = @transform_1, window_bounds = array<i64: 9, 4, 128>}, {transform_indices = @transform_2, window_bounds = array<i64: 256, 128>}, {transform_indices = @transform_3, window_bounds = array<i64: 1, 2, 128>}]} {
    %c16_i32 = arith.constant 16 : i32
    %0 = arith.muli %arg1, %c16_i32 : i32
    %1 = tpu.assume_multiple %0, 16 : i32
    %cst = arith.constant 0.000000e+00 : f32
    %2 = vector.broadcast %cst : f32 to vector<256x128xf32>
    %c0_i32 = arith.constant 0 : i32
    %3 = arith.addi %1, %c0_i32 : i32
    %c0 = arith.constant 0 : index
    %4 = arith.index_cast %3 : i32 to index
    %c0_0 = arith.constant 0 : index
    %c0_1 = arith.constant 0 : index
    %5 = vector.load %arg2[%c0, %4, %c0_0, %c0_1] : memref<1x18x18x4xbf16, #tpu.memory_space<vmem>>, vector<1x16x18x4xbf16>
    %6 = vector.shape_cast %5 : vector<1x16x18x4xbf16> to vector<16x18x4xbf16>
    %7 = vector.extract_strided_slice %6 {offsets = [0, 0, 0], sizes = [16, 16, 4], strides = [1, 1, 1]} : vector<16x18x4xbf16> to vector<16x16x4xbf16>
    %8 = vector.shape_cast %7 : vector<16x16x4xbf16> to vector<256x4xbf16>
    %c0_2 = arith.constant 0 : index
    %c0_3 = arith.constant 0 : index
    %c0_4 = arith.constant 0 : index
    %9 = vector.load %arg3[%c0_2, %c0_3, %c0_4] : memref<9x4x128xbf16, #tpu.memory_space<vmem>>, vector<1x4x128xbf16>
    %10 = vector.shape_cast %9 : vector<1x4x128xbf16> to vector<4x128xbf16>
    %cst_5 = arith.constant dense<0.000000e+00> : vector<256x128xf32>
    %11 = tpu.matmul %8, %10, %cst_5 {dimension_numbers = #tpu.dot_dimension_numbers<[1], [0], [0], [1], [0, 0, 1, 1], [], []>} : vector<256x4xbf16>, vector<4x128xbf16>, vector<256x128xf32> -> vector<256x128xf32>
    %12 = arith.addf %2, %11 : vector<256x128xf32>
    %13 = vector.extract_strided_slice %6 {offsets = [0, 1, 0], sizes = [16, 16, 4], strides = [1, 1, 1]} : vector<16x18x4xbf16> to vector<16x16x4xbf16>
    %14 = vector.shape_cast %13 : vector<16x16x4xbf16> to vector<256x4xbf16>
    %c1 = arith.constant 1 : index
    %c0_6 = arith.constant 0 : index
    %c0_7 = arith.constant 0 : index
    %15 = vector.load %arg3[%c1, %c0_6, %c0_7] : memref<9x4x128xbf16, #tpu.memory_space<vmem>>, vector<1x4x128xbf16>
    %16 = vector.shape_cast %15 : vector<1x4x128xbf16> to vector<4x128xbf16>
    %cst_8 = arith.constant dense<0.000000e+00> : vector<256x128xf32>
    %17 = tpu.matmul %14, %16, %cst_8 {dimension_numbers = #tpu.dot_dimension_numbers<[1], [0], [0], [1], [0, 0, 1, 1], [], []>} : vector<256x4xbf16>, vector<4x128xbf16>, vector<256x128xf32> -> vector<256x128xf32>
    %18 = arith.addf %12, %17 : vector<256x128xf32>
    %19 = vector.extract_strided_slice %6 {offsets = [0, 2, 0], sizes = [16, 16, 4], strides = [1, 1, 1]} : vector<16x18x4xbf16> to vector<16x16x4xbf16>
    %20 = vector.shape_cast %19 : vector<16x16x4xbf16> to vector<256x4xbf16>
    %c2 = arith.constant 2 : index
    %c0_9 = arith.constant 0 : index
    %c0_10 = arith.constant 0 : index
    %21 = vector.load %arg3[%c2, %c0_9, %c0_10] : memref<9x4x128xbf16, #tpu.memory_space<vmem>>, vector<1x4x128xbf16>
    %22 = vector.shape_cast %21 : vector<1x4x128xbf16> to vector<4x128xbf16>
    %cst_11 = arith.constant dense<0.000000e+00> : vector<256x128xf32>
    %23 = tpu.matmul %20, %22, %cst_11 {dimension_numbers = #tpu.dot_dimension_numbers<[1], [0], [0], [1], [0, 0, 1, 1], [], []>} : vector<256x4xbf16>, vector<4x128xbf16>, vector<256x128xf32> -> vector<256x128xf32>
    %24 = arith.addf %18, %23 : vector<256x128xf32>
    %c1_i32 = arith.constant 1 : i32
    %25 = arith.addi %1, %c1_i32 : i32
    %c0_12 = arith.constant 0 : index
    %26 = arith.index_cast %25 : i32 to index
    %c0_13 = arith.constant 0 : index
    %c0_14 = arith.constant 0 : index
    %27 = vector.load %arg2[%c0_12, %26, %c0_13, %c0_14] : memref<1x18x18x4xbf16, #tpu.memory_space<vmem>>, vector<1x16x18x4xbf16>
    %28 = vector.shape_cast %27 : vector<1x16x18x4xbf16> to vector<16x18x4xbf16>
    %29 = vector.extract_strided_slice %28 {offsets = [0, 0, 0], sizes = [16, 16, 4], strides = [1, 1, 1]} : vector<16x18x4xbf16> to vector<16x16x4xbf16>
    %30 = vector.shape_cast %29 : vector<16x16x4xbf16> to vector<256x4xbf16>
    %c3 = arith.constant 3 : index
    %c0_15 = arith.constant 0 : index
    %c0_16 = arith.constant 0 : index
    %31 = vector.load %arg3[%c3, %c0_15, %c0_16] : memref<9x4x128xbf16, #tpu.memory_space<vmem>>, vector<1x4x128xbf16>
    %32 = vector.shape_cast %31 : vector<1x4x128xbf16> to vector<4x128xbf16>
    %cst_17 = arith.constant dense<0.000000e+00> : vector<256x128xf32>
    %33 = tpu.matmul %30, %32, %cst_17 {dimension_numbers = #tpu.dot_dimension_numbers<[1], [0], [0], [1], [0, 0, 1, 1], [], []>} : vector<256x4xbf16>, vector<4x128xbf16>, vector<256x128xf32> -> vector<256x128xf32>
    %34 = arith.addf %24, %33 : vector<256x128xf32>
    %35 = vector.extract_strided_slice %28 {offsets = [0, 1, 0], sizes = [16, 16, 4], strides = [1, 1, 1]} : vector<16x18x4xbf16> to vector<16x16x4xbf16>
    %36 = vector.shape_cast %35 : vector<16x16x4xbf16> to vector<256x4xbf16>
    %c4 = arith.constant 4 : index
    %c0_18 = arith.constant 0 : index
    %c0_19 = arith.constant 0 : index
    %37 = vector.load %arg3[%c4, %c0_18, %c0_19] : memref<9x4x128xbf16, #tpu.memory_space<vmem>>, vector<1x4x128xbf16>
    %38 = vector.shape_cast %37 : vector<1x4x128xbf16> to vector<4x128xbf16>
    %cst_20 = arith.constant dense<0.000000e+00> : vector<256x128xf32>
    %39 = tpu.matmul %36, %38, %cst_20 {dimension_numbers = #tpu.dot_dimension_numbers<[1], [0], [0], [1], [0, 0, 1, 1], [], []>} : vector<256x4xbf16>, vector<4x128xbf16>, vector<256x128xf32> -> vector<256x128xf32>
    %40 = arith.addf %34, %39 : vector<256x128xf32>
    %41 = vector.extract_strided_slice %28 {offsets = [0, 2, 0], sizes = [16, 16, 4], strides = [1, 1, 1]} : vector<16x18x4xbf16> to vector<16x16x4xbf16>
    %42 = vector.shape_cast %41 : vector<16x16x4xbf16> to vector<256x4xbf16>
    %c5 = arith.constant 5 : index
    %c0_21 = arith.constant 0 : index
    %c0_22 = arith.constant 0 : index
    %43 = vector.load %arg3[%c5, %c0_21, %c0_22] : memref<9x4x128xbf16, #tpu.memory_space<vmem>>, vector<1x4x128xbf16>
    %44 = vector.shape_cast %43 : vector<1x4x128xbf16> to vector<4x128xbf16>
    %cst_23 = arith.constant dense<0.000000e+00> : vector<256x128xf32>
    %45 = tpu.matmul %42, %44, %cst_23 {dimension_numbers = #tpu.dot_dimension_numbers<[1], [0], [0], [1], [0, 0, 1, 1], [], []>} : vector<256x4xbf16>, vector<4x128xbf16>, vector<256x128xf32> -> vector<256x128xf32>
    %46 = arith.addf %40, %45 : vector<256x128xf32>
    %c2_i32 = arith.constant 2 : i32
    %47 = arith.addi %1, %c2_i32 : i32
    %c0_24 = arith.constant 0 : index
    %48 = arith.index_cast %47 : i32 to index
    %c0_25 = arith.constant 0 : index
    %c0_26 = arith.constant 0 : index
    %49 = vector.load %arg2[%c0_24, %48, %c0_25, %c0_26] : memref<1x18x18x4xbf16, #tpu.memory_space<vmem>>, vector<1x16x18x4xbf16>
    %50 = vector.shape_cast %49 : vector<1x16x18x4xbf16> to vector<16x18x4xbf16>
    %51 = vector.extract_strided_slice %50 {offsets = [0, 0, 0], sizes = [16, 16, 4], strides = [1, 1, 1]} : vector<16x18x4xbf16> to vector<16x16x4xbf16>
    %52 = vector.shape_cast %51 : vector<16x16x4xbf16> to vector<256x4xbf16>
    %c6 = arith.constant 6 : index
    %c0_27 = arith.constant 0 : index
    %c0_28 = arith.constant 0 : index
    %53 = vector.load %arg3[%c6, %c0_27, %c0_28] : memref<9x4x128xbf16, #tpu.memory_space<vmem>>, vector<1x4x128xbf16>
    %54 = vector.shape_cast %53 : vector<1x4x128xbf16> to vector<4x128xbf16>
    %cst_29 = arith.constant dense<0.000000e+00> : vector<256x128xf32>
    %55 = tpu.matmul %52, %54, %cst_29 {dimension_numbers = #tpu.dot_dimension_numbers<[1], [0], [0], [1], [0, 0, 1, 1], [], []>} : vector<256x4xbf16>, vector<4x128xbf16>, vector<256x128xf32> -> vector<256x128xf32>
    %56 = arith.addf %46, %55 : vector<256x128xf32>
    %57 = vector.extract_strided_slice %50 {offsets = [0, 1, 0], sizes = [16, 16, 4], strides = [1, 1, 1]} : vector<16x18x4xbf16> to vector<16x16x4xbf16>
    %58 = vector.shape_cast %57 : vector<16x16x4xbf16> to vector<256x4xbf16>
    %c7 = arith.constant 7 : index
    %c0_30 = arith.constant 0 : index
    %c0_31 = arith.constant 0 : index
    %59 = vector.load %arg3[%c7, %c0_30, %c0_31] : memref<9x4x128xbf16, #tpu.memory_space<vmem>>, vector<1x4x128xbf16>
    %60 = vector.shape_cast %59 : vector<1x4x128xbf16> to vector<4x128xbf16>
    %cst_32 = arith.constant dense<0.000000e+00> : vector<256x128xf32>
    %61 = tpu.matmul %58, %60, %cst_32 {dimension_numbers = #tpu.dot_dimension_numbers<[1], [0], [0], [1], [0, 0, 1, 1], [], []>} : vector<256x4xbf16>, vector<4x128xbf16>, vector<256x128xf32> -> vector<256x128xf32>
    %62 = arith.addf %56, %61 : vector<256x128xf32>
    %63 = vector.extract_strided_slice %50 {offsets = [0, 2, 0], sizes = [16, 16, 4], strides = [1, 1, 1]} : vector<16x18x4xbf16> to vector<16x16x4xbf16>
    %64 = vector.shape_cast %63 : vector<16x16x4xbf16> to vector<256x4xbf16>
    %c8 = arith.constant 8 : index
    %c0_33 = arith.constant 0 : index
    %c0_34 = arith.constant 0 : index
    %65 = vector.load %arg3[%c8, %c0_33, %c0_34] : memref<9x4x128xbf16, #tpu.memory_space<vmem>>, vector<1x4x128xbf16>
    %66 = vector.shape_cast %65 : vector<1x4x128xbf16> to vector<4x128xbf16>
    %cst_35 = arith.constant dense<0.000000e+00> : vector<256x128xf32>
    %67 = tpu.matmul %64, %66, %cst_35 {dimension_numbers = #tpu.dot_dimension_numbers<[1], [0], [0], [1], [0, 0, 1, 1], [], []>} : vector<256x4xbf16>, vector<4x128xbf16>, vector<256x128xf32> -> vector<256x128xf32>
    %68 = arith.addf %62, %67 : vector<256x128xf32>
    %c0_36 = arith.constant 0 : index
    %c0_37 = arith.constant 0 : index
    %69 = vector.load %arg4[%c0_36, %c0_37] : memref<256x128xf32, #tpu.memory_space<vmem>>, vector<256x128xf32>
    tpu.vector_store %arg4[%c0_36, %c0_37], %68 {strides = array<i32>} : memref<256x128xf32, #tpu.memory_space<vmem>>, vector<256x128xf32>,
    %cst_38 = arith.constant dense<0.000000e+00> : vector<128xf32>
    %70 = vector.multi_reduction <add>, %68, %cst_38 [0] : vector<256x128xf32> to vector<128xf32>
    %71 = vector.shape_cast %70 : vector<128xf32> to vector<1x128xf32>
    %72 = arith.mulf %68, %68 : vector<256x128xf32>
    %cst_39 = arith.constant dense<0.000000e+00> : vector<128xf32>
    %73 = vector.multi_reduction <add>, %72, %cst_39 [0] : vector<256x128xf32> to vector<128xf32>
    %74 = vector.shape_cast %73 : vector<128xf32> to vector<1x128xf32>
    %75 = tpu.concatenate %71, %74 in 0 : vector<1x128xf32>, vector<1x128xf32> -> vector<2x128xf32>
    %c0_40 = arith.constant 0 : index
    %c0_41 = arith.constant 0 : index
    %c0_42 = arith.constant 0 : index
    %76 = vector.load %arg5[%c0_40, %c0_41, %c0_42] : memref<1x2x128xf32, #tpu.memory_space<vmem>>, vector<1x2x128xf32>
    %77 = vector.shape_cast %76 : vector<1x2x128xf32> to vector<2x128xf32>
    %78 = vector.shape_cast %75 : vector<2x128xf32> to vector<1x2x128xf32>
    tpu.vector_store %arg5[%c0_40, %c0_41, %c0_42], %78 {strides = array<i32>} : memref<1x2x128xf32, #tpu.memory_space<vmem>>, vector<1x2x128xf32>,
    return
  }
  func.func @transform_0(%arg0: i32, %arg1: i32) -> (i32, i32, i32, i32) {
    %c0_i32 = arith.constant 0 : i32
    %c0_i32_0 = arith.constant 0 : i32
    %c0_i32_1 = arith.constant 0 : i32
    %c0_i32_2 = arith.constant 0 : i32
    return %arg0, %c0_i32, %c0_i32_0, %c0_i32_1 : i32, i32, i32, i32
  }
  func.func @transform_1(%arg0: i32, %arg1: i32) -> (i32, i32, i32) {
    %c0_i32 = arith.constant 0 : i32
    %c0_i32_0 = arith.constant 0 : i32
    %c0_i32_1 = arith.constant 0 : i32
    %c0_i32_2 = arith.constant 0 : i32
    return %c0_i32, %c0_i32_0, %c0_i32_1 : i32, i32, i32
  }
  func.func @transform_2(%arg0: i32, %arg1: i32) -> (i32, i32) {
    %c1_i32 = arith.constant 1 : i32
    %0 = arith.muli %arg0, %c1_i32 : i32
    %1 = arith.addi %0, %arg1 : i32
    %c0_i32 = arith.constant 0 : i32
    %c0_i32_0 = arith.constant 0 : i32
    return %1, %c0_i32 : i32, i32
  }
  func.func @transform_3(%arg0: i32, %arg1: i32) -> (i32, i32, i32) {
    %c1_i32 = arith.constant 1 : i32
    %0 = arith.muli %arg0, %c1_i32 : i32
    %1 = arith.addi %0, %arg1 : i32
    %c0_i32 = arith.constant 0 : i32
    %c0_i32_0 = arith.constant 0 : i32
    %c0_i32_1 = arith.constant 0 : i32
    return %1, %c0_i32, %c0_i32_0 : i32, i32, i32
  }
}

module attributes {stable_mosaic.version = 11 : i64} {
  func.func @_bn_apply_kernel(%arg0: i32, %arg1: memref<512x128xf32, #tpu.memory_space<vmem>>, %arg2: memref<1x128xf32, #tpu.memory_space<vmem>>, %arg3: memref<1x128xf32, #tpu.memory_space<vmem>>, %arg4: memref<512x128xf32, #tpu.memory_space<vmem>>) attributes {dimension_semantics = [#tpu.dimension_semantics<parallel>], iteration_bounds = array<i64: 1>, scalar_prefetch = 0 : i64, scratch_operands = 0 : i64, tpu.core_type = #tpu.core_type<tc>, window_params = [{transform_indices = @transform_0, window_bounds = array<i64: 512, 128>}, {pipeline_mode = #tpu.pipeline_mode<synchronous>, transform_indices = @transform_1, window_bounds = array<i64: 1, 128>}, {pipeline_mode = #tpu.pipeline_mode<synchronous>, transform_indices = @transform_2, window_bounds = array<i64: 1, 128>}, {transform_indices = @transform_3, window_bounds = array<i64: 512, 128>}]} {
    %c0 = arith.constant 0 : index
    %c0_0 = arith.constant 0 : index
    %0 = vector.load %arg1[%c0, %c0_0] : memref<512x128xf32, #tpu.memory_space<vmem>>, vector<512x128xf32>
    %c0_1 = arith.constant 0 : index
    %c0_2 = arith.constant 0 : index
    %1 = vector.load %arg2[%c0_1, %c0_2] : memref<1x128xf32, #tpu.memory_space<vmem>>, vector<1x128xf32>
    %2 = vector.broadcast %1 : vector<1x128xf32> to vector<512x128xf32>
    %3 = arith.mulf %0, %2 : vector<512x128xf32>
    %c0_3 = arith.constant 0 : index
    %c0_4 = arith.constant 0 : index
    %4 = vector.load %arg3[%c0_3, %c0_4] : memref<1x128xf32, #tpu.memory_space<vmem>>, vector<1x128xf32>
    %5 = vector.broadcast %4 : vector<1x128xf32> to vector<512x128xf32>
    %6 = arith.addf %3, %5 : vector<512x128xf32>
    %c0_5 = arith.constant 0 : index
    %c0_6 = arith.constant 0 : index
    %7 = vector.load %arg4[%c0_5, %c0_6] : memref<512x128xf32, #tpu.memory_space<vmem>>, vector<512x128xf32>
    tpu.vector_store %arg4[%c0_5, %c0_6], %6 {strides = array<i32>} : memref<512x128xf32, #tpu.memory_space<vmem>>, vector<512x128xf32>,
    return
  }
  func.func @transform_0(%arg0: i32) -> (i32, i32) {
    %c0_i32 = arith.constant 0 : i32
    %c0_i32_0 = arith.constant 0 : i32
    return %arg0, %c0_i32 : i32, i32
  }
  func.func @transform_1(%arg0: i32) -> (i32, i32) {
    %c0_i32 = arith.constant 0 : i32
    %c0_i32_0 = arith.constant 0 : i32
    %c0_i32_1 = arith.constant 0 : i32
    return %c0_i32, %c0_i32_0 : i32, i32
  }
  func.func @transform_2(%arg0: i32) -> (i32, i32) {
    %c0_i32 = arith.constant 0 : i32
    %c0_i32_0 = arith.constant 0 : i32
    %c0_i32_1 = arith.constant 0 : i32
    return %c0_i32, %c0_i32_0 : i32, i32
  }
  func.func @transform_3(%arg0: i32) -> (i32, i32) {
    %c0_i32 = arith.constant 0 : i32
    %c0_i32_0 = arith.constant 0 : i32
    return %arg0, %c0_i32 : i32, i32
  }
}

</mosaic_0001>

<bundles_post_ra>
// kernel: conv_bn_forward.3
= control target key start
LH: loop header
LB: loop body
LE: loop exit
PB: predicated region body
PF: predicated region fallthrough
CT: control target
= control target key end

     0   :  { %s832_s0 = inlined_call_operand.vmem [shape: f32[512,128], index: 0, kind: input, shape index: {}]   ;;  %s833_s1 = inlined_call_operand.vmem [shape: f32[1,128], index: 1, kind: input, shape index: {}]   ;;  %s834_s2 = inlined_call_operand.vmem [shape: f32[1,128], index: 2, kind: input, shape index: {}]   ;;  %s835_s3 = inlined_call_operand.vmem [shape: f32[512,128], index: 3, kind: output, shape index: {}]  }
   0x1   :  { %v14_v0 = vld [vmem:[%s832_s0] sm:$0xff]  ;;  %v15_v4 = vld [vmem:[%s832_s0 + $0x8] sm:$0xff]  ;;  %v16_v5 = vld [vmem:[%s832_s0 + $0x10] sm:$0xff] }
   0x2   :  { %v316_v1 = vld [vmem:[%s833_s1] ss:$0 sm:$0xff]  ;;  %v17_v6 = vld [vmem:[%s832_s0 + $0x18] sm:$0xff]  ;;  %v19_v11 = vld [vmem:[%s832_s0 + $0x28] sm:$0xff] }
   0x3   :  { %v321_v2 = vld [vmem:[%s834_s2] ss:$0 sm:$0xff]  ;;  %v85_v3 = vmul.f32 %v316_v1, %v14_v0  ;;  %v86_v7 = vmul.f32 %v316_v1, %v15_v4  ;;  %v87_v8 = vmul.f32 %v316_v1, %v16_v5  ;;  %v88_v9 = vmul.f32 %v316_v1, %v17_v6  ;;  %v20_v12 = vld [vmem:[%s832_s0 + $0x30] sm:$0xff]  ;;  %v21_v17 = vld [vmem:[%s832_s0 + $0x38] sm:$0xff] }
   0x4   :  { %v18_v10 = vld [vmem:[%s832_s0 + $0x20] sm:$0xff]  ;;  %v90_v15 = vmul.f32 %v316_v1, %v19_v11  ;;  %v91_v16 = vmul.f32 %v316_v1, %v20_v12  ;;  %v23_v19 = vld [vmem:[%s832_s0 + $0x48] sm:$0xff]  ;;  %v92_v23 = vmul.f32 %v316_v1, %v21_v17  ;;  %v24_v24 = vld [vmem:[%s832_s0 + $0x50] sm:$0xff] }
   0x5   :  { %v156_v13 = vadd.f32 %v321_v2, %v85_v3  ;;  %v89_v14 = vmul.f32 %v316_v1, %v18_v10  ;;  %v22_v18 = vld [vmem:[%s832_s0 + $0x40] sm:$0xff]  ;;  %v157_v20 = vadd.f32 %v321_v2, %v86_v7  ;;  %v158_v21 = vadd.f32 %v321_v2, %v87_v8  ;;  %v25_v25 = vld [vmem:[%s832_s0 + $0x58] sm:$0xff]  ;;  %v27_v31 = vld [vmem:[%s832_s0 + $0x68] sm:$0xff] }
   0x6   :  { %v159_v22 = vadd.f32 %v321_v2, %v88_v9  ;;  %v26_v26 = vld [vmem:[%s832_s0 + $0x60] sm:$0xff]  ;;  %v161_v28 = vadd.f32 %v321_v2, %v90_v15  ;;  %v162_v29 = vadd.f32 %v321_v2, %v91_v16  ;;  %v93_v30 = vmul.f32 %v316_v1, %v22_v18  ;;  %v28_v32 = vld [vmem:[%s832_s0 + $0x70] sm:$0xff]  ;;  %v29_v33 = vld [vmem:[%s832_s0 + $0x78] sm:$0xff] }
   0x7   :  { %220 = vst [vmem:[%s835_s3] sm:$0xff] %v156_v13  ;;  %v160_v27 = vadd.f32 %v321_v2, %v89_v14  ;;  %221 = vst [vmem:[%s835_s3 + $0x8] sm:$0xff] %v157_v20  ;;  %v163_v34 = vadd.f32 %v321_v2, %v92_v23  ;;  %v94_v35 = vmul.f32 %v316_v1, %v23_v19  ;;  %v30_v38 = vld [vmem:[%s832_s0 + $0x80] sm:$0xff]  ;;  %v31_v43 = vld [vmem:[%s832_s0 + $0x88] sm:$0xff] }
   0x8   :  { %222 = vst [vmem:[%s835_s3 + $0x10] sm:$0xff] %v158_v21  ;;  %223 = vst [vmem:[%s835_s3 + $0x18] sm:$0xff] %v159_v22  ;;  %v95_v36 = vmul.f32 %v316_v1, %v24_v24  ;;  %v96_v37 = vmul.f32 %v316_v1, %v25_v25  ;;  %v164_v39 = vadd.f32 %v321_v2, %v93_v30  ;;  %v32_v44 = vld [vmem:[%s832_s0 + $0x90] sm:$0xff]  ;;  %v33_v45 = vld [vmem:[%s832_s0 + $0x98] sm:$0xff] }
   0x9   :  { %224 = vst [vmem:[%s835_s3 + $0x20] sm:$0xff] %v160_v27  ;;  %225 = vst [vmem:[%s835_s3 + $0x28] sm:$0xff] %v161_v28  ;;  %v97_v40 = vmul.f32 %v316_v1, %v26_v26  ;;  %v98_v41 = vmul.f32 %v316_v1, %v27_v31  ;;  %v99_v42 = vmul.f32 %v316_v1, %v28_v32  ;;  %v34_v50 = vld [vmem:[%s832_s0 + $0xa0] sm:$0xff]  ;;  %v35_v51 = vld [vmem:[%s832_s0 + $0xa8] sm:$0xff] }
   0xa   :  { %226 = vst [vmem:[%s835_s3 + $0x30] sm:$0xff] %v162_v29  ;;  %227 = vst [vmem:[%s835_s3 + $0x38] sm:$0xff] %v163_v34  ;;  %v165_v46 = vadd.f32 %v321_v2, %v94_v35  ;;  %v166_v47 = vadd.f32 %v321_v2, %v95_v36  ;;  %v167_v48 = vadd.f32 %v321_v2, %v96_v37  ;;  %v36_v52 = vld [vmem:[%s832_s0 + $0xb0] sm:$0xff]  ;;  %v37_v57 = vld [vmem:[%s832_s0 + $0xb8] sm:$0xff] }
   0xb   :  { %v100_v49 = vmul.f32 %v316_v1, %v29_v33  ;;  %228 = vst [vmem:[%s835_s3 + $0x40] sm:$0xff] %v164_v39  ;;  %v168_v53 = vadd.f32 %v321_v2, %v97_v40  ;;  %v169_v54 = vadd.f32 %v321_v2, %v98_v41  ;;  %v170_v55 = vadd.f32 %v321_v2, %v99_v42  ;;  %v38_v62 = vld [vmem:[%s832_s0 + $0xc0] sm:$0xff]  ;;  %v39_v5 = vld [vmem:[%s832_s0 + $0xc8] sm:$0xff]  ;;  %v40_v6 = vld [vmem:[%s832_s0 + $0xd0] sm:$0xff] }
   0xc   :  { %v101_v56 = vmul.f32 %v316_v1, %v30_v38  ;;  %229 = vst [vmem:[%s835_s3 + $0x48] sm:$0xff] %v165_v46  ;;  %230 = vst [vmem:[%s835_s3 + $0x50] sm:$0xff] %v166_v47  ;;  %v102_v59 = vmul.f32 %v316_v1, %v31_v43  ;;  %v103_v60 = vmul.f32 %v316_v1, %v32_v44  ;;  %v41_v7 = vld [vmem:[%s832_s0 + $0xd8] sm:$0xff]  ;;  %v42_v12 = vld [vmem:[%s832_s0 + $0xe0] sm:$0xff] }
   0xd   :  { %231 = vst [vmem:[%s835_s3 + $0x58] sm:$0xff] %v167_v48  ;;  %v171_v58 = vadd.f32 %v321_v2, %v100_v49  ;;  %v104_v61 = vmul.f32 %v316_v1, %v33_v45  ;;  %232 = vst [vmem:[%s835_s3 + $0x60] sm:$0xff] %v168_v53  ;;  %v105_v0 = vmul.f32 %v316_v1, %v34_v50  ;;  %v43_v13 = vld [vmem:[%s832_s0 + $0xe8] sm:$0xff]  ;;  %v44_v14 = vld [vmem:[%s832_s0 + $0xf0] sm:$0xff] }
   0xe   :  { %233 = vst [vmem:[%s835_s3 + $0x68] sm:$0xff] %v169_v54  ;;  %234 = vst [vmem:[%s835_s3 + $0x70] sm:$0xff] %v170_v55  ;;  %v172_v63 = vadd.f32 %v321_v2, %v101_v56  ;;  %v106_v3 = vmul.f32 %v316_v1, %v35_v51  ;;  %v107_v4 = vmul.f32 %v316_v1, %v36_v52  ;;  %v45_v19 = vld [vmem:[%s832_s0 + $0xf8] sm:$0xff]  ;;  %v46_v24 = vld [vmem:[%s832_s0 + $0x100] sm:$0xff] }
   0xf   :  { %235 = vst [vmem:[%s835_s3 + $0x78] sm:$0xff] %v171_v58  ;;  %v173_v8 = vadd.f32 %v321_v2, %v102_v59  ;;  %v174_v9 = vadd.f32 %v321_v2, %v103_v60  ;;  %v175_v10 = vadd.f32 %v321_v2, %v104_v61  ;;  %v108_v11 = vmul.f32 %v316_v1, %v37_v57  ;;  %v47_v29 = vld [vmem:[%s832_s0 + $0x108] sm:$0xff]  ;;  %v48_v30 = vld [vmem:[%s832_s0 + $0x110] sm:$0xff]  ;;  %v49_v31 = vld [vmem:[%s832_s0 + $0x118] sm:$0xff] }
  0x10   :  { %236 = vst [vmem:[%s835_s3 + $0x80] sm:$0xff] %v172_v63  ;;  %v176_v15 = vadd.f32 %v321_v2, %v105_v0  ;;  %v177_v16 = vadd.f32 %v321_v2, %v106_v3  ;;  %v178_v17 = vadd.f32 %v321_v2, %v107_v4  ;;  %v109_v18 = vmul.f32 %v316_v1, %v38_v62  ;;  %v50_v36 = vld [vmem:[%s832_s0 + $0x120] sm:$0xff]  ;;  %v51_v37 = vld [vmem:[%s832_s0 + $0x128] sm:$0xff]  ;;  %v52_v38 = vld [vmem:[%s832_s0 + $0x130] sm:$0xff] }
  0x11   :  { %237 = vst [vmem:[%s835_s3 + $0x88] sm:$0xff] %v173_v8  ;;  %238 = vst [vmem:[%s835_s3 + $0x90] sm:$0xff] %v174_v9  ;;  %v179_v20 = vadd.f32 %v321_v2, %v108_v11  ;;  %v110_v21 = vmul.f32 %v316_v1, %v39_v5  ;;  %v111_v22 = vmul.f32 %v316_v1, %v40_v6  ;;  %v53_v43 = vld [vmem:[%s832_s0 + $0x138] sm:$0xff]  ;;  %v54_v48 = vld [vmem:[%s832_s0 + $0x140] sm:$0xff] }
  0x12   :  { %239 = vst [vmem:[%s835_s3 + $0x98] sm:$0xff] %v175_v10  ;;  %v112_v23 = vmul.f32 %v316_v1, %v41_v7  ;;  %240 = vst [vmem:[%s835_s3 + $0xa0] sm:$0xff] %v176_v15  ;;  %v180_v25 = vadd.f32 %v321_v2, %v109_v18  ;;  %v113_v26 = vmul.f32 %v316_v1, %v42_v12  ;;  %v55_v53 = vld [vmem:[%s832_s0 + $0x148] sm:$0xff]  ;;  %v56_v54 = vld [vmem:[%s832_s0 + $0x150] sm:$0xff] }
  0x13   :  { %241 = vst [vmem:[%s835_s3 + $0xa8] sm:$0xff] %v177_v16  ;;  %242 = vst [vmem:[%s835_s3 + $0xb0] sm:$0xff] %v178_v17  ;;  %v114_v27 = vmul.f32 %v316_v1, %v43_v13  ;;  %v115_v28 = vmul.f32 %v316_v1, %v44_v14  ;;  %v181_v32 = vadd.f32 %v321_v2, %v110_v21  ;;  %v57_v55 = vld [vmem:[%s832_s0 + $0x158] sm:$0xff]  ;;  %v58_v60 = vld [vmem:[%s832_s0 + $0x160] sm:$0xff] }
  0x14   :  { %243 = vst [vmem:[%s835_s3 + $0xb8] sm:$0xff] %v179_v20  ;;  %v182_v33 = vadd.f32 %v321_v2, %v111_v22  ;;  %v183_v34 = vadd.f32 %v321_v2, %v112_v23  ;;  %v116_v35 = vmul.f32 %v316_v1, %v45_v19  ;;  %244 = vst [vmem:[%s835_s3 + $0xc0] sm:$0xff] %v180_v25  ;;  %v59_v61 = vld [vmem:[%s832_s0 + $0x168] sm:$0xff]  ;;  %v60_v62 = vld [vmem:[%s832_s0 + $0x170] sm:$0xff] }
  0x15   :  { %v184_v39 = vadd.f32 %v321_v2, %v113_v26  ;;  %v185_v40 = vadd.f32 %v321_v2, %v114_v27  ;;  %v186_v41 = vadd.f32 %v321_v2, %v115_v28  ;;  %v117_v42 = vmul.f32 %v316_v1, %v46_v24  ;;  %245 = vst [vmem:[%s835_s3 + $0xc8] sm:$0xff] %v181_v32  ;;  %v61_v5 = vld [vmem:[%s832_s0 + $0x178] sm:$0xff]  ;;  %v62_v10 = vld [vmem:[%s832_s0 + $0x180] sm:$0xff]  ;;  %v63_v15 = vld [vmem:[%s832_s0 + $0x188] sm:$0xff] }
  0x16   :  { %246 = vst [vmem:[%s835_s3 + $0xd0] sm:$0xff] %v182_v33  ;;  %247 = vst [vmem:[%s835_s3 + $0xd8] sm:$0xff] %v183_v34  ;;  %v187_v44 = vadd.f32 %v321_v2, %v116_v35  ;;  %v118_v45 = vmul.f32 %v316_v1, %v47_v29  ;;  %v119_v46 = vmul.f32 %v316_v1, %v48_v30  ;;  %v64_v16 = vld [vmem:[%s832_s0 + $0x190] sm:$0xff]  ;;  %v65_v17 = vld [vmem:[%s832_s0 + $0x198] sm:$0xff] }
  0x17   :  { %v120_v47 = vmul.f32 %v316_v1, %v49_v31  ;;  %248 = vst [vmem:[%s835_s3 + $0xe0] sm:$0xff] %v184_v39  ;;  %249 = vst [vmem:[%s835_s3 + $0xe8] sm:$0xff] %v185_v40  ;;  %v188_v49 = vadd.f32 %v321_v2, %v117_v42  ;;  %v121_v50 = vmul.f32 %v316_v1, %v50_v36  ;;  %v66_v22 = vld [vmem:[%s832_s0 + $0x1a0] sm:$0xff]  ;;  %v67_v23 = vld [vmem:[%s832_s0 + $0x1a8] sm:$0xff] }
  0x18   :  { %250 = vst [vmem:[%s835_s3 + $0xf0] sm:$0xff] %v186_v41  ;;  %v122_v51 = vmul.f32 %v316_v1, %v51_v37  ;;  %v123_v52 = vmul.f32 %v316_v1, %v52_v38  ;;  %251 = vst [vmem:[%s835_s3 + $0xf8] sm:$0xff] %v187_v44  ;;  %v189_v56 = vadd.f32 %v321_v2, %v118_v45  ;;  %v68_v24 = vld [vmem:[%s832_s0 + $0x1b0] sm:$0xff]  ;;  %v69_v29 = vld [vmem:[%s832_s0 + $0x1b8] sm:$0xff] }
  0x19   :  { %v190_v57 = vadd.f32 %v321_v2, %v119_v46  ;;  %v191_v58 = vadd.f32 %v321_v2, %v120_v47  ;;  %v124_v59 = vmul.f32 %v316_v1, %v53_v43  ;;  %252 = vst [vmem:[%s835_s3 + $0x100] sm:$0xff] %v188_v49  ;;  %v192_v63 = vadd.f32 %v321_v2, %v121_v50  ;;  %v70_v34 = vld [vmem:[%s832_s0 + $0x1c0] sm:$0xff]  ;;  %v71_v39 = vld [vmem:[%s832_s0 + $0x1c8] sm:$0xff]  ;;  %v72_v40 = vld [vmem:[%s832_s0 + $0x1d0] sm:$0xff] }
  0x1a   :  { %v193_v0 = vadd.f32 %v321_v2, %v122_v51  ;;  %v194_v3 = vadd.f32 %v321_v2, %v123_v52  ;;  %v125_v4 = vmul.f32 %v316_v1, %v54_v48  ;;  %253 = vst [vmem:[%s835_s3 + $0x108] sm:$0xff] %v189_v56  ;;  %v126_v7 = vmul.f32 %v316_v1, %v55_v53  ;;  %v73_v41 = vld [vmem:[%s832_s0 + $0x1d8] sm:$0xff]  ;;  %v74_v46 = vld [vmem:[%s832_s0 + $0x1e0] sm:$0xff]  ;;  %v75_v47 = vld [vmem:[%s832_s0 + $0x1e8] sm:$0xff] }
  0x1b   :  { %254 = vst [vmem:[%s835_s3 + $0x110] sm:$0xff] %v190_v57  ;;  %255 = vst [vmem:[%s835_s3 + $0x118] sm:$0xff] %v191_v58  ;;  %v195_v6 = vadd.f32 %v321_v2, %v124_v59  ;;  %v127_v8 = vmul.f32 %v316_v1, %v56_v54  ;;  %v128_v9 = vmul.f32 %v316_v1, %v57_v55  ;;  %v76_v48 = vld [vmem:[%s832_s0 + $0x1f0] sm:$0xff]  ;;  %v77_v53 = vld [vmem:[%s832_s0 + $0x1f8] sm:$0xff] }
  0x1c   :  { %256 = vst [vmem:[%s835_s3 + $0x120] sm:$0xff] %v192_v63  ;;  %257 = vst [vmem:[%s835_s3 + $0x128] sm:$0xff] %v193_v0  ;;  %v196_v11 = vadd.f32 %v321_v2, %v125_v4  ;;  %v129_v12 = vmul.f32 %v316_v1, %v58_v60  ;;  %v130_v13 = vmul.f32 %v316_v1, %v59_v61 }
  0x1d   :  { %258 = vst [vmem:[%s835_s3 + $0x130] sm:$0xff] %v194_v3  ;;  %v131_v14 = vmul.f32 %v316_v1, %v60_v62  ;;  %259 = vst [vmem:[%s835_s3 + $0x138] sm:$0xff] %v195_v6  ;;  %v197_v18 = vadd.f32 %v321_v2, %v126_v7  ;;  %v198_v19 = vadd.f32 %v321_v2, %v127_v8 }
  0x1e   :  { %v199_v20 = vadd.f32 %v321_v2, %v128_v9  ;;  %v132_v21 = vmul.f32 %v316_v1, %v61_v5  ;;  %260 = vst [vmem:[%s835_s3 + $0x140] sm:$0xff] %v196_v11  ;;  %v200_v25 = vadd.f32 %v321_v2, %v129_v12  ;;  %v201_v26 = vadd.f32 %v321_v2, %v130_v13 }
  0x1f   :  { %v202_v27 = vadd.f32 %v321_v2, %v131_v14  ;;  %v133_v28 = vmul.f32 %v316_v1, %v62_v10  ;;  %261 = vst [vmem:[%s835_s3 + $0x148] sm:$0xff] %v197_v18  ;;  %262 = vst [vmem:[%s835_s3 + $0x150] sm:$0xff] %v198_v19  ;;  %v134_v31 = vmul.f32 %v316_v1, %v63_v15 }
  0x20   :  { %263 = vst [vmem:[%s835_s3 + $0x158] sm:$0xff] %v199_v20  ;;  %v203_v30 = vadd.f32 %v321_v2, %v132_v21  ;;  %v135_v32 = vmul.f32 %v316_v1, %v64_v16  ;;  %v136_v33 = vmul.f32 %v316_v1, %v65_v17  ;;  %264 = vst [vmem:[%s835_s3 + $0x160] sm:$0xff] %v200_v25 }
  0x21   :  { %265 = vst [vmem:[%s835_s3 + $0x168] sm:$0xff] %v201_v26  ;;  %266 = vst [vmem:[%s835_s3 + $0x170] sm:$0xff] %v202_v27  ;;  %v204_v35 = vadd.f32 %v321_v2, %v133_v28  ;;  %v137_v36 = vmul.f32 %v316_v1, %v66_v22  ;;  %v138_v37 = vmul.f32 %v316_v1, %v67_v23 }
  0x22   :  { %v139_v38 = vmul.f32 %v316_v1, %v68_v24  ;;  %267 = vst [vmem:[%s835_s3 + $0x178] sm:$0xff] %v203_v30  ;;  %v205_v42 = vadd.f32 %v321_v2, %v134_v31  ;;  %v206_v43 = vadd.f32 %v321_v2, %v135_v32  ;;  %v207_v44 = vadd.f32 %v321_v2, %v136_v33 }
  0x23   :  { %v140_v45 = vmul.f32 %v316_v1, %v69_v29  ;;  %268 = vst [vmem:[%s835_s3 + $0x180] sm:$0xff] %v204_v35  ;;  %v208_v49 = vadd.f32 %v321_v2, %v137_v36  ;;  %v209_v50 = vadd.f32 %v321_v2, %v138_v37  ;;  %v141_v52 = vmul.f32 %v316_v1, %v70_v34 }
  0x24   :  { %v210_v51 = vadd.f32 %v321_v2, %v139_v38  ;;  %269 = vst [vmem:[%s835_s3 + $0x188] sm:$0xff] %v205_v42  ;;  %270 = vst [vmem:[%s835_s3 + $0x190] sm:$0xff] %v206_v43  ;;  %v142_v55 = vmul.f32 %v316_v1, %v71_v39  ;;  %v143_v56 = vmul.f32 %v316_v1, %v72_v40 }
  0x25   :  { %271 = vst [vmem:[%s835_s3 + $0x198] sm:$0xff] %v207_v44  ;;  %v211_v54 = vadd.f32 %v321_v2, %v140_v45  ;;  %v144_v57 = vmul.f32 %v316_v1, %v73_v41  ;;  %272 = vst [vmem:[%s835_s3 + $0x1a0] sm:$0xff] %v208_v49  ;;  %v212_v58 = vadd.f32 %v321_v2, %v141_v52 }
  0x26   :  { %273 = vst [vmem:[%s835_s3 + $0x1a8] sm:$0xff] %v209_v50  ;;  %274 = vst [vmem:[%s835_s3 + $0x1b0] sm:$0xff] %v210_v51  ;;  %v145_v59 = vmul.f32 %v316_v1, %v74_v46  ;;  %v146_v60 = vmul.f32 %v316_v1, %v75_v47  ;;  %v147_v61 = vmul.f32 %v316_v1, %v76_v48 }
  0x27   :  { %275 = vst [vmem:[%s835_s3 + $0x1b8] sm:$0xff] %v211_v54  ;;  %v213_v62 = vadd.f32 %v321_v2, %v142_v55  ;;  %v214_v63 = vadd.f32 %v321_v2, %v143_v56  ;;  %v215_v0 = vadd.f32 %v321_v2, %v144_v57  ;;  %v148_v3 = vmul.f32 %v316_v1, %v77_v53 }
  0x28   :  { %276 = vst [vmem:[%s835_s3 + $0x1c0] sm:$0xff] %v212_v58  ;;  %v216_v4 = vadd.f32 %v321_v2, %v145_v59  ;;  %v217_v5 = vadd.f32 %v321_v2, %v146_v60  ;;  %v218_v6 = vadd.f32 %v321_v2, %v147_v61 }
  0x29   :  { %277 = vst [vmem:[%s835_s3 + $0x1c8] sm:$0xff] %v213_v62  ;;  %278 = vst [vmem:[%s835_s3 + $0x1d0] sm:$0xff] %v214_v63  ;;  %v219_v1 = vadd.f32 %v321_v2, %v148_v3 }
  0x2a   :  { %279 = vst [vmem:[%s835_s3 + $0x1d8] sm:$0xff] %v215_v0  ;;  %280 = vst [vmem:[%s835_s3 + $0x1e0] sm:$0xff] %v216_v4 }
  0x2b   :  { %281 = vst [vmem:[%s835_s3 + $0x1e8] sm:$0xff] %v217_v5  ;;  %282 = vst [vmem:[%s835_s3 + $0x1f0] sm:$0xff] %v218_v6 }
  0x2c   :  { %283 = vst [vmem:[%s835_s3 + $0x1f8] sm:$0xff] %v219_v1 }

// kernel: conv_bn_forward.2
= control target key start
LH: loop header
LB: loop body
LE: loop exit
PB: predicated region body
PF: predicated region fallthrough
CT: control target
= control target key end

     0   :  { %s6243_s12 = smov 0   ;;  %s6245_s13 = smov 0   ;;  %s8289_s0 = inlined_call_operand.vmem [shape: bf16[2,18,18,4], index: 0, kind: input, shape index: {}]   ;;  %s8290_s1 = inlined_call_operand.vmem [shape: bf16[9,4,128], index: 1, kind: input, shape index: {}]   ;;  %s8291_s2 = inlined_call_operand.vmem [shape: f32[512,128], index: 2, kind: output, shape index: {0}]   ;;  %s8292_s3 = inlined_call_operand.vmem [shape: f32[2,2,128], index: 3, kind: output, shape index: {1}]  }
   0x1   :  { %s6247_s14 = smov 0  }
   0x2 LB: > { %s26_s15 = sadd.s32 1, %s6217_s13  ;;  %p4840_p0 = scmp.ge.s32.totalorder %s6221_s14, 1  ;;  %s6221_s14 = sphi %s6247_s14, %s14_s14   ;;  %s6217_s13 = sphi %s6245_s13, %s8406_s13   ;;  %s6213_s12 = sphi %s6243_s12, %s8405_s12  }
   0x3   : > { %p28_p1 = scmp.ge.s32.totalorder %s26_s15, 2  ;;  %p156_p2 = scmp.lt.s32.totalorder %s6221_s14, 3 }
   0x5   : > { %s8408_s15 = smov (%p28_p1, %s26_s15), 0  ;;  %p157_p3 = pnand %p4840_p0, %p156_p2 }
   0x7   : > { %160 = sbr.rel (%p157_p3) target bundleno = 610 (0x262), region = 28 }
   0xe   : > { %v4845_v0 = vld [vmem:[%s8290_s1 + $0x2] sm:$0x3]  ;;  %vm745_vm0 = vcmask 1041408   ;;  %v5040_v1 = vld [vmem:[%s8290_s1 + $0x8] sm:$0x3]  ;;  %p186_p4 = scmp.lt.s32.totalorder %s6213_s12, 1 }
   0xf   : > { %6004 = vmatprep.subr.msk.bf16.mxu1 %vm745_vm0, %v4845_v0  ;;  %6008 = vmatprep.subr.msk.bf16.mxu0 %vm745_vm0, %v5040_v1  ;;  %v747_v2 = vsel %vm745_vm0, %v4845_v0, 0  ;;  %v6274_v3 = vsel %vm745_vm0, %v5040_v1, 0  ;;  %v258_v4 = vld [vmem:[%s8290_s1] sm:$0x3]  ;;  %v5089_v5 = vld [vmem:[%s8290_s1 + $0xa] sm:$0x3] }
  0x10   : > { %8315 = vst [vmem:[#allocation2_spill] sm:$0xff] %v6274_v3  ;;  %5441 = vmatpush3.bf16.msra.mxu1 %v747_v2  ;;  %5577 = vmatpush3.bf16.msra.mxu0 %v6274_v3  ;;  %s6278_s20 = scalar_select %p186_p4, %s6213_s12, 1  ;;  %vm259_vm1 = vsmask.f32 3328  ;;  %vm260_vm2 = vsmask.f32 7440 }
  0x11   : > { %6005 = vmatprep.subr.msk.bf16.mxu1 %vm745_vm0, %v258_v4  ;;  %6010 = vmatprep.subr.msk.bf16.mxu0 %vm745_vm0, %v5089_v5  ;;  %vm696_vm3 = vcmask 31744   ;;  %v6307_v17 = vsel %vm745_vm0, %v258_v4, 0  ;;  %vm6318_vm4 = vmor %vm259_vm1, %vm260_vm2  ;;  %v6323_v36 = vsel %vm745_vm0, %v5089_v5, 0  ;;  %v6333_v50 = vld [vmem:[%s8290_s1 + $0xc] sm:$0x3]  ;;  %vm1218_vm5 = vcmask 1042432  }
  0x12   : > { %s6014_s25 = smul.u32 216, %s6278_s20  ;;  %v6350_v1 = vsel %vm745_vm0, %v6333_v50, 0  ;;  %vm1219_vm6 = vcmask 1046532   ;;  %s4842_s21 = sshll.u32 %s6213_s12, 5  ;;  %vm4721_vm8 = vcmask 1040384  }
  0x13   : > { %vm6584_vm7 = vmor %vm1218_vm5, %vm1219_vm6  ;;  %p193_p5 = scmp.lt.s32.totalorder %s4842_s21, 63  ;;  %s4844_s12 = sshll.u32 %s6278_s20, 1 }
  0x14   : > { %s6292_s28 = scalar_lea.vmem %s8289_s0, %s6014_s25 }
  0x15   : > { %v210_v6 = vld [vmem:[%s6292_s28] sm:$0xf]  ;;  %v211_v7 = vld [vmem:[%s6292_s28 + $0x4] sm:$0xf]  ;;  %v212_v8 = vld [vmem:[%s6292_s28 + $0x8] sm:$0x1] }
  0x16   : > { %v263_v9 = vshrl.u32 %v210_v6, 16  ;;  %v266_v10 = vshll.u32 %v210_v6, 16  ;;  %v272_v11 = vshll.u32 %v211_v7, 16  ;;  %v276_v12 = vshrl.u32 %v211_v7, 16  ;;  %v6298_v13 = vld [vmem:[%s6292_s28 + $0xc] sm:$0xf] }
  0x17   : > { %v282_v14 = vshll.u32 %v212_v8, 16  ;;  %v6301_v15 = vld [vmem:[%s6292_s28 + $0x10] sm:$0xf]  ;;  %v6304_v16 = vld [vmem:[%s6292_s28 + $0x14] sm:$0x1]  ;;  %v2006_v23 = vshrl.u32 %v6298_v13, 16 }
  0x18   : > { %v265_v18 = vrot.slane %v263_v9, 4  ;;  %v268_v19 = vrot.slane %v266_v10, 5  ;;  %v274_v20 = vrot.slane %v272_v11, 5  ;;  %v278_v21 = vrot.slane %v276_v12, 4  ;;  %v213_v30 = vld [vmem:[%s6292_s28 + $0xc] sm:$0xf] }
  0x19   : > { %v284_v22 = vrot.slane %v282_v14, 5  ;;  %v2009_v24 = vshll.u32 %v6298_v13, 16  ;;  %v2015_v25 = vshll.u32 %v6301_v15, 16  ;;  %v2019_v28 = vshrl.u32 %v6301_v15, 16  ;;  %v214_v31 = vld [vmem:[%s6292_s28 + $0x10] sm:$0xf] }
  0x1a   : > { %v269_v26 = vor.u32 %v268_v19, %v265_v18  ;;  %v279_v27 = vor.u32 %v278_v21, %v274_v20  ;;  %v2025_v29 = vshll.u32 %v6304_v16, 16  ;;  %v2008_v33 = vrot.slane %v2006_v23, 4  ;;  %v215_v42 = vld [vmem:[%s6292_s28 + $0x14] sm:$0x1]  ;;  %v6336_v55 = vld [vmem:[%s6292_s28 + $0x18] sm:$0xf] }
  0x1b   : > { %v2011_v34 = vrot.slane %v2009_v24, 5  ;;  %v2017_v35 = vrot.slane %v2015_v25, 5  ;;  %v2021_v39 = vrot.slane %v2019_v28, 4  ;;  %v287_v43 = vshrl.u32 %v213_v30, 16  ;;  %v6339_v60 = vld [vmem:[%s6292_s28 + $0x1c] sm:$0xf] }
  0x1c   : > { %v270_v37 = vrot.slane %v269_v26, 4  ;;  %v280_v38 = vrot.slane %v279_v27, 4  ;;  %v2027_v40 = vrot.slane %v2025_v29, 5  ;;  %v290_v44 = vshll.u32 %v213_v30, 16  ;;  %v6346_v0 = vld [vmem:[%s6292_s28 + $0x20] sm:$0x1] }
  0x1d   : > { %v2012_v41 = vor.u32 %v2011_v34, %v2008_v33  ;;  %v296_v45 = vshll.u32 %v214_v31, 16  ;;  %v2022_v48 = vor.u32 %v2021_v39, %v2017_v35  ;;  %v300_v49 = vshrl.u32 %v214_v31, 16  ;;  %v216_v11 = vld [vmem:[%s6292_s28 + $0x18] sm:$0xf]  ;;  %v218_v25 = vld [vmem:[%s6292_s28 + $0x20] sm:$0x1] }
  0x1e   : > { %v275_v46 = vsel %vm6318_vm4, %v270_v37, %v274_v20  ;;  %v285_v47 = vsel %vm6318_vm4, %v280_v38, %v284_v22  ;;  %v289_v53 = vrot.slane %v287_v43, 4  ;;  %v292_v54 = vrot.slane %v290_v44, 5  ;;  %v217_v20 = vld [vmem:[%s6292_s28 + $0x1c] sm:$0xf]  ;;  %v6370_v30 = vld [vmem:[%s6292_s28 + $0x24] sm:$0xf] }
  0x1f   : > { %v4846_v51 = vcombine.low %v275_v46, %v285_v47  ;;  %v2013_v52 = vrot.slane %v2012_v41, 4  ;;  %v2023_v56 = vrot.slane %v2022_v48, 4  ;;  %v298_v57 = vrot.slane %v296_v45, 5  ;;  %v4926_v41 = vld [vmem:[%s8290_s1 + $0x4] sm:$0x3]  ;;  %s8410_s21 = smov (!%p193_p5, %s4842_s21), 63 }
  0x20   : > { %v302_v58 = vrot.slane %v300_v49, 4  ;;  %v306_v59 = vshll.u32 %v215_v42, 16  ;;  %v2704_v62 = vrot.slane %v6304_v16, 5  ;;  %v293_v63 = vor.u32 %v292_v54, %v289_v53  ;;  %v6377_v45 = vld [vmem:[%s6292_s28 + $0x28] sm:$0xf]  ;;  %s4843_s22 = sshll.u32 %s8410_s21, 3 }
  0x21   : > { %5442 = vmatprep.mubr.msk.bf16.mxu1 %vm696_vm3, %v4846_v51  ;;  %v2018_v61 = vsel %vm6318_vm4, %v2013_v52, %v2017_v35  ;;  %v2028_v2 = vsel %vm6318_vm4, %v2023_v56, %v2027_v40  ;;  %v2030_v6 = vshrl.u32 %v6336_v55, 16  ;;  %v2033_v9 = vshll.u32 %v6336_v55, 16  ;;  %v6382_v52 = vld [vmem:[%s6292_s28 + $0x2c] sm:$0x1]  ;;  %v7166_v3 = vld [vmem:[%s6292_s28 + $0xb8] sm:$0xf]  ;;  %s8237_s25 = scalar_lea.vmem %s8291_s2, %s4843_s22 }
  0x22   : > { %v303_v4 = vor.u32 %v302_v58, %v298_v57  ;;  %v308_v5 = vrot.slane %v306_v59, 5  ;;  %v5041_v7 = vcombine.low %v2018_v61, %v2028_v2  ;;  %v294_v8 = vrot.slane %v293_v63, 4  ;;  %v219_v58 = vld [vmem:[%s6292_s28 + $0x24] sm:$0xf] }
  0x23   : > { %v2039_v10 = vshll.u32 %v6339_v60, 16  ;;  %v2032_v14 = vrot.slane %v2030_v6, 4  ;;  %v2043_v18 = vshrl.u32 %v6339_v60, 16  ;;  %v2049_v19 = vshll.u32 %v6346_v0, 16 }
  0x24   : > { %v304_v12 = vrot.slane %v303_v4, 4  ;;  %5578 = vmatprep.mubr.msk.bf16.mxu0 %vm696_vm3, %v5041_v7  ;;  %v299_v21 = vsel %vm6318_vm4, %v294_v8, %v298_v57  ;;  %v2035_v22 = vrot.slane %v2033_v9, 5  ;;  %v2708_v24 = vrot.slane %v6339_v60, 5  ;;  %v220_v7 = vld [vmem:[%s6292_s28 + $0x28] sm:$0xf] }
  0x25   : > { %v2041_v23 = vrot.slane %v2039_v10, 5  ;;  %v2045_v27 = vrot.slane %v2043_v18, 4  ;;  %v2051_v28 = vrot.slane %v2049_v19, 5  ;;  %v2711_v29 = vrot.slane %v6346_v0, 5  ;;  %v221_v19 = vld [vmem:[%s6292_s28 + $0x2c] sm:$0x1] }
  0x26   : > { %v309_v26 = vsel %vm6318_vm4, %v304_v12, %v308_v5  ;;  %v2036_v33 = vor.u32 %v2035_v22, %v2032_v14  ;;  %v311_v34 = vshrl.u32 %v216_v11, 16  ;;  %v314_v35 = vshll.u32 %v216_v11, 16 }
  0x27   : > { %v4847_v31 = vcombine.low %v299_v21, %v309_v26  ;;  %v2046_v37 = vor.u32 %v2045_v27, %v2041_v23  ;;  %v320_v38 = vshll.u32 %v217_v20, 16  ;;  %v324_v39 = vshrl.u32 %v217_v20, 16  ;;  %v6400_v21 = vld [vmem:[%s6292_s28 + $0x30] sm:$0xf] }
  0x28   : > { %v330_v40 = vshll.u32 %v218_v25, 16  ;;  %v2037_v42 = vrot.slane %v2036_v33, 4  ;;  %v313_v43 = vrot.slane %v311_v34, 4  ;;  %v316_v44 = vrot.slane %v314_v35, 5  ;;  %v6406_v34 = vld [vmem:[%s6292_s28 + $0x34] sm:$0xf] }
  0x29   : > { %5443 = vmatmul.mubr.msk.bf16.vlgmr.msra.gmra.mrb[0].mxu1 %vm696_vm3, %v4847_v31  ;;  %v2054_v46 = vshrl.u32 %v6370_v30, 16  ;;  %v2047_v47 = vrot.slane %v2046_v37, 4  ;;  %v322_v48 = vrot.slane %v320_v38, 5  ;;  %v326_v49 = vrot.slane %v324_v39, 4 }
  0x2a   : > { %5475 = vmatpush3.bf16.msra.mxu1 %v6307_v17  ;;  %v332_v51 = vrot.slane %v330_v40, 5  ;;  %v2042_v53 = vsel %vm6318_vm4, %v2037_v42, %v2041_v23  ;;  %v317_v54 = vor.u32 %v316_v44, %v313_v43  ;;  %v2057_v57 = vshll.u32 %v6370_v30, 16  ;;  %v6415_v42 = vld [vmem:[%s6292_s28 + $0x38] sm:$0x1]  ;;  %v6419_v44 = vld [vmem:[%s6292_s28 + $0x30] sm:$0xf] }
  0x2b   : > { %v2056_v56 = vrot.slane %v2054_v46, 4  ;;  %6006 = vmatprep.subr.msk.bf16.mxu1 %vm745_vm0, %v4926_v41  ;;  %v2052_v17 = vsel %vm6318_vm4, %v2047_v47, %v2051_v28  ;;  %v327_v59 = vor.u32 %v326_v49, %v322_v48  ;;  %v2063_v61 = vshll.u32 %v6377_v45, 16 }
  0x2c   : > { %v2067_v63 = vshrl.u32 %v6377_v45, 16  ;;  %v5042_v2 = vcombine.low %v2042_v53, %v2052_v17  ;;  %v318_v4 = vrot.slane %v317_v54, 4  ;;  %v2059_v5 = vrot.slane %v2057_v57, 5 }
  0x2d   : > { %v2073_v6 = vshll.u32 %v6382_v52, 16  ;;  %v328_v8 = vrot.slane %v327_v59, 4  ;;  %v2065_v9 = vrot.slane %v2063_v61, 5  ;;  %v335_v11 = vshrl.u32 %v219_v58, 16 }
  0x2e   : > { %v2069_v10 = vrot.slane %v2067_v63, 4  ;;  %5579 = vmatmul.mubr.msk.bf16.vlgmr.msra.gmra.mrb[0].mxu0 %vm696_vm3, %v5042_v2  ;;  %v323_v12 = vsel %vm6318_vm4, %v318_v4, %v322_v48  ;;  %v2060_v14 = vor.u32 %v2059_v5, %v2056_v56  ;;  %v338_v20 = vshll.u32 %v219_v58, 16  ;;  %v6425_v56 = vld [vmem:[%s6292_s28 + $0x34] sm:$0xf]  ;;  %v224_v4 = vld [vmem:[%s6292_s28 + $0x38] sm:$0x1] }
  0x2f   : > { %v2075_v18 = vrot.slane %v2073_v6, 5  ;;  %5611 = vmatpush3.bf16.msra.mxu0 %v6323_v36  ;;  %v333_v22 = vsel %vm6318_vm4, %v328_v8, %v332_v51  ;;  %v337_v25 = vrot.slane %v335_v11, 4  ;;  %v344_v26 = vshll.u32 %v220_v7, 16 }
  0x30   : > { %v2070_v23 = vor.u32 %v2069_v10, %v2065_v9  ;;  %v4848_v27 = vcombine.low %v323_v12, %v333_v22  ;;  %v2061_v28 = vrot.slane %v2060_v14, 4  ;;  %v340_v31 = vrot.slane %v338_v20, 5  ;;  %6011 = vmatprep.subr.msk.bf16.mxu0 %vm745_vm0, %v6333_v50  ;;  %v6437_v10 = vld [vmem:[%s6292_s28 + $0x3c] sm:$0xf] }
  0x31   : > { %v348_v33 = vshrl.u32 %v220_v7, 16  ;;  %v346_v37 = vrot.slane %v344_v26, 5  ;;  %v354_v36 = vshll.u32 %v221_v19, 16  ;;  %v2078_v38 = vshrl.u32 %v6400_v21, 16  ;;  %v6443_v19 = vld [vmem:[%s6292_s28 + $0x40] sm:$0xf] }
  0x32   : > { %v2071_v35 = vrot.slane %v2070_v23, 4  ;;  %5446 = vmatprep.mubr.msk.bf16.mxu1 %vm696_vm3, %v4848_v27  ;;  %v2066_v39 = vsel %vm6318_vm4, %v2061_v28, %v2065_v9  ;;  %v341_v40 = vor.u32 %v340_v31, %v337_v25  ;;  %v2081_v43 = vshll.u32 %v6400_v21, 16  ;;  %v6448_v31 = vld [vmem:[%s6292_s28 + $0x44] sm:$0x1] }
  0x33   : > { %v350_v41 = vrot.slane %v348_v33, 4  ;;  %v356_v46 = vrot.slane %v354_v36, 5  ;;  %v2080_v47 = vrot.slane %v2078_v38, 4  ;;  %v2087_v48 = vshll.u32 %v6406_v34, 16 }
  0x34   : > { %v2076_v50 = vsel %vm6318_vm4, %v2071_v35, %v2075_v18  ;;  %v342_v51 = vrot.slane %v341_v40, 4  ;;  %v2083_v54 = vrot.slane %v2081_v43, 5  ;;  %v2091_v58 = vshrl.u32 %v6406_v34, 16 }
  0x35   : > { %v5043_v49 = vcombine.low %v2066_v39, %v2076_v50  ;;  %v351_v53 = vor.u32 %v350_v41, %v346_v37  ;;  %v2089_v57 = vrot.slane %v2087_v48, 5  ;;  %v2097_v17 = vshll.u32 %v6415_v42, 16  ;;  %v6456_v50 = vld [vmem:[%s6292_s28 + $0x3c] sm:$0xf] }
  0x36   : > { %v359_v59 = vshrl.u32 %v6419_v44, 16  ;;  %v347_v61 = vsel %vm6318_vm4, %v342_v51, %v346_v37  ;;  %v2084_v2 = vor.u32 %v2083_v54, %v2080_v47  ;;  %v362_v5 = vshll.u32 %v6419_v44, 16  ;;  %v6462_v51 = vld [vmem:[%s6292_s28 + $0x40] sm:$0xf] }
  0x37   : > { %5582 = vmatprep.mubr.msk.bf16.mxu0 %vm696_vm3, %v5043_v49  ;;  %v352_v63 = vrot.slane %v351_v53, 4  ;;  %v2093_v6 = vrot.slane %v2091_v58, 4  ;;  %v2099_v7 = vrot.slane %v2097_v17, 5  ;;  %v368_v9 = vshll.u32 %v6425_v56, 16 }
  0x38   : > { %v361_v8 = vrot.slane %v359_v59, 4  ;;  %v2085_v12 = vrot.slane %v2084_v2, 4  ;;  %v364_v14 = vrot.slane %v362_v5, 5  ;;  %v372_v18 = vshrl.u32 %v6425_v56, 16 }
  0x39   : > { %v357_v11 = vsel %vm6318_vm4, %v352_v63, %v356_v46  ;;  %v2094_v22 = vor.u32 %v2093_v6, %v2089_v57  ;;  %v370_v23 = vrot.slane %v368_v9, 5  ;;  %v378_v25 = vshll.u32 %v224_v4, 16 }
  0x3a   : > { %v4849_v20 = vcombine.low %v347_v61, %v357_v11  ;;  %v2090_v26 = vsel %vm6318_vm4, %v2085_v12, %v2089_v57  ;;  %v365_v27 = vor.u32 %v364_v14, %v361_v8  ;;  %v374_v28 = vrot.slane %v372_v18, 4  ;;  %v227_v61 = vld [vmem:[%s6292_s28 + $0x44] sm:$0x1]  ;;  %v6475_v8 = vld [vmem:[%s6292_s28 + $0x48] sm:$0xf] }
  0x3b   : > { %v2102_v33 = vshrl.u32 %v6437_v10, 16  ;;  %v2095_v35 = vrot.slane %v2094_v22, 4  ;;  %v380_v37 = vrot.slane %v378_v25, 5  ;;  %v2105_v36 = vshll.u32 %v6437_v10, 16  ;;  %v6478_v18 = vld [vmem:[%s6292_s28 + $0x4c] sm:$0xf] }
  0x3c   : > { %5447 = vmatmul.mubr.msk.bf16.gmra.mrb[4].mxu1 %vm696_vm3, %v4849_v20  ;;  %v2111_v38 = vshll.u32 %v6443_v19, 16  ;;  %v366_v39 = vrot.slane %v365_v27, 4  ;;  %v375_v40 = vor.u32 %v374_v28, %v370_v23  ;;  %v2115_v43 = vshrl.u32 %v6443_v19, 16  ;;  %v6484_v28 = vld [vmem:[%s6292_s28 + $0x50] sm:$0x1] }
  0x3d   : > { %v2104_v41 = vrot.slane %v2102_v33, 4  ;;  %v2100_v46 = vsel %vm6318_vm4, %v2095_v35, %v2099_v7  ;;  %v2107_v47 = vrot.slane %v2105_v36, 5  ;;  %v2121_v49 = vshll.u32 %v6448_v31, 16 }
  0x3e   : > { %v2113_v48 = vrot.slane %v2111_v38, 5  ;;  %v5044_v53 = vcombine.low %v2090_v26, %v2100_v46  ;;  %v371_v54 = vsel %vm6318_vm4, %v366_v39, %v370_v23  ;;  %v376_v57 = vrot.slane %v375_v40, 4  ;;  %v6492_v40 = vld [vmem:[%s6292_s28 + $0x48] sm:$0xf] }
  0x3f   : > { %v2117_v58 = vrot.slane %v2115_v43, 4  ;;  %v2108_v17 = vor.u32 %v2107_v47, %v2104_v41  ;;  %v2123_v59 = vrot.slane %v2121_v49, 5  ;;  %v383_v63 = vshrl.u32 %v6456_v50, 16 }
  0x40   : > { %v386_v2 = vshll.u32 %v6456_v50, 16  ;;  %5583 = vmatmul.mubr.msk.bf16.gmra.mrb[4].mxu0 %vm696_vm3, %v5044_v53  ;;  %v381_v4 = vsel %vm6318_vm4, %v376_v57, %v380_v37  ;;  %v392_v6 = vshll.u32 %v6462_v51, 16  ;;  %v396_v7 = vshrl.u32 %v6462_v51, 16 }
  0x41   : > { %v2118_v5 = vor.u32 %v2117_v58, %v2113_v48  ;;  %v4850_v9 = vcombine.low %v371_v54, %v381_v4  ;;  %v2109_v11 = vrot.slane %v2108_v17, 4  ;;  %v385_v12 = vrot.slane %v383_v63, 4 }
  0x42   : > { %v388_v14 = vrot.slane %v386_v2, 5  ;;  %v394_v22 = vrot.slane %v392_v6, 5  ;;  %v398_v23 = vrot.slane %v396_v7, 4  ;;  %v402_v25 = vshll.u32 %v227_v61, 16  ;;  %v6509_v7 = vld [vmem:[%s6292_s28 + $0x54] sm:$0xf] }
  0x43   : > { %v2119_v20 = vrot.slane %v2118_v5, 4  ;;  %5450 = vmatprep.mubr.msk.bf16.mxu1 %vm696_vm3, %v4850_v9  ;;  %v2114_v26 = vsel %vm6318_vm4, %v2109_v11, %v2113_v48  ;;  %v2126_v33 = vshrl.u32 %v6475_v8, 16  ;;  %v2129_v35 = vshll.u32 %v6475_v8, 16  ;;  %v6495_v48 = vld [vmem:[%s6292_s28 + $0x4c] sm:$0xf] }
  0x44   : > { %v389_v27 = vor.u32 %v388_v14, %v385_v12  ;;  %v399_v36 = vor.u32 %v398_v23, %v394_v22  ;;  %v404_v38 = vrot.slane %v402_v25, 5  ;;  %v2135_v39 = vshll.u32 %v6478_v18, 16 }
  0x45   : > { %v2124_v37 = vsel %vm6318_vm4, %v2119_v20, %v2123_v59  ;;  %v2128_v46 = vrot.slane %v2126_v33, 4  ;;  %v2131_v47 = vrot.slane %v2129_v35, 5  ;;  %v2139_v54 = vshrl.u32 %v6478_v18, 16  ;;  %v230_v59 = vld [vmem:[%s6292_s28 + $0x50] sm:$0x1] }
  0x46   : > { %v5045_v41 = vcombine.low %v2114_v26, %v2124_v37  ;;  %v390_v43 = vrot.slane %v389_v27, 4  ;;  %v400_v49 = vrot.slane %v399_v36, 4  ;;  %v2137_v53 = vrot.slane %v2135_v39, 5  ;;  %v6512_v20 = vld [vmem:[%s6292_s28 + $0x58] sm:$0xf] }
  0x47   : > { %v2145_v57 = vshll.u32 %v6484_v28, 16  ;;  %v2132_v17 = vor.u32 %v2131_v47, %v2128_v46  ;;  %v407_v61 = vshrl.u32 %v6492_v40, 16  ;;  %v410_v63 = vshll.u32 %v6492_v40, 16  ;;  %v6519_v35 = vld [vmem:[%s6292_s28 + $0x5c] sm:$0x1] }
  0x48   : > { %5586 = vmatprep.mubr.msk.bf16.mxu0 %vm696_vm3, %v5045_v41  ;;  %v395_v58 = vsel %vm6318_vm4, %v390_v43, %v394_v22  ;;  %v405_v2 = vsel %vm6318_vm4, %v400_v49, %v404_v38  ;;  %v2141_v4 = vrot.slane %v2139_v54, 4  ;;  %v416_v6 = vshll.u32 %v6495_v48, 16 }
  0x49   : > { %v2147_v5 = vrot.slane %v2145_v57, 5  ;;  %v4851_v9 = vcombine.low %v395_v58, %v405_v2  ;;  %v2133_v11 = vrot.slane %v2132_v17, 4  ;;  %v409_v12 = vrot.slane %v407_v61, 4  ;;  %v6532_v61 = vld [vmem:[%s6292_s28 + $0x58] sm:$0xf] }
  0x4a   : > { %v412_v14 = vrot.slane %v410_v63, 5  ;;  %v2142_v22 = vor.u32 %v2141_v4, %v2137_v53  ;;  %v418_v23 = vrot.slane %v416_v6, 5  ;;  %v420_v25 = vshrl.u32 %v6495_v48, 16 }
  0x4b   : > { %v426_v26 = vshll.u32 %v230_v59, 16  ;;  %5451 = vmatmul.mubr.msk.bf16.gmra.mrb[8].mxu1 %vm696_vm3, %v4851_v9  ;;  %v2138_v27 = vsel %vm6318_vm4, %v2133_v11, %v2137_v53  ;;  %v2150_v37 = vshrl.u32 %v6509_v7, 16  ;;  %v2153_v36 = vshll.u32 %v6509_v7, 16  ;;  %v6526_v53 = vld [vmem:[%s6292_s28 + $0x54] sm:$0xf] }
  0x4c   : > { %v413_v33 = vor.u32 %v412_v14, %v409_v12  ;;  %v2143_v38 = vrot.slane %v2142_v22, 4  ;;  %v422_v39 = vrot.slane %v420_v25, 4  ;;  %v2159_v43 = vshll.u32 %v6512_v20, 16  ;;  %v233_v9 = vld [vmem:[%s6292_s28 + $0x5c] sm:$0x1] }
  0x4d   : > { %v428_v41 = vrot.slane %v426_v26, 5  ;;  %v2152_v47 = vrot.slane %v2150_v37, 4  ;;  %v2155_v49 = vrot.slane %v2153_v36, 5  ;;  %v2163_v54 = vshrl.u32 %v6512_v20, 16 }
  0x4e   : > { %v414_v46 = vrot.slane %v413_v33, 4  ;;  %v2148_v57 = vsel %vm6318_vm4, %v2143_v38, %v2147_v5  ;;  %v423_v58 = vor.u32 %v422_v39, %v418_v23  ;;  %v2161_v17 = vrot.slane %v2159_v43, 5  ;;  %v6548_v39 = vld [vmem:[%s6292_s28 + $0x64] sm:$0xf] }
  0x4f   : > { %v2169_v59 = vshll.u32 %v6519_v35, 16  ;;  %v5046_v63 = vcombine.low %v2138_v27, %v2148_v57  ;;  %v2156_v4 = vor.u32 %v2155_v49, %v2152_v47  ;;  %v2165_v6 = vrot.slane %v2163_v54, 4 }
  0x50   : > { %v419_v2 = vsel %vm6318_vm4, %v414_v46, %v418_v23  ;;  %v424_v11 = vrot.slane %v423_v58, 4  ;;  %v431_v14 = vshrl.u32 %v6526_v53, 16  ;;  %v434_v5 = vshll.u32 %v6526_v53, 16  ;;  %v6543_v23 = vld [vmem:[%s6292_s28 + $0x60] sm:$0xf] }
  0x51   : > { %v2171_v12 = vrot.slane %v2169_v59, 5  ;;  %5587 = vmatmul.mubr.msk.bf16.gmra.mrb[8].mxu0 %vm696_vm3, %v5046_v63  ;;  %v2157_v22 = vrot.slane %v2156_v4, 4  ;;  %v2166_v25 = vor.u32 %v2165_v6, %v2161_v17  ;;  %v440_v26 = vshll.u32 %v6532_v61, 16  ;;  %v6553_v59 = vld [vmem:[%s6292_s28 + $0x68] sm:$0x1] }
  0x52   : > { %v444_v27 = vshrl.u32 %v6532_v61, 16  ;;  %v429_v33 = vsel %vm6318_vm4, %v424_v11, %v428_v41  ;;  %v433_v37 = vrot.slane %v431_v14, 4  ;;  %v436_v36 = vrot.slane %v434_v5, 5  ;;  %v6563_v6 = vld [vmem:[%s6292_s28 + $0x60] sm:$0xf] }
  0x53   : > { %v450_v38 = vshll.u32 %v233_v9, 16  ;;  %v4852_v43 = vcombine.low %v419_v2, %v429_v33  ;;  %v2162_v46 = vsel %vm6318_vm4, %v2157_v22, %v2161_v17  ;;  %v2167_v47 = vrot.slane %v2166_v25, 4  ;;  %v6566_v22 = vld [vmem:[%s6292_s28 + $0x64] sm:$0xf] }
  0x54   : > { %v442_v49 = vrot.slane %v440_v26, 5  ;;  %v437_v54 = vor.u32 %v436_v36, %v433_v37  ;;  %v446_v57 = vrot.slane %v444_v27, 4  ;;  %v2174_v41 = vshrl.u32 %v6543_v23, 16 }
  0x55   : > { %v452_v58 = vrot.slane %v450_v38, 5  ;;  %5454 = vmatprep.mubr.msk.bf16.mxu1 %vm696_vm3, %v4852_v43  ;;  %v2172_v63 = vsel %vm6318_vm4, %v2167_v47, %v2171_v12  ;;  %v2177_v2 = vshll.u32 %v6543_v23, 16  ;;  %v2183_v4 = vshll.u32 %v6548_v39, 16 }
  0x56   : > { %v2187_v17 = vshrl.u32 %v6548_v39, 16  ;;  %v5047_v9 = vcombine.low %v2162_v46, %v2172_v63  ;;  %v438_v11 = vrot.slane %v437_v54, 4  ;;  %v447_v14 = vor.u32 %v446_v57, %v442_v49  ;;  %v236_v54 = vld [vmem:[%s6292_s28 + $0x68] sm:$0x1] }
  0x57   : > { %v2176_v5 = vrot.slane %v2174_v41, 4  ;;  %v2179_v25 = vrot.slane %v2177_v2, 5  ;;  %v2185_v26 = vrot.slane %v2183_v4, 5  ;;  %v2193_v12 = vshll.u32 %v6553_v59, 16 }
  0x58   : > { %v2189_v27 = vrot.slane %v2187_v17, 4  ;;  %5590 = vmatprep.mubr.msk.bf16.mxu0 %vm696_vm3, %v5047_v9  ;;  %v443_v33 = vsel %vm6318_vm4, %v438_v11, %v442_v49  ;;  %v448_v37 = vrot.slane %v447_v14, 4  ;;  %v455_v36 = vshrl.u32 %v6563_v6, 16  ;;  %v6580_v49 = vld [vmem:[%s6292_s28 + $0x6c] sm:$0xf] }
  0x59   : > { %v458_v38 = vshll.u32 %v6563_v6, 16  ;;  %v2180_v43 = vor.u32 %v2179_v25, %v2176_v5  ;;  %v2195_v47 = vrot.slane %v2193_v12, 5  ;;  %v464_v57 = vshll.u32 %v6566_v22, 16 }
  0x5a   : > { %v2190_v46 = vor.u32 %v2189_v27, %v2185_v26  ;;  %v453_v41 = vsel %vm6318_vm4, %v448_v37, %v452_v58  ;;  %v457_v63 = vrot.slane %v455_v36, 4  ;;  %v468_v4 = vshrl.u32 %v6566_v22, 16 }
  0x5b   : > { %v460_v2 = vrot.slane %v458_v38, 5  ;;  %v4853_v17 = vcombine.low %v443_v33, %v453_v41  ;;  %v2181_v9 = vrot.slane %v2180_v43, 4  ;;  %v466_v14 = vrot.slane %v464_v57, 5  ;;  %v6596_v38 = vld [vmem:[%s6292_s28 + $0x70] sm:$0xf] }
  0x5c   : > { %v2191_v11 = vrot.slane %v2190_v46, 4  ;;  %v470_v25 = vrot.slane %v468_v4, 4  ;;  %v474_v27 = vshll.u32 %v236_v54, 16  ;;  %v5073_v58 = vrot.slane %v6298_v13, 9  ;;  %v239_v13 = vld [vmem:[%s6292_s28 + $0x74] sm:$0x1] }
  0x5d   : > { %v461_v5 = vor.u32 %v460_v2, %v457_v63  ;;  %5455 = vmatmul.mubr.msk.bf16.gmra.mrb[12].mxu1 %vm696_vm3, %v4853_v17  ;;  %v2186_v33 = vsel %vm6318_vm4, %v2181_v9, %v2185_v26  ;;  %v2701_v36 = vrot.slane %v6301_v15, 5  ;;  %v479_v43 = vshrl.u32 %v6580_v49, 16 }
  0x5e   : > { %v2196_v37 = vsel %vm6318_vm4, %v2191_v11, %v2195_v47  ;;  %v471_v57 = vor.u32 %v470_v25, %v466_v14  ;;  %v476_v41 = vrot.slane %v474_v27, 5  ;;  %v482_v47 = vshll.u32 %v6580_v49, 16 }
  0x5f   : > { %v5048_v46 = vcombine.low %v2186_v33, %v2196_v37  ;;  %v462_v54 = vrot.slane %v461_v5, 4  ;;  %v2702_v63 = vsel %vm6584_vm7, %v5073_v58, %v2701_v36  ;;  %v2703_v2 = vrot.slane %v2701_v36, 4  ;;  %v6614_v58 = vld [vmem:[%s6292_s28 + $0x78] sm:$0xf] }
  0x60   : > { %v481_v26 = vrot.slane %v479_v43, 4  ;;  %v472_v4 = vrot.slane %v471_v57, 4  ;;  %v488_v17 = vshll.u32 %v6596_v38, 16  ;;  %v492_v9 = vshrl.u32 %v6596_v38, 16  ;;  %v6619_v43 = vld [vmem:[%s6292_s28 + $0x7c] sm:$0xf] }
  0x61   : > { %5591 = vmatmul.mubr.msk.bf16.gmra.mrb[12].mxu0 %vm696_vm3, %v5048_v46  ;;  %v467_v15 = vsel %vm6318_vm4, %v462_v54, %v466_v14  ;;  %v2705_v11 = vsel %vm6584_vm7, %v2703_v2, %v2704_v62  ;;  %v484_v5 = vrot.slane %v482_v47, 5  ;;  %v498_v25 = vshll.u32 %v239_v13, 16  ;;  %v242_v46 = vld [vmem:[%s6292_s28 + $0x80] sm:$0x1] }
  0x62   : > { %v5074_v27 = vrot.slane %v6336_v55, 9  ;;  %v477_v33 = vsel %vm6318_vm4, %v472_v4, %v476_v41  ;;  %v5090_v14 = vcombine.low %v2702_v63, %v2705_v11  ;;  %v490_v37 = vrot.slane %v488_v17, 5 }
  0x63   : > { %v494_v36 = vrot.slane %v492_v9, 4  ;;  %v4854_v54 = vcombine.low %v467_v15, %v477_v33  ;;  %v485_v16 = vor.u32 %v484_v5, %v481_v26  ;;  %v500_v57 = vrot.slane %v498_v25, 5  ;;  %v6644_v33 = vld [vmem:[%s6292_s28 + $0x88] sm:$0xf] }
  0x64   : > { %v2709_v62 = vsel %vm6584_vm7, %v5074_v27, %v2708_v24  ;;  %5612 = vmatprep.mubr.msk.bf16.mxu0 %vm696_vm3, %v5090_v14  ;;  %v2710_v41 = vrot.slane %v2708_v24, 4  ;;  %v503_v13 = vshrl.u32 %v6614_v58, 16  ;;  %v506_v63 = vshll.u32 %v6614_v58, 16  ;;  %v6641_v27 = vld [vmem:[%s6292_s28 + $0x84] sm:$0xf] }
  0x65   : > { %v495_v55 = vor.u32 %v494_v36, %v490_v37  ;;  %5458 = vmatprep.mubr.msk.bf16.mxu1 %vm696_vm3, %v4854_v54  ;;  %v486_v2 = vrot.slane %v485_v16, 4  ;;  %v512_v26 = vshll.u32 %v6619_v43, 16  ;;  %v516_v47 = vshrl.u32 %v6619_v43, 16 }
  0x66   : > { %v522_v15 = vshll.u32 %v242_v46, 16  ;;  %v2712_v60 = vsel %vm6584_vm7, %v2710_v41, %v2711_v29  ;;  %v505_v24 = vrot.slane %v503_v13, 4  ;;  %v508_v17 = vrot.slane %v506_v63, 5  ;;  %v6652_v46 = vld [vmem:[%s8290_s1 + $0xe] sm:$0x3] }
  0x67   : > { %v496_v4 = vrot.slane %v495_v55, 4  ;;  %v491_v9 = vsel %vm6318_vm4, %v486_v2, %v490_v37  ;;  %v5091_v11 = vcombine.low %v2709_v62, %v2712_v60  ;;  %v514_v5 = vrot.slane %v512_v26, 5  ;;  %v245_v55 = vld [vmem:[%s6292_s28 + $0x8c] sm:$0x1] }
  0x68   : > { %v518_v25 = vrot.slane %v516_v47, 4  ;;  %v509_v0 = vor.u32 %v508_v17, %v505_v24  ;;  %v524_v36 = vrot.slane %v522_v15, 5  ;;  %v5075_v29 = vrot.slane %v6370_v30, 9 }
  0x69   : > { %v501_v14 = vsel %vm6318_vm4, %v496_v4, %v500_v57  ;;  %5613 = vmatmul.mubr.msk.bf16.vlgmr.msra.gmra.mrb[0].mxu0 %vm696_vm3, %v5091_v11  ;;  %v2715_v16 = vrot.slane %v6377_v45, 5  ;;  %v2718_v62 = vrot.slane %v6382_v52, 5  ;;  %v527_v41 = vshrl.u32 %v6641_v27, 16  ;;  %v6678_v11 = vld [vmem:[%s6292_s28 + $0x94] sm:$0xf] }
  0x6a   : > { %v4855_v37 = vcombine.low %v491_v9, %v501_v14  ;;  %v519_v54 = vor.u32 %v518_v25, %v514_v5  ;;  %5645 = vmatpush3.bf16.msra.mxu0 %v6350_v1  ;;  %v510_v57 = vrot.slane %v509_v0, 4  ;;  %v530_v30 = vshll.u32 %v6641_v27, 16  ;;  %v6675_v9 = vld [vmem:[%s6292_s28 + $0x90] sm:$0xf] }
  0x6b   : > { %v536_v13 = vshll.u32 %v6644_v33, 16  ;;  %v2716_v45 = vsel %vm6584_vm7, %v5075_v29, %v2715_v16  ;;  %v2717_v2 = vrot.slane %v2715_v16, 4  ;;  %v540_v52 = vshrl.u32 %v6644_v33, 16  ;;  %6012 = vmatprep.subr.msk.bf16.mxu0 %vm745_vm0, %v6652_v46 }
  0x6c   : > { %5459 = vmatmul.mubr.msk.bf16.gmra.mrb[16].mxu1 %vm696_vm3, %v4855_v37  ;;  %v520_v63 = vrot.slane %v519_v54, 4  ;;  %v515_v1 = vsel %vm6318_vm4, %v510_v57, %v514_v5  ;;  %v529_v26 = vrot.slane %v527_v41, 4  ;;  %v532_v47 = vrot.slane %v530_v30, 5 }
  0x6d   : > { %v538_v15 = vrot.slane %v536_v13, 5  ;;  %v2719_v60 = vsel %vm6584_vm7, %v2717_v2, %v2718_v62  ;;  %v542_v24 = vrot.slane %v540_v52, 4  ;;  %v546_v17 = vshll.u32 %v245_v55, 16  ;;  %v6686_v62 = vld [vmem:[%s6292_s28 + $0x98] sm:$0x1] }
  0x6e   : > { %v525_v4 = vsel %vm6318_vm4, %v520_v63, %v524_v36  ;;  %v5092_v14 = vcombine.low %v2716_v45, %v2719_v60  ;;  %v533_v0 = vor.u32 %v532_v47, %v529_v26  ;;  %v5076_v5 = vrot.slane %v6400_v21, 9  ;;  %v6705_v60 = vld [vmem:[%s6292_s28 + $0xa0] sm:$0xf] }
  0x6f   : > { %v4856_v25 = vcombine.low %v515_v1, %v525_v4  ;;  %v543_v29 = vor.u32 %v542_v24, %v538_v15  ;;  %v548_v37 = vrot.slane %v546_v17, 5  ;;  %v2722_v54 = vrot.slane %v6406_v34, 5  ;;  %v6702_v4 = vld [vmem:[%s6292_s28 + $0x9c] sm:$0xf] }
  0x70   : > { %v2725_v36 = vrot.slane %v6415_v42, 5  ;;  %5616 = vmatprep.mubr.msk.bf16.mxu0 %vm696_vm3, %v5092_v14  ;;  %v534_v16 = vrot.slane %v533_v0, 4  ;;  %v551_v57 = vshrl.u32 %v6675_v9, 16  ;;  %v554_v55 = vshll.u32 %v6675_v9, 16 }
  0x71   : > { %5462 = vmatprep.mubr.msk.bf16.mxu1 %vm696_vm3, %v4856_v25  ;;  %v560_v21 = vshll.u32 %v6678_v11, 16  ;;  %v544_v41 = vrot.slane %v543_v29, 4  ;;  %v2723_v34 = vsel %vm6584_vm7, %v5076_v5, %v2722_v54  ;;  %v2724_v42 = vrot.slane %v2722_v54, 4  ;;  %v251_v54 = vld [vmem:[%s6292_s28 + $0xa4] sm:$0x1] }
  0x72   : > { %v564_v30 = vshrl.u32 %v6678_v11, 16  ;;  %v539_v13 = vsel %vm6318_vm4, %v534_v16, %v538_v15  ;;  %v553_v63 = vrot.slane %v551_v57, 4  ;;  %v556_v45 = vrot.slane %v554_v55, 5 }
  0x73   : > { %v562_v2 = vrot.slane %v560_v21, 5  ;;  %v549_v52 = vsel %vm6318_vm4, %v544_v41, %v548_v37  ;;  %v2726_v1 = vsel %vm6584_vm7, %v2724_v42, %v2725_v36  ;;  %v570_v47 = vshll.u32 %v6686_v62, 16 }
  0x74   : > { %v566_v26 = vrot.slane %v564_v30, 4  ;;  %v4857_v24 = vcombine.low %v539_v13, %v549_v52  ;;  %v5093_v17 = vcombine.low %v2723_v34, %v2726_v1  ;;  %v557_v15 = vor.u32 %v556_v45, %v553_v63  ;;  %v6726_v52 = vld [vmem:[%s6292_s28 + $0xa8] sm:$0xf]  ;;  %v6729_v1 = vld [vmem:[%s6292_s28 + $0xac] sm:$0xf] }
  0x75   : > { %v5077_v25 = vrot.slane %v6437_v10, 9  ;;  %v572_v0 = vrot.slane %v570_v47, 5  ;;  %v2729_v5 = vrot.slane %v6443_v19, 5  ;;  %v2732_v29 = vrot.slane %v6448_v31, 5  ;;  %8320 = vst [vmem:[#allocation3_spill] sm:$0xff] %v6726_v52 }
  0x76   : > { %v567_v14 = vor.u32 %v566_v26, %v562_v2  ;;  %5463 = vmatmul.mubr.msk.bf16.gmra.mrb[20].mxu1 %vm696_vm3, %v4857_v24  ;;  %5617 = vmatmul.mubr.msk.bf16.gmra.mrb[4].mxu0 %vm696_vm3, %v5093_v17  ;;  %v558_v37 = vrot.slane %v557_v15, 4  ;;  %v575_v36 = vshrl.u32 %v6702_v4, 16  ;;  %v578_v16 = vshll.u32 %v6702_v4, 16 }
  0x77   : > { %v584_v10 = vshll.u32 %v6705_v60, 16  ;;  %v2730_v19 = vsel %vm6584_vm7, %v5077_v25, %v2729_v5  ;;  %v2731_v55 = vrot.slane %v2729_v5, 4  ;;  %v588_v31 = vshrl.u32 %v6705_v60, 16  ;;  %v6737_v5 = vld [vmem:[%s6292_s28 + $0xb0] sm:$0x1] }
  0x78   : > { %v568_v57 = vrot.slane %v567_v14, 4  ;;  %v563_v21 = vsel %vm6318_vm4, %v558_v37, %v562_v2  ;;  %v577_v41 = vrot.slane %v575_v36, 4  ;;  %v580_v34 = vrot.slane %v578_v16, 5  ;;  %8321 = vst [vmem:[#allocation4_spill] sm:$0xff] %v6737_v5 }
  0x79   : > { %v586_v42 = vrot.slane %v584_v10, 5  ;;  %v2733_v13 = vsel %vm6584_vm7, %v2731_v55, %v2732_v29  ;;  %v590_v63 = vrot.slane %v588_v31, 4  ;;  %v594_v45 = vshll.u32 %v251_v54, 16 }
  0x7a   : > { %v573_v30 = vsel %vm6318_vm4, %v568_v57, %v572_v0  ;;  %v5094_v47 = vcombine.low %v2730_v19, %v2733_v13  ;;  %v581_v24 = vor.u32 %v580_v34, %v577_v41  ;;  %v5078_v2 = vrot.slane %v6475_v8, 9  ;;  %v6753_v34 = vld [vmem:[%s6292_s28 + $0xb4] sm:$0xf] }
  0x7b   : > { %v4858_v26 = vcombine.low %v563_v21, %v573_v30  ;;  %v591_v17 = vor.u32 %v590_v63, %v586_v42  ;;  %v596_v15 = vrot.slane %v594_v45, 5  ;;  %v2736_v25 = vrot.slane %v6478_v18, 5  ;;  %8322 = vst [vmem:[#allocation5_spill] sm:$0xff] %v6753_v34  ;;  %v6756_v30 = vld [vmem:[%s6292_s28 + $0xb8] sm:$0xf] }
  0x7c   : > { %v2739_v14 = vrot.slane %v6484_v28, 5  ;;  %5620 = vmatprep.mubr.msk.bf16.mxu0 %vm696_vm3, %v5094_v47  ;;  %v582_v0 = vrot.slane %v581_v24, 4  ;;  %v599_v29 = vshrl.u32 %v6726_v52, 16  ;;  %v602_v37 = vshll.u32 %v6726_v52, 16  ;;  %8323 = vst [vmem:[#allocation6_spill] sm:$0xff] %v6756_v30 }
  0x7d   : > { %5466 = vmatprep.mubr.msk.bf16.mxu1 %vm696_vm3, %v4858_v26  ;;  %v608_v8 = vshll.u32 %v6729_v1, 16  ;;  %v592_v54 = vrot.slane %v591_v17, 4  ;;  %v2737_v18 = vsel %vm6584_vm7, %v5078_v2, %v2736_v25  ;;  %v2738_v28 = vrot.slane %v2736_v25, 4 }
  0x7e   : > { %v612_v36 = vshrl.u32 %v6729_v1, 16  ;;  %v587_v16 = vsel %vm6318_vm4, %v582_v0, %v586_v42  ;;  %v601_v10 = vrot.slane %v599_v29, 4  ;;  %v604_v57 = vrot.slane %v602_v37, 5 }
  0x7f   : > { %v610_v19 = vrot.slane %v608_v8, 5  ;;  %v597_v55 = vsel %vm6318_vm4, %v592_v54, %v596_v15  ;;  %v2740_v31 = vsel %vm6584_vm7, %v2738_v28, %v2739_v14  ;;  %v618_v41 = vshll.u32 %v6737_v5, 16  ;;  %v6764_v15 = vld [vmem:[%s6292_s28 + $0xbc] sm:$0x1]  ;;  %v4983_v28 = vld [vmem:[%s6292_s28 + $0x6c] sm:$0xf] }
  0x80   : > { %v614_v21 = vrot.slane %v612_v36, 4  ;;  %v4859_v13 = vcombine.low %v587_v16, %v597_v55  ;;  %v5095_v63 = vcombine.low %v2737_v18, %v2740_v31  ;;  %v605_v42 = vor.u32 %v604_v57, %v601_v10  ;;  %8324 = vst [vmem:[#allocation7_spill] sm:$0xff] %v6764_v15  ;;  %v4984_v55 = vld [vmem:[%s6292_s28 + $0x70] sm:$0xf]  ;;  %v4985_v31 = vld [vmem:[%s6292_s28 + $0x74] sm:$0x1] }
  0x81   : > { %v5079_v45 = vrot.slane %v6509_v7, 9  ;;  %v620_v47 = vrot.slane %v618_v41, 5  ;;  %v2743_v24 = vrot.slane %v6512_v20, 5  ;;  %v2746_v2 = vrot.slane %v6519_v35, 5  ;;  %v6112_v5 = vld [vmem:[%s6292_s28 + $0x64] sm:$0xf] }
  0x82   : > { %v615_v26 = vor.u32 %v614_v21, %v610_v19  ;;  %5467 = vmatmul.mubr.msk.bf16.gmra.mrb[24].mxu1 %vm696_vm3, %v4859_v13  ;;  %5621 = vmatmul.mubr.msk.bf16.gmra.mrb[8].mxu0 %vm696_vm3, %v5095_v63  ;;  %v606_v17 = vrot.slane %v605_v42, 4  ;;  %v623_v25 = vshrl.u32 %v6753_v34, 16  ;;  %v626_v14 = vshll.u32 %v6753_v34, 16 }
  0x83   : > { %v632_v7 = vshll.u32 %v6756_v30, 16  ;;  %v2744_v20 = vsel %vm6584_vm7, %v5079_v45, %v2743_v24  ;;  %v2745_v35 = vrot.slane %v2743_v24, 4  ;;  %v636_v29 = vshrl.u32 %v6756_v30, 16 }
  0x84   : > { %v616_v0 = vrot.slane %v615_v26, 4  ;;  %v611_v37 = vsel %vm6318_vm4, %v606_v17, %v610_v19  ;;  %v625_v8 = vrot.slane %v623_v25, 4  ;;  %v628_v54 = vrot.slane %v626_v14, 5 }
  0x85   : > { %v634_v18 = vrot.slane %v632_v7, 5  ;;  %v2747_v16 = vsel %vm6584_vm7, %v2745_v35, %v2746_v2  ;;  %v638_v10 = vrot.slane %v636_v29, 4  ;;  %v642_v57 = vshll.u32 %v6764_v15, 16  ;;  %v6798_v35 = vld [vmem:[%s6292_s28] sm:$0xf] }
  0x86   : > { %v621_v36 = vsel %vm6318_vm4, %v616_v0, %v620_v47  ;;  %v5096_v41 = vcombine.low %v2744_v20, %v2747_v16  ;;  %v629_v13 = vor.u32 %v628_v54, %v625_v8  ;;  %v5080_v19 = vrot.slane %v6543_v23, 9  ;;  %v6801_v29 = vld [vmem:[%s6292_s28 + $0x4] sm:$0xf]  ;;  %v4986_v8 = vld [vmem:[%s6292_s28 + $0x78] sm:$0xf] }
  0x87   : > { %v4860_v21 = vcombine.low %v611_v37, %v621_v36  ;;  %v639_v63 = vor.u32 %v638_v10, %v634_v18  ;;  %v644_v42 = vrot.slane %v642_v57, 5  ;;  %v2750_v45 = vrot.slane %v6548_v39, 5  ;;  %v4987_v54 = vld [vmem:[%s6292_s28 + $0x7c] sm:$0xf]  ;;  %v4988_v16 = vld [vmem:[%s6292_s28 + $0x80] sm:$0x1] }
  0x88   : > { %v2753_v26 = vrot.slane %v6553_v59, 5  ;;  %5624 = vmatprep.mubr.msk.bf16.mxu0 %vm696_vm3, %v5096_v41  ;;  %v630_v47 = vrot.slane %v629_v13, 4  ;;  %v5081_v24 = vrot.slane %v4983_v28, 9  ;;  %v2757_v2 = vrot.slane %v4984_v55, 5  ;;  %v4989_v10 = vld [vmem:[%s6292_s28 + $0x84] sm:$0xf] }
  0x89   : > { %5470 = vmatprep.mubr.msk.bf16.mxu1 %vm696_vm3, %v4860_v21  ;;  %v2760_v17 = vrot.slane %v4985_v31, 5  ;;  %v640_v25 = vrot.slane %v639_v63, 4  ;;  %v2751_v23 = vsel %vm6584_vm7, %v5080_v19, %v2750_v45  ;;  %v2752_v39 = vrot.slane %v2750_v45, 4  ;;  %v4990_v55 = vld [vmem:[%s6292_s28 + $0x88] sm:$0xf] }
  0x8a   : > { %v635_v59 = vsel %vm6318_vm4, %v630_v47, %v634_v18  ;;  %v2758_v14 = vsel %vm6584_vm7, %v5081_v24, %v2757_v2  ;;  %v2759_v7 = vrot.slane %v2757_v2, 4  ;;  %v4878_v37 = vcombine.low %v6798_v35, %v6801_v29  ;;  %v4991_v41 = vld [vmem:[%s6292_s28 + $0x8c] sm:$0x1]  ;;  %v4993_v13 = vld [vmem:[%s6292_s28 + $0x94] sm:$0xf] }
  0x8b   : > { %v645_v0 = vsel %vm6318_vm4, %v640_v25, %v644_v42  ;;  %v2754_v20 = vsel %vm6584_vm7, %v2752_v39, %v2753_v26  ;;  %v5082_v31 = vrot.slane %v4986_v8, 9  ;;  %v2764_v21 = vrot.slane %v4987_v54, 5  ;;  %v4992_v42 = vld [vmem:[%s6292_s28 + $0x90] sm:$0xf]  ;;  %v4994_v45 = vld [vmem:[%s6292_s28 + $0x98] sm:$0x1] }
  0x8c   : > { %v4861_v18 = vcombine.low %v635_v59, %v645_v0  ;;  %v5097_v28 = vcombine.low %v2751_v23, %v2754_v20  ;;  %v2761_v36 = vsel %vm6584_vm7, %v2759_v7, %v2760_v17  ;;  %v2767_v19 = vrot.slane %v4988_v16, 5  ;;  %v4995_v2 = vld [vmem:[%s6292_s28 + $0x9c] sm:$0xf]  ;;  %v4996_v17 = vld [vmem:[%s6292_s28 + $0xa0] sm:$0xf] }
  0x8d   : > { %v5098_v57 = vcombine.low %v2758_v14, %v2761_v36  ;;  %v5083_v63 = vrot.slane %v4989_v10, 9  ;;  %v2765_v26 = vsel %vm6584_vm7, %v5082_v31, %v2764_v21  ;;  %v2766_v47 = vrot.slane %v2764_v21, 4  ;;  %v6825_v25 = vld [vmem:[%s6292_s28 + $0xc] sm:$0xf]  ;;  %v6828_v23 = vld [vmem:[%s6292_s28 + $0x10] sm:$0xf] }
  0x8e   : > { %5471 = vmatmul.mubr.msk.bf16.gmra.mrb[28].mxu1 %vm696_vm3, %v4861_v18  ;;  %5625 = vmatmul.mubr.msk.bf16.gmra.mrb[12].mxu0 %vm696_vm3, %v5097_v28  ;;  %v2771_v24 = vrot.slane %v4990_v55, 5  ;;  %v4879_v39 = vcombine.low %v6825_v25, %v6828_v23  ;;  %v6091_v59 = vld [vmem:[%s8290_s1 + $0x4] sm:$0x3]  ;;  %v2774_v7 = vrot.slane %v4991_v41, 5  ;;  %v2778_v0 = vrot.slane %v4993_v13, 5 }
  0x8f   : > { %5476 = vmatprep.mubr.msk.bf16.mxu1 %vm696_vm3, %v4878_v37  ;;  %5628 = vmatprep.mubr.msk.bf16.mxu0 %vm696_vm3, %v5098_v57  ;;  %v1432_v14 = vsel %vm745_vm0, %v6091_v59, 0  ;;  %v4997_v20 = vld [vmem:[%s6292_s28 + $0xa4] sm:$0x1]  ;;  %v2768_v37 = vsel %vm6584_vm7, %v2766_v47, %v2767_v19  ;;  %v6840_v8 = vld [vmem:[%s6292_s28 + $0x18] sm:$0xf]  ;;  %v5084_v10 = vrot.slane %v4992_v42, 9 }
  0x90   : > { %v6843_v54 = vld [vmem:[%s6292_s28 + $0x1c] sm:$0xf]  ;;  %v2772_v28 = vsel %vm6584_vm7, %v5083_v63, %v2771_v24  ;;  %v2773_v36 = vrot.slane %v2771_v24, 4  ;;  %v5099_v16 = vcombine.low %v2765_v26, %v2768_v37  ;;  %v2780_v57 = vrot.slane %v2778_v0, 4  ;;  %v4999_v19 = vld [vmem:[%s6292_s28 + $0xac] sm:$0xf] }
  0x91   : > { %v4880_v18 = vcombine.low %v6840_v8, %v6843_v54  ;;  %v2781_v55 = vrot.slane %v4994_v45, 5  ;;  %v5085_v21 = vrot.slane %v4995_v2, 9  ;;  %v2785_v41 = vrot.slane %v4996_v17, 5  ;;  %v5002_v59 = vld [vmem:[%s6292_s28 + $0xb8] sm:$0xf] }
  0x92   : > { %v2775_v31 = vsel %vm6584_vm7, %v2773_v36, %v2774_v7  ;;  %v2788_v13 = vrot.slane %v4997_v20, 5  ;;  %v6856_v63 = vld [vmem:[%s8290_s1 + $0x6] sm:$0x3]  ;;  %v2779_v45 = vsel %vm6584_vm7, %v5084_v10, %v2778_v0  ;;  %v2792_v24 = vrot.slane %v4999_v19, 5  ;;  %v5000_v7 = vld [vmem:[%s6292_s28 + $0xb0] sm:$0x1] }
  0x93   : > { %v5100_v47 = vcombine.low %v2772_v28, %v2775_v31  ;;  %v2787_v42 = vrot.slane %v2785_v41, 4  ;;  %v2782_v26 = vsel %vm6584_vm7, %v2780_v57, %v2781_v55  ;;  %v2786_v2 = vsel %vm6584_vm7, %v5085_v21, %v2785_v41  ;;  %v5001_v0 = vld [vmem:[%s6292_s28 + $0xb4] sm:$0xf]  ;;  %v5003_v20 = vld [vmem:[%s6292_s28 + $0xbc] sm:$0x1] }
  0x94   : > { %v6877_v37 = vld [vmem:[%s6292_s28 + $0x24] sm:$0xf]  ;;  %v5101_v36 = vcombine.low %v2779_v45, %v2782_v26  ;;  %v2794_v55 = vrot.slane %v2792_v24, 4  ;;  %v2795_v31 = vrot.slane %v5000_v7, 5  ;;  %v5087_v21 = vrot.slane %v5001_v0, 9 }
  0x95   : > { %v2789_v17 = vsel %vm6584_vm7, %v2787_v42, %v2788_v13  ;;  %v2802_v13 = vrot.slane %v5003_v20, 5  ;;  %v5005_v19 = vld [vmem:[%s6292_s28 + $0xc4] sm:$0xf]  ;;  %v5004_v45 = vld [vmem:[%s6292_s28 + $0xc0] sm:$0xf] }
  0x96   : > { %5477 = vmatmul.mubr.msk.bf16.vlgmr.msra.gmra.mrb[0].mxu1 %vm696_vm3, %v4879_v39  ;;  %5629 = vmatmul.mubr.msk.bf16.gmra.mrb[16].mxu0 %vm696_vm3, %v5099_v16  ;;  %v4998_v39 = vld [vmem:[%s6292_s28 + $0xa8] sm:$0xf]  ;;  %v4882_v16 = vcombine.low %v6419_v44, %v6425_v56  ;;  %v5102_v10 = vcombine.low %v2786_v2, %v2789_v17  ;;  %v2796_v56 = vsel %vm6584_vm7, %v2794_v55, %v2795_v31  ;;  %v5088_v7 = vrot.slane %v5004_v45, 9 }
  0x97   : > { %5509 = vmatpush3.bf16.msra.mxu1 %v1432_v14  ;;  %5480 = vmatprep.mubr.msk.bf16.mxu1 %vm696_vm3, %v4880_v18  ;;  %v2799_v14 = vrot.slane %v5002_v59, 5  ;;  %v6880_v18 = vld [vmem:[%s6292_s28 + $0x28] sm:$0xf]  ;;  %v5086_v57 = vrot.slane %v4998_v39, 9  ;;  %v4883_v2 = vcombine.low %v6456_v50, %v6462_v51  ;;  %v4888_v55 = vcombine.low %v6614_v58, %v6619_v43  ;;  %v6963_v58 = vld [vmem:[%s6292_s28 + $0x40] sm:$0xf] }
  0x98   : > { %5632 = vmatprep.mubr.msk.bf16.mxu0 %vm696_vm3, %v5100_v47  ;;  %6007 = vmatprep.subr.msk.bf16.mxu1 %vm745_vm0, %v6856_v63  ;;  %v4881_v28 = vcombine.low %v6877_v37, %v6880_v18  ;;  %v2806_v47 = vrot.slane %v5005_v19, 5  ;;  %v5006_v26 = vld [vmem:[%s6292_s28 + $0xc8] sm:$0x1]  ;;  %v3966_v31 = vsel %vm745_vm0, %v6652_v46, 0  ;;  %v4889_v45 = vcombine.low %v6641_v27, %v6644_v33 }
  0x99   : > { %v2801_v41 = vrot.slane %v2799_v14, 4  ;;  %v2793_v44 = vsel %vm6584_vm7, %v5086_v57, %v2792_v24  ;;  %v2800_v59 = vsel %vm6584_vm7, %v5087_v21, %v2799_v14  ;;  %v4884_v24 = vcombine.low %v6492_v40, %v6495_v48  ;;  %v6914_v40 = vld [vmem:[%s6292_s28 + $0x18] sm:$0xf]  ;;  %v6917_v48 = vld [vmem:[%s6292_s28 + $0x1c] sm:$0xf] }
  0x9a   : > { %v5103_v17 = vcombine.low %v2793_v44, %v2796_v56  ;;  %v2808_v0 = vrot.slane %v2806_v47, 4  ;;  %v2809_v20 = vrot.slane %v5006_v26, 5  ;;  %v2807_v50 = vsel %vm6584_vm7, %v5088_v7, %v2806_v47  ;;  %v6967_v46 = vld [vmem:[%s6292_s28 + $0x48] sm:$0xf]  ;;  %v6980_v47 = vld [vmem:[%s6292_s28 + $0x14] sm:$0x1] }
  0x9b   : > { %v2803_v42 = vsel %vm6584_vm7, %v2801_v41, %v2802_v13  ;;  %v4885_v14 = vcombine.low %v6526_v53, %v6532_v61  ;;  %v6933_v53 = vld [vmem:[%s6292_s28 + $0x28] sm:$0xf]  ;;  %v6936_v61 = vld [vmem:[%s6292_s28 + $0x30] sm:$0xf]  ;;  %v6970_v13 = vld [vmem:[%s6292_s28 + $0x4c] sm:$0xf] }
  0x9c   : > { %v5104_v39 = vcombine.low %v2800_v59, %v2803_v42  ;;  %v2810_v51 = vsel %vm6584_vm7, %v2808_v0, %v2809_v20  ;;  %v6954_v41 = vld [vmem:[%s8290_s1 + $0x10] sm:$0x3]  ;;  %v6975_v19 = vld [vmem:[%s6292_s28 + $0x8] sm:$0x1]  ;;  %v1230_v56 = vrot.slane %v6828_v23, 5  ;;  %v1233_v59 = vrot.slane %v6980_v47, 5 }
  0x9d   : > { %v1226_v44 = vrot.slane %v6975_v19, 5  ;;  %v4890_v23 = vcombine.low %v6675_v9, %v6678_v11  ;;  %v6998_v7 = vld [vmem:[%s6292_s28 + $0x58] sm:$0xf]  ;;  %v1237_v9 = vrot.slane %v6843_v54, 5  ;;  %v7067_v33 = vld [vmem:[%s6292_s28 + $0x88] sm:$0xf] }
  0x9e   : > { %5481 = vmatmul.mubr.msk.bf16.gmra.mrb[4].mxu1 %vm696_vm3, %v4881_v28  ;;  %5633 = vmatmul.mubr.msk.bf16.gmra.mrb[20].mxu0 %vm696_vm3, %v5101_v36  ;;  %v5105_v28 = vcombine.low %v2807_v50, %v2810_v51  ;;  %v4886_v36 = vcombine.low %v6563_v6, %v6566_v22  ;;  %v6939_v6 = vld [vmem:[%s6292_s28 + $0x34] sm:$0xf]  ;;  %v4887_v22 = vcombine.low %v6580_v49, %v6596_v38  ;;  %v6960_v49 = vld [vmem:[%s6292_s28 + $0x3c] sm:$0xf]  ;;  %v7005_v50 = vld [vmem:[%s6292_s28 + $0x60] sm:$0xf] }
  0x9f   : > { %5484 = vmatprep.mubr.msk.bf16.mxu1 %vm696_vm3, %v4882_v16  ;;  %5636 = vmatprep.mubr.msk.bf16.mxu0 %vm696_vm3, %v5102_v10  ;;  %v5171_v16 = vcombine.low %v6914_v40, %v6917_v48  ;;  %v6930_v10 = vld [vmem:[%s6292_s28 + $0x24] sm:$0xf]  ;;  %v5173_v21 = vcombine.low %v6936_v61, %v6939_v6  ;;  %v5174_v26 = vcombine.low %v6960_v49, %v6963_v58  ;;  %v4912_v27 = vrot.slane %v6840_v8, 9  ;;  %v7091_v0 = vld [vmem:[%s6292_s28 + $0x94] sm:$0xf] }
  0xa0   : > { %v5172_v57 = vcombine.low %v6930_v10, %v6933_v53  ;;  %8325 = vst [vmem:[#allocation8_spill] sm:$0xff] %v7005_v50  ;;  %v4893_v51 = vcombine.low %v6753_v34, %v6756_v30  ;;  %v7099_v19 = vsel %vm745_vm0, %v6856_v63, 0  ;;  %v7117_v8 = vld [vmem:[%s6292_s28 + $0x9c] sm:$0xf]  ;;  %v7129_v54 = vld [vmem:[%s6292_s28 + $0xa8] sm:$0xf] }
  0xa1   : > { %v6103_v42 = vld [vmem:[%s6292_s28 + $0x40] sm:$0xf]  ;;  %v7198_v34 = vld [vmem:[%s6292_s28 + $0xc4] sm:$0xf] }
  0xa6   : > { %5485 = vmatmul.mubr.msk.bf16.gmra.mrb[8].mxu1 %vm696_vm3, %v4883_v2  ;;  %5637 = vmatmul.mubr.msk.bf16.gmra.mrb[24].mxu0 %vm696_vm3, %v5103_v17  ;;  %v7081_v17 = vld [vmem:[%s6292_s28 + $0x90] sm:$0xf]  ;;  %v7134_v2 = vld [vmem:[%s6292_s28 + $0xac] sm:$0xf] }
  0xa7   : > { %5488 = vmatprep.mubr.msk.bf16.mxu1 %vm696_vm3, %v4884_v24  ;;  %5640 = vmatprep.mubr.msk.bf16.mxu0 %vm696_vm3, %v5104_v39  ;;  %v5175_v24 = vcombine.low %v6967_v46, %v6970_v13  ;;  %v6995_v39 = vld [vmem:[%s6292_s28 + $0x54] sm:$0xf]  ;;  %8331 = vst [vmem:[#allocation14_spill] sm:$0xff] %v7081_v17 }
  0xa8   : > { %v5176_v47 = vcombine.low %v6995_v39, %v6998_v7 }
  0xae   : > { %5489 = vmatmul.mubr.msk.bf16.gmra.mrb[12].mxu1 %vm696_vm3, %v4885_v14  ;;  %5641 = vmatmul.mubr.msk.bf16.gmra.mrb[28].mxu0 %vm696_vm3, %v5105_v28  ;;  %v1258_v28 = vrot.slane %v6103_v42, 5  ;;  %v6104_v42 = vld [vmem:[%s6292_s28 + $0x4c] sm:$0xf] }
  0xaf   : > { %5492 = vmatprep.mubr.msk.bf16.mxu1 %vm696_vm3, %v4886_v36  ;;  %5646 = vmatprep.mubr.msk.bf16.mxu0 %vm696_vm3, %v5171_v16  ;;  %v7012_v36 = vld [vmem:[%s6292_s28 + $0x64] sm:$0xf] }
  0xb6   : > { %5493 = vmatmul.mubr.msk.bf16.gmra.mrb[16].mxu1 %vm696_vm3, %v4887_v22  ;;  %5647 = vmatmul.mubr.msk.bf16.vlgmr.msra.gmra.mrb[0].mxu0 %vm696_vm3, %v5172_v57  ;;  %v7046_v22 = vld [vmem:[%s6292_s28 + $0x7c] sm:$0xf]  ;;  %v1232_v57 = vrot.slane %v1230_v56, 4 }
  0xb7   : > { %5679 = vmatpush3.bf16.msra.mxu0 %v3966_v31  ;;  %5496 = vmatprep.mubr.msk.bf16.mxu1 %vm696_vm3, %v4888_v55  ;;  %v1223_v55 = vrot.slane %v6801_v29, 5  ;;  %v7038_v31 = vld [vmem:[%s6292_s28 + $0x70] sm:$0xf]  ;;  %8329 = vst [vmem:[#allocation12_spill] sm:$0xff] %v7046_v22  ;;  %v4911_v29 = vrot.slane %v6825_v25, 9 }
  0xb8   : > { %5650 = vmatprep.mubr.msk.bf16.mxu0 %vm696_vm3, %v5173_v21  ;;  %6013 = vmatprep.subr.msk.bf16.mxu0 %vm745_vm0, %v6954_v41  ;;  %v4891_v21 = vcombine.low %v6702_v4, %v6705_v60  ;;  %8327 = vst [vmem:[#allocation10_spill] sm:$0xff] %v7038_v31  ;;  %v7041_v4 = vld [vmem:[%s6292_s28 + $0x78] sm:$0xf]  ;;  %v7059_v25 = vld [vmem:[%s6292_s28 + $0x84] sm:$0xf]  ;;  %v7077_v16 = vsel %vm6584_vm7, %v1232_v57, %v1233_v59  ;;  %v1244_v59 = vrot.slane %v6880_v18, 5 }
  0xb9   : > { %8328 = vst [vmem:[#allocation11_spill] sm:$0xff] %v7041_v4  ;;  %v1225_v14 = vrot.slane %v1223_v55, 4  ;;  %8330 = vst [vmem:[#allocation13_spill] sm:$0xff] %v7059_v25  ;;  %v7073_v20 = vsel %vm6584_vm7, %v4911_v29, %v1230_v56  ;;  %v1239_v56 = vrot.slane %v1237_v9, 4  ;;  %v6102_v18 = vld [vmem:[%s6292_s28 + $0x38] sm:$0x1] }
  0xbe   : > { %5497 = vmatmul.mubr.msk.bf16.gmra.mrb[20].mxu1 %vm696_vm3, %v4889_v45  ;;  %5651 = vmatmul.mubr.msk.bf16.gmra.mrb[4].mxu0 %vm696_vm3, %v5174_v26  ;;  %v7029_v26 = vld [vmem:[%s6292_s28 + $0x6c] sm:$0xf]  ;;  %v4910_v45 = vrot.slane %v6798_v35, 9 }
  0xbf   : > { %5500 = vmatprep.mubr.msk.bf16.mxu1 %vm696_vm3, %v4890_v23  ;;  %5654 = vmatprep.mubr.msk.bf16.mxu0 %vm696_vm3, %v5175_v24  ;;  %8326 = vst [vmem:[#allocation9_spill] sm:$0xff] %v7029_v26  ;;  %v4892_v23 = vcombine.low %v6726_v52, %v6729_v1  ;;  %v5177_v24 = vcombine.low %v7005_v50, %v7012_v36  ;;  %v8334_v52 = vshll.u32 %v6914_v40, 16 }
  0xc0   : > { %v5178_v35 = vcombine.low %v7029_v26, %v7038_v31  ;;  %v1224_v60 = vsel %vm6584_vm7, %v4910_v45, %v1223_v55  ;;  %v1227_v55 = vsel %vm6584_vm7, %v1225_v14, %v1226_v44  ;;  %v6098_v45 = vld [vmem:[%s6292_s28 + $0x20] sm:$0x1]  ;;  %v6099_v14 = vld [vmem:[%s6292_s28 + $0x34] sm:$0xf]  ;;  %v1279_v31 = vrot.slane %v6112_v5, 5 }
  0xc1   : > { %v1240_v29 = vrot.slane %v6098_v45, 5  ;;  %v1251_v57 = vrot.slane %v6099_v14, 5  ;;  %v4927_v63 = vcombine.low %v1224_v60, %v1227_v55  ;;  %v4913_v14 = vrot.slane %v6877_v37, 9  ;;  %v6100_v55 = vld [vmem:[%s6292_s28 + $0x2c] sm:$0x1] }
  0xc2   : > { %v1246_v60 = vrot.slane %v1244_v59, 4  ;;  %v1254_v37 = vrot.slane %v6102_v18, 5  ;;  %v6107_v45 = vld [vmem:[%s6292_s28 + $0x58] sm:$0xf]  ;;  %v6110_v26 = vld [vmem:[%s6292_s28 + $0x54] sm:$0xf] }
  0xc3   : > { %v1253_v44 = vrot.slane %v1251_v57, 4  ;;  %v7146_v18 = vsel %vm6584_vm7, %v4913_v14, %v1244_v59  ;;  %v7163_v14 = vld [vmem:[%s6292_s28 + $0xb4] sm:$0xf]  ;;  %v4917_v30 = vrot.slane %v6110_v26, 9  ;;  %v8335_v5 = vshrl.u32 %v6917_v48, 16 }
  0xc6   : > { %5501 = vmatmul.mubr.msk.bf16.gmra.mrb[24].mxu1 %vm696_vm3, %v4891_v21  ;;  %5655 = vmatmul.mubr.msk.bf16.gmra.mrb[8].mxu0 %vm696_vm3, %v5176_v47  ;;  %v7120_v21 = vld [vmem:[%s6292_s28 + $0xa0] sm:$0xf]  ;;  %v1247_v47 = vrot.slane %v6100_v55, 5 }
  0xc7   : > { %5504 = vmatprep.mubr.msk.bf16.mxu1 %vm696_vm3, %v4892_v23  ;;  %5658 = vmatprep.mubr.msk.bf16.mxu0 %vm696_vm3, %v5177_v24  ;;  %v7111_v24 = vsel %vm6584_vm7, %v4912_v27, %v1237_v9  ;;  %v7124_v23 = vsel %vm6584_vm7, %v1239_v56, %v1240_v29  ;;  %v6101_v27 = vld [vmem:[%s6292_s28 + $0x30] sm:$0xf]  ;;  %v6106_v56 = vld [vmem:[%s6292_s28 + $0x44] sm:$0x1] }
  0xc8   : > { %v4914_v9 = vrot.slane %v6101_v27, 9  ;;  %v7154_v27 = vsel %vm6584_vm7, %v1246_v60, %v1247_v47  ;;  %v6105_v47 = vld [vmem:[%s6292_s28 + $0x3c] sm:$0xf]  ;;  %v1261_v59 = vrot.slane %v6106_v56, 5  ;;  %v7190_v56 = vld [vmem:[%s6292_s28 + $0xc0] sm:$0xf] }
  0xc9   : > { %v4915_v60 = vrot.slane %v6105_v47, 9  ;;  %v6108_v47 = vld [vmem:[%s6292_s28 + $0x48] sm:$0xf] }
  0xca   : > { %v7158_v29 = vsel %vm6584_vm7, %v4914_v9, %v1251_v57  ;;  %v7176_v57 = vsel %vm6584_vm7, %v1253_v44, %v1254_v37  ;;  %v1260_v9 = vrot.slane %v1258_v28, 4  ;;  %v4916_v15 = vrot.slane %v6108_v47, 9 }
  0xcb   : > { %v7202_v37 = vsel %vm6584_vm7, %v4915_v60, %v1258_v28  ;;  %v3489_v28 = vrot.slane %v8334_v52, 5  ;;  %v8337_v52 = vcombine.low %v7059_v25, %v7067_v33 }
  0xcc   : > { %v7206_v47 = vsel %vm6584_vm7, %v1260_v9, %v1261_v59  ;;  %v7222_v59 = vld [vmem:[%s6292_s28 + $0xcc] sm:$0xf]  ;;  %v3499_v9 = vrot.slane %v8335_v5, 4 }
  0xce   : > { %5505 = vmatmul.mubr.msk.bf16.gmra.mrb[28].mxu1 %vm696_vm3, %v4893_v51  ;;  %5659 = vmatmul.mubr.msk.bf16.gmra.mrb[12].mxu0 %vm696_vm3, %v5178_v35  ;;  %v1265_v51 = vrot.slane %v6104_v42, 5  ;;  %v8332_v35 = vcombine.low %v7041_v4, %v7046_v22  ;;  %v3493_v42 = vshll.u32 %v6917_v48, 16  ;;  %v6109_v4 = vld [vmem:[%s6292_s28 + $0x50] sm:$0x1]  ;;  %v6111_v22 = vld [vmem:[%s6292_s28 + $0x5c] sm:$0x1] }
  0xcf   : > { %5510 = vmatprep.mubr.msk.bf16.mxu1 %vm696_vm3, %v4927_v63  ;;  %v1268_v44 = vrot.slane %v6109_v4, 5  ;;  %v1275_v55 = vrot.slane %v6111_v22, 5  ;;  %v8333_v4 = vshrl.u32 %v6914_v40, 16  ;;  %v7243_v48 = vld [vmem:[%s6292_s28 + $0xd0] sm:$0xf] }
  0xd0   : > { %5662 = vmatprep.mubr.msk.bf16.mxu0 %vm696_vm3, %v8332_v35  ;;  %v1272_v35 = vrot.slane %v6107_v45, 5  ;;  %v1267_v45 = vrot.slane %v1265_v51, 4  ;;  %v7217_v60 = vsel %vm6584_vm7, %v4916_v15, %v1265_v51  ;;  %v7224_v22 = vrot.slane %v3493_v42, 5  ;;  %v7246_v51 = vld [vmem:[%s6292_s28 + $0x20] sm:$0x1] }
  0xd1   : > { %v3486_v50 = vrot.slane %v8333_v4, 4  ;;  %v8336_v4 = vcombine.low %v7073_v20, %v7077_v16  ;;  %8338 = vst [vmem:[#allocation15_spill] sm:$0xff] %v7246_v51  ;;  %v1286_v20 = vrot.slane %v6596_v38, 5  ;;  %v3517_v16 = vshll.u32 %v6933_v53, 16  ;;  %v6117_v15 = vld [vmem:[%s6292_s28 + $0x74] sm:$0x1] }
  0xd2   : > { %v1274_v63 = vrot.slane %v1272_v35, 4  ;;  %v7240_v40 = vsel %vm6584_vm7, %v1267_v45, %v1268_v44  ;;  %v8339_v42 = vcombine.low %v7111_v24, %v7124_v23  ;;  %v7257_v5 = vsel %vm6584_vm7, %v4917_v30, %v1272_v35  ;;  %v6113_v44 = vld [vmem:[%s6292_s28 + $0x60] sm:$0xf]  ;;  %v6114_v24 = vld [vmem:[%s6292_s28 + $0x68] sm:$0x1] }
  0xd3   : > { %v4918_v45 = vrot.slane %v6113_v44, 9  ;;  %v8341_v38 = vshll.u32 %v6930_v10, 16  ;;  %v1281_v23 = vrot.slane %v1279_v31, 4  ;;  %v1282_v35 = vrot.slane %v6114_v24, 5  ;;  %v7284_v24 = vld [vmem:[%s6292_s28 + $0x2c] sm:$0x1] }
  0xd4   : > { %v7270_v30 = vsel %vm6584_vm7, %v1274_v63, %v1275_v55  ;;  %v1288_v63 = vrot.slane %v1286_v20, 4 }
  0xd5   : > { %v3513_v26 = vrot.slane %v8341_v38, 5  ;;  %v3503_v38 = vshll.u32 %v7246_v51, 16  ;;  %v1293_v51 = vrot.slane %v6619_v43, 5 }
  0xd6   : > { %5511 = vmatmul.mubr.msk.bf16.vlgmr.msra.gmra.mrb[0].mxu1 %vm696_vm3, %v8336_v4  ;;  %5663 = vmatmul.mubr.msk.bf16.gmra.mrb[16].mxu0 %vm696_vm3, %v8337_v52  ;;  %v8340_v4 = vshrl.u32 %v6930_v10, 16  ;;  %v6115_v10 = vld [vmem:[%s8290_s1 + $0x8] sm:$0x3] }
  0xd7   : > { %5543 = vmatpush3.bf16.msra.mxu1 %v7099_v19  ;;  %5514 = vmatprep.mubr.msk.bf16.mxu1 %vm696_vm3, %v8339_v42  ;;  %v8342_v19 = vcombine.low %v7081_v17, %v7091_v0  ;;  %v3490_v42 = vor.u32 %v3489_v28, %v3486_v50  ;;  %v1289_v17 = vrot.slane %v6117_v15, 5  ;;  %v7286_v50 = vrot.slane %v3517_v16, 5 }
  0xd8   : > { %v3510_v52 = vrot.slane %v8340_v4, 4  ;;  %6009 = vmatprep.subr.msk.bf16.mxu1 %vm745_vm0, %v6115_v10  ;;  %v3500_v4 = vor.u32 %v3499_v9, %v7224_v22  ;;  %v8343_v28 = vshrl.u32 %v6933_v53, 16  ;;  %v4933_v10 = vcombine.low %v7217_v60, %v7240_v40  ;;  %v6123_v9 = vld [vmem:[%s6292_s28 + $0x90] sm:$0xf] }
  0xd9   : > { %5666 = vmatprep.mubr.msk.bf16.mxu0 %vm696_vm3, %v8342_v19  ;;  %v6116_v19 = vld [vmem:[%s6292_s28 + $0x6c] sm:$0xf]  ;;  %v7301_v15 = vsel %vm6584_vm7, %v1281_v23, %v1282_v35  ;;  %v7303_v53 = vrot.slane %v3490_v42, 4  ;;  %v3541_v16 = vshll.u32 %v6939_v6, 16  ;;  %v7308_v40 = vrot.slane %v3503_v38, 5 }
  0xda   : > { %v4919_v55 = vrot.slane %v6116_v19, 9  ;;  %v3523_v25 = vrot.slane %v8343_v28, 4  ;;  %v3514_v44 = vor.u32 %v3513_v26, %v3510_v52  ;;  %v7297_v19 = vsel %vm6584_vm7, %v4918_v45, %v1279_v31  ;;  %v6118_v38 = vld [vmem:[%s6292_s28 + $0x78] sm:$0xf] }
  0xdb   : > { %v7306_v60 = vrot.slane %v3500_v4, 4  ;;  %v3527_v31 = vshll.u32 %v7284_v24, 16  ;;  %v8344_v26 = vcombine.low %v7146_v18, %v7154_v27  ;;  %v8345_v45 = vcombine.low %v7117_v8, %v7120_v21 }
  0xdc   : > { %v7312_v43 = vsel %vm6584_vm7, %v4919_v55, %v1286_v20  ;;  %v7325_v52 = vsel %vm6584_vm7, %v1288_v63, %v1289_v17  ;;  %v3524_v20 = vor.u32 %v3523_v25, %v7286_v50  ;;  %v8346_v23 = vshrl.u32 %v6936_v61, 16  ;;  %v6119_v63 = vld [vmem:[%s6292_s28 + $0x80] sm:$0x1] }
  0xdd   : > { %v8347_v42 = vshll.u32 %v6936_v61, 16  ;;  %v8348_v27 = vcombine.low %v7158_v29, %v7176_v57  ;;  %v8349_v18 = vcombine.low %v7129_v54, %v7134_v2  ;;  %v3515_v17 = vrot.slane %v3514_v44, 4  ;;  %v7420_v61 = vld [vmem:[%s6292_s28 + $0x50] sm:$0x1] }
  0xde   : > { %5515 = vmatmul.mubr.msk.bf16.gmra.mrb[4].mxu1 %vm696_vm3, %v8344_v26  ;;  %5667 = vmatmul.mubr.msk.bf16.gmra.mrb[20].mxu0 %vm696_vm3, %v8345_v45  ;;  %v3534_v35 = vrot.slane %v8346_v23, 4  ;;  %v4920_v55 = vrot.slane %v6118_v38, 9  ;;  %v1295_v25 = vrot.slane %v1293_v51, 4  ;;  %v1296_v28 = vrot.slane %v6119_v63, 5  ;;  %v7343_v26 = vld [vmem:[%s6292_s28 + $0x38] sm:$0x1] }
  0xdf   : > { %v3537_v4 = vrot.slane %v8347_v42, 5  ;;  %5518 = vmatprep.mubr.msk.bf16.mxu1 %vm696_vm3, %v8348_v27  ;;  %5670 = vmatprep.mubr.msk.bf16.mxu0 %vm696_vm3, %v8349_v18  ;;  %8350 = vst [vmem:[#allocation16_spill] sm:$0xff] %v7343_v26  ;;  %v3496_v29 = vsel %vm6318_vm4, %v7303_v53, %v7224_v22  ;;  %v7351_v57 = vrot.slane %v3541_v16, 5  ;;  %v8351_v44 = vshrl.u32 %v6939_v6, 16 }
  0xe0   : > { %v3506_v23 = vsel %vm6318_vm4, %v7306_v60, %v7308_v40  ;;  %v7363_v27 = vsel %vm745_vm0, %v6954_v41, 0  ;;  %v3565_v22 = vshll.u32 %v6963_v58, 16  ;;  %v3525_v53 = vrot.slane %v3524_v20, 4 }
  0xe1   : > { %v3547_v45 = vrot.slane %v8351_v44, 4  ;;  %v3529_v16 = vrot.slane %v3527_v31, 5  ;;  %v3538_v6 = vor.u32 %v3537_v4, %v3534_v35  ;;  %v3551_v18 = vshll.u32 %v7343_v26, 16  ;;  %v6120_v31 = vld [vmem:[%s6292_s28 + $0x88] sm:$0xf] }
  0xe2   : > { %v3520_v60 = vsel %vm6318_vm4, %v3515_v17, %v7286_v50  ;;  %v7372_v40 = vsel %vm6584_vm7, %v4920_v55, %v1293_v51  ;;  %v7376_v41 = vsel %vm6584_vm7, %v1295_v25, %v1296_v28  ;;  %v3589_v38 = vshll.u32 %v6970_v13, 16  ;;  %v6121_v44 = vld [vmem:[%s6292_s28 + $0x84] sm:$0xf] }
  0xe3   : > { %v3548_v20 = vor.u32 %v3547_v45, %v7351_v57  ;;  %v1300_v35 = vrot.slane %v6120_v31, 5  ;;  %v8352_v4 = vshrl.u32 %v6960_v49, 16  ;;  %v8353_v50 = vshll.u32 %v6960_v49, 16  ;;  %v7387_v55 = vld [vmem:[%s6292_s28 + $0x44] sm:$0x1] }
  0xe4   : > { %v4921_v51 = vrot.slane %v6121_v44, 9  ;;  %v7389_v42 = vrot.slane %v3565_v22, 5  ;;  %v8354_v25 = vshrl.u32 %v6963_v58, 16  ;;  %v1307_v45 = vrot.slane %v6678_v11, 5 }
  0xe5   : > { %v3558_v63 = vrot.slane %v8352_v4, 4  ;;  %v3561_v17 = vrot.slane %v8353_v50, 5  ;;  %v8355_v31 = vcombine.low %v7202_v37, %v7206_v47  ;;  %v8356_v49 = vcombine.low %v7163_v14, %v7166_v3  ;;  %v6122_v50 = vld [vmem:[%s6292_s28 + $0x8c] sm:$0x1] }
  0xe6   : > { %v3571_v28 = vrot.slane %v8354_v25, 4  ;;  %v3530_v22 = vsel %vm6318_vm4, %v3525_v53, %v3529_v16  ;;  %v3539_v4 = vrot.slane %v3538_v6, 4  ;;  %v3553_v58 = vrot.slane %v3551_v18, 5 }
  0xe7   : > { %5519 = vmatmul.mubr.msk.bf16.gmra.mrb[8].mxu1 %vm696_vm3, %v8355_v31  ;;  %5671 = vmatmul.mubr.msk.bf16.gmra.mrb[24].mxu0 %vm696_vm3, %v8356_v49  ;;  %v1303_v44 = vrot.slane %v6122_v50, 5  ;;  %v8357_v11 = vcombine.low %v7190_v56, %v7198_v34  ;;  %v8358_v37 = vshrl.u32 %v6967_v46, 16  ;;  %v8359_v25 = vshll.u32 %v6967_v46, 16 }
  0xe8   : > { %5522 = vmatprep.mubr.msk.bf16.mxu1 %vm696_vm3, %v4933_v10  ;;  %v7414_v49 = vrot.slane %v3589_v38, 5  ;;  %v8360_v53 = vshrl.u32 %v6970_v13, 16  ;;  %v3549_v6 = vrot.slane %v3548_v20, 4  ;;  %v1302_v18 = vrot.slane %v1300_v35, 4 }
  0xe9   : > { %5674 = vmatprep.mubr.msk.bf16.mxu0 %vm696_vm3, %v8357_v11  ;;  %v3582_v47 = vrot.slane %v8358_v37, 4  ;;  %v3585_v31 = vrot.slane %v8359_v25, 5  ;;  %v3562_v50 = vor.u32 %v3561_v17, %v3558_v63  ;;  %v3575_v10 = vshll.u32 %v7387_v55, 16 }
  0xea   : > { %v3595_v16 = vrot.slane %v8360_v53, 4  ;;  %v3572_v11 = vor.u32 %v3571_v28, %v7389_v42  ;;  %v4922_v26 = vrot.slane %v6123_v9, 9  ;;  %v1309_v37 = vrot.slane %v1307_v45, 4 }
  0xeb   : > { %v1310_v46 = vrot.slane %v6686_v62, 5  ;;  %v5204_v25 = vcombine.low %v3496_v29, %v3506_v23  ;;  %v5205_v38 = vcombine.low %v3520_v60, %v3530_v22  ;;  %v4937_v13 = vcombine.low %v7372_v40, %v7376_v41 }
  0xec   : > { %v3613_v20 = vshll.u32 %v6998_v7, 16  ;;  %v7430_v63 = vsel %vm6584_vm7, %v4921_v51, %v1300_v35  ;;  %v3586_v17 = vor.u32 %v3585_v31, %v3582_v47  ;;  %v3596_v28 = vor.u32 %v3595_v16, %v7414_v49 }
  0xed   : > { %v3599_v9 = vshll.u32 %v7420_v61, 16  ;;  %v3544_v62 = vsel %vm6318_vm4, %v3539_v4, %v7351_v57  ;;  %v3554_v29 = vsel %vm6318_vm4, %v3549_v6, %v3553_v58  ;;  %v7441_v23 = vsel %vm6584_vm7, %v1302_v18, %v1303_v44  ;;  %v7460_v4 = vld [vmem:[%s6292_s28 + $0x5c] sm:$0x1]  ;;  %v6124_v18 = vld [vmem:[%s6292_s28 + $0xa0] sm:$0xf] }
  0xee   : > { %v3563_v60 = vrot.slane %v3562_v50, 4  ;;  %v3573_v40 = vrot.slane %v3572_v11, 4  ;;  %v3577_v41 = vrot.slane %v3575_v10, 5  ;;  %v7445_v35 = vsel %vm6584_vm7, %v4922_v26, %v1307_v45 }
  0xef   : > { %v7449_v51 = vsel %vm6584_vm7, %v1309_v37, %v1310_v46  ;;  %v8361_v57 = vcombine.low %v7257_v5, %v7270_v30  ;;  %v8362_v22 = vcombine.low %v7222_v59, %v7243_v48  ;;  %v8363_v58 = vshrl.u32 %v6995_v39, 16  ;;  %v6125_v37 = vld [vmem:[%s6292_s28 + $0x9c] sm:$0xf] }
  0xf0   : > { %v8364_v45 = vshll.u32 %v6995_v39, 16  ;;  %v7466_v47 = vrot.slane %v3613_v20, 5  ;;  %v8365_v5 = vshrl.u32 %v6998_v7, 16  ;;  %v8366_v31 = vcombine.low %v7297_v19, %v7301_v15  ;;  %v6126_v20 = vld [vmem:[%s6292_s28 + $0xa4] sm:$0x1] }
  0xf1   : > { %5523 = vmatmul.mubr.msk.bf16.gmra.mrb[12].mxu1 %vm696_vm3, %v8361_v57  ;;  %5675 = vmatmul.mubr.msk.bf16.gmra.mrb[28].mxu0 %vm696_vm3, %v8362_v22  ;;  %v3606_v26 = vrot.slane %v8363_v58, 4  ;;  %v3587_v53 = vrot.slane %v3586_v17, 4  ;;  %v3597_v16 = vrot.slane %v3596_v28, 4  ;;  %v3601_v6 = vrot.slane %v3599_v9, 5  ;;  %v8368_v57 = vld [vmem:[#allocation8_spill] sm:$0xff] }
  0xf2   : > { %v3609_v44 = vrot.slane %v8364_v45, 5  ;;  %v3619_v30 = vrot.slane %v8365_v5, 4  ;;  %5526 = vmatprep.mubr.msk.bf16.mxu1 %vm696_vm3, %v8366_v31  ;;  %5680 = vmatprep.mubr.msk.bf16.mxu0 %vm696_vm3, %v5204_v25  ;;  %v1314_v39 = vrot.slane %v6124_v18, 5  ;;  %v5206_v50 = vcombine.low %v3544_v62, %v3554_v29 }
  0xf3   : > { %v4938_v10 = vcombine.low %v7430_v63, %v7441_v23  ;;  %v3568_v7 = vsel %vm6318_vm4, %v3563_v60, %v7389_v42  ;;  %v3637_v19 = vshll.u32 %v7012_v36, 16  ;;  %v3578_v15 = vsel %vm6318_vm4, %v3573_v40, %v3577_v41  ;;  %v8367_v40 = vld [vmem:[#allocation3_spill] sm:$0xff] }
  0xf4   : > { %v4939_v11 = vcombine.low %v7445_v35, %v7449_v51  ;;  %v4923_v46 = vrot.slane %v6125_v37, 9  ;;  %v3623_v25 = vshll.u32 %v7460_v4, 16  ;;  %v1317_v17 = vrot.slane %v6126_v20, 5 }
  0xf5   : > { %v3610_v28 = vor.u32 %v3609_v44, %v3606_v26  ;;  %v3620_v9 = vor.u32 %v3619_v30, %v7466_v47  ;;  %v1321_v42 = vrot.slane %v6729_v1, 5  ;;  %v3592_v62 = vsel %vm6318_vm4, %v3587_v53, %v7414_v49  ;;  %v7510_v53 = vld [vmem:[%s6292_s28 + $0x68] sm:$0x1] }
  0xf6   : > { %v3602_v29 = vsel %vm6318_vm4, %v3597_v16, %v3601_v6  ;;  %v1316_v60 = vrot.slane %v1314_v39, 4  ;;  %v4924_v41 = vrot.slane %v8367_v40, 9  ;;  %v8369_v22 = vshrl.u32 %v8368_v57, 16  ;;  %v8372_v16 = vld [vmem:[#allocation10_spill] sm:$0xff] }
  0xf7   : > { %v8370_v45 = vshll.u32 %v8368_v57, 16  ;;  %v7501_v44 = vrot.slane %v3637_v19, 5  ;;  %v8371_v1 = vshrl.u32 %v7012_v36, 16  ;;  %v5207_v30 = vcombine.low %v3568_v7, %v3578_v15  ;;  %v8374_v7 = vld [vmem:[#allocation4_spill] sm:$0xff] }
  0xf8   : > { %v3630_v58 = vrot.slane %v8369_v22, 4  ;;  %v7507_v49 = vsel %vm6584_vm7, %v4923_v46, %v1314_v39  ;;  %v3625_v31 = vrot.slane %v3623_v25, 5  ;;  %v3661_v6 = vshll.u32 %v8372_v16, 16 }
  0xf9   : > { %v3633_v26 = vrot.slane %v8370_v45, 5  ;;  %v3643_v5 = vrot.slane %v8371_v1, 4  ;;  %v8373_v18 = vcombine.low %v7312_v43, %v7325_v52  ;;  %5681 = vmatmul.mubr.msk.bf16.vlgmr.msra.gmra.mrb[0].mxu0 %vm696_vm3, %v5205_v38  ;;  %v3611_v19 = vrot.slane %v3610_v28, 4  ;;  %v8375_v52 = vld [vmem:[#allocation12_spill] sm:$0xff]  ;;  %v8382_v1 = vld [vmem:[#allocation11_spill] sm:$0xff] }
  0xfa   : > { %v3621_v36 = vrot.slane %v3620_v9, 4  ;;  %v1323_v37 = vrot.slane %v1321_v42, 4  ;;  %v1324_v15 = vrot.slane %v8374_v7, 5  ;;  %5713 = vmatpush3.bf16.msra.mxu0 %v7363_v27  ;;  %v5208_v39 = vcombine.low %v3592_v62, %v3602_v29  ;;  %5684 = vmatprep.mubr.msk.bf16.mxu0 %vm696_vm3, %v5206_v50  ;;  %v8377_v9 = vld [vmem:[#allocation9_spill] sm:$0xff] }
  0xfb   : > { %5527 = vmatmul.mubr.msk.bf16.gmra.mrb[16].mxu1 %vm696_vm3, %v8373_v18  ;;  %v7523_v46 = vsel %vm6584_vm7, %v1316_v60, %v1317_v17  ;;  %v7527_v43 = vsel %vm6584_vm7, %v4924_v41, %v1321_v42  ;;  %v3685_v38 = vshll.u32 %v8375_v52, 16  ;;  %v3634_v25 = vor.u32 %v3633_v26, %v3630_v58  ;;  %v8381_v58 = vld [vmem:[#allocation5_spill] sm:$0xff]  ;;  %v7553_v26 = vld [vmem:[%s6292_s28 + $0x74] sm:$0x1] }
  0xfc   : > { %5530 = vmatprep.mubr.msk.bf16.mxu1 %vm696_vm3, %v4937_v13  ;;  %v3644_v20 = vor.u32 %v3643_v5, %v7501_v44  ;;  %v3647_v27 = vshll.u32 %v7510_v53, 16  ;;  %v8376_v13 = vld [vmem:[#allocation6_spill] sm:$0xff]  ;;  %v8378_v62 = vshrl.u32 %v8377_v9, 16  ;;  %v8379_v29 = vshll.u32 %v8377_v9, 16 }
  0xfd   : > { %v1328_v28 = vrot.slane %v8376_v13, 5  ;;  %v7538_v42 = vrot.slane %v3661_v6, 5  ;;  %v8380_v40 = vshrl.u32 %v8372_v16, 16  ;;  %v3616_v50 = vsel %vm6318_vm4, %v3611_v19, %v7466_v47  ;;  %v7565_v9 = vld [vmem:[%s6292_s28 + $0x80] sm:$0x1] }
  0xfe   : > { %v3654_v17 = vrot.slane %v8378_v62, 4  ;;  %v3657_v60 = vrot.slane %v8379_v29, 5  ;;  %v3626_v57 = vsel %vm6318_vm4, %v3621_v36, %v3625_v31  ;;  %v7549_v22 = vsel %vm6584_vm7, %v1323_v37, %v1324_v15  ;;  %v8386_v37 = vld [vmem:[#allocation7_spill] sm:$0xff] }
  0xff   : > { %v3667_v41 = vrot.slane %v8380_v40, 4  ;;  %v4925_v45 = vrot.slane %v8381_v58, 9  ;;  %v8383_v5 = vshrl.u32 %v8382_v1, 16  ;;  %v8384_v16 = vshll.u32 %v8382_v1, 16 }
 0x100   : > { %v7559_v7 = vrot.slane %v3685_v38, 5  ;;  %v8385_v47 = vshrl.u32 %v8375_v52, 16  ;;  %v3635_v31 = vrot.slane %v3634_v25, 4  ;;  %v3645_v36 = vrot.slane %v3644_v20, 4 }
 0x101   : > { %v3678_v6 = vrot.slane %v8383_v5, 4  ;;  %v3681_v18 = vrot.slane %v8384_v16, 5  ;;  %v3649_v13 = vrot.slane %v3647_v27, 5  ;;  %v1331_v15 = vrot.slane %v8386_v37, 5  ;;  %5685 = vmatmul.mubr.msk.bf16.gmra.mrb[4].mxu0 %vm696_vm3, %v5207_v30  ;;  %v8387_v27 = vld [vmem:[#allocation13_spill] sm:$0xff] }
 0x102   : > { %v3691_v19 = vrot.slane %v8385_v47, 4  ;;  %v1330_v62 = vrot.slane %v1328_v28, 4  ;;  %v3658_v29 = vor.u32 %v3657_v60, %v3654_v17  ;;  %v3668_v40 = vor.u32 %v3667_v41, %v7538_v42  ;;  %5688 = vmatprep.mubr.msk.bf16.mxu0 %vm696_vm3, %v5208_v39  ;;  %v7610_v16 = vld [vmem:[%s6292_s28 + $0x8c] sm:$0x1] }
 0x103   : > { %v3671_v58 = vshll.u32 %v7553_v26, 16  ;;  %v3799_v1 = vshll.u32 %v7163_v14, 16  ;;  %5531 = vmatmul.mubr.msk.bf16.gmra.mrb[20].mxu1 %vm696_vm3, %v4938_v10  ;;  %v4940_v52 = vcombine.low %v7507_v49, %v7523_v46  ;;  %v4941_v38 = vcombine.low %v7527_v43, %v7549_v22 }
 0x104   : > { %v3709_v25 = vshll.u32 %v7067_v33, 16  ;;  %5534 = vmatprep.mubr.msk.bf16.mxu1 %vm696_vm3, %v4939_v11  ;;  %v5209_v63 = vcombine.low %v3616_v50, %v3626_v57  ;;  %v3682_v23 = vor.u32 %v3681_v18, %v3678_v6  ;;  %v3692_v10 = vor.u32 %v3691_v19, %v7559_v7  ;;  %v8391_v18 = vld [vmem:[#allocation14_spill] sm:$0xff] }
 0x105   : > { %v3695_v30 = vshll.u32 %v7565_v9, 16  ;;  %v3640_v49 = vsel %vm6318_vm4, %v3635_v31, %v7501_v44  ;;  %v3650_v46 = vsel %vm6318_vm4, %v3645_v36, %v3649_v13  ;;  %v7594_v35 = vsel %vm6584_vm7, %v4925_v45, %v1328_v28 }
 0x106   : > { %v3733_v51 = vshll.u32 %v7091_v0, 16  ;;  %v7599_v11 = vsel %vm6584_vm7, %v1330_v62, %v1331_v15  ;;  %v3659_v39 = vrot.slane %v3658_v29, 4  ;;  %v3669_v43 = vrot.slane %v3668_v40, 4  ;;  %v7627_v40 = vld [vmem:[%s6292_s28 + $0x98] sm:$0x1] }
 0x107   : > { %v3673_v20 = vrot.slane %v3671_v58, 5  ;;  %v8388_v17 = vshrl.u32 %v8387_v27, 16  ;;  %v8389_v60 = vshll.u32 %v8387_v27, 16  ;;  %v7605_v50 = vrot.slane %v3709_v25, 5  ;;  %v6127_v25 = vld [vmem:[%s6292_s28 + $0xc] sm:$0xf] }
 0x108   : > { %v8390_v28 = vshrl.u32 %v7067_v33, 16  ;;  %v5210_v22 = vcombine.low %v3640_v49, %v3650_v46  ;;  %v3683_v45 = vrot.slane %v3682_v23, 4  ;;  %v3693_v5 = vrot.slane %v3692_v10, 4 }
 0x109   : > { %v3702_v44 = vrot.slane %v8388_v17, 4  ;;  %v3705_v41 = vrot.slane %v8389_v60, 5  ;;  %v3697_v6 = vrot.slane %v3695_v30, 5  ;;  %v8392_v47 = vshrl.u32 %v8391_v18, 16  ;;  %5689 = vmatmul.mubr.msk.bf16.gmra.mrb[8].mxu0 %vm696_vm3, %v5209_v63 }
 0x10a   : > { %v3715_v57 = vrot.slane %v8390_v28, 4  ;;  %v8393_v31 = vshll.u32 %v8391_v18, 16  ;;  %v7616_v13 = vrot.slane %v3733_v51, 5  ;;  %v8394_v37 = vshrl.u32 %v7091_v0, 16  ;;  %v6128_v0 = vld [vmem:[%s6292_s28 + $0x10] sm:$0xf]  ;;  %5692 = vmatprep.mubr.msk.bf16.mxu0 %vm696_vm3, %v5210_v22 }
 0x10b   : > { %v3726_v19 = vrot.slane %v8392_v47, 4  ;;  %v3809_v15 = vshrl.u32 %v7166_v3, 16  ;;  %v3664_v62 = vsel %vm6318_vm4, %v3659_v39, %v7538_v42  ;;  %v3674_v29 = vsel %vm6318_vm4, %v3669_v43, %v3673_v20  ;;  %5535 = vmatmul.mubr.msk.bf16.gmra.mrb[24].mxu1 %vm696_vm3, %v4940_v52  ;;  %v7657_v22 = vld [vmem:[%s6292_s28 + $0xa4] sm:$0x1] }
 0x10c   : > { %v3729_v36 = vrot.slane %v8393_v31, 5  ;;  %v3739_v33 = vrot.slane %v8394_v37, 4  ;;  %v3757_v58 = vshll.u32 %v7120_v21, 16  ;;  %v5008_v23 = vcombine.low %v6127_v25, %v6128_v0  ;;  %5538 = vmatprep.mubr.msk.bf16.mxu1 %vm696_vm3, %v4941_v38 }
 0x10d   : > { %v3706_v10 = vor.u32 %v3705_v41, %v3702_v44  ;;  %v3716_v30 = vor.u32 %v3715_v57, %v7605_v50  ;;  %v3719_v49 = vshll.u32 %v7610_v16, 16  ;;  %v4942_v42 = vcombine.low %v7594_v35, %v7599_v11 }
 0x10e   : > { %v3688_v52 = vsel %vm6318_vm4, %v3683_v45, %v7559_v7  ;;  %v3698_v63 = vsel %vm6318_vm4, %v3693_v5, %v3697_v6  ;;  %v3781_v46 = vshll.u32 %v7134_v2, 16  ;;  %v5211_v51 = vcombine.low %v3664_v62, %v3674_v29 }
 0x10f   : > { %v3730_v39 = vor.u32 %v3729_v36, %v3726_v19  ;;  %v3740_v43 = vor.u32 %v3739_v33, %v7616_v13  ;;  %v3743_v38 = vshll.u32 %v7627_v40, 16  ;;  %v8395_v20 = vshrl.u32 %v7117_v8, 16  ;;  %v7669_v33 = vld [vmem:[%s6292_s28 + $0xb0] sm:$0x1] }
 0x110   : > { %v8396_v35 = vshll.u32 %v7117_v8, 16  ;;  %v7652_v17 = vrot.slane %v3757_v58, 5  ;;  %v8397_v7 = vshrl.u32 %v7120_v21, 16  ;;  %v5212_v60 = vcombine.low %v3688_v52, %v3698_v63 }
 0x111   : > { %v3750_v27 = vrot.slane %v8395_v20, 4  ;;  %v3707_v41 = vrot.slane %v3706_v10, 4  ;;  %v3717_v28 = vrot.slane %v3716_v30, 4  ;;  %v3721_v57 = vrot.slane %v3719_v49, 5  ;;  %5693 = vmatmul.mubr.msk.bf16.gmra.mrb[12].mxu0 %vm696_vm3, %v5211_v51  ;;  %v6129_v10 = vld [vmem:[%s6292_s28 + $0x18] sm:$0xf] }
 0x112   : > { %v3753_v11 = vrot.slane %v8396_v35, 5  ;;  %v3763_v44 = vrot.slane %v8397_v7, 4  ;;  %v8398_v45 = vshrl.u32 %v7129_v54, 16  ;;  %v8399_v6 = vshll.u32 %v7129_v54, 16  ;;  %5696 = vmatprep.mubr.msk.bf16.mxu0 %vm696_vm3, %v5212_v60  ;;  %v6130_v30 = vld [vmem:[%s6292_s28 + $0x1c] sm:$0xf] }
 0x113   : > { %v7663_v8 = vrot.slane %v3781_v46, 5  ;;  %v8400_v47 = vshrl.u32 %v7134_v2, 16  ;;  %v3820_v21 = vshrl.u32 %v7190_v56, 16  ;;  %v3731_v31 = vrot.slane %v3730_v39, 4  ;;  %5539 = vmatmul.mubr.msk.bf16.gmra.mrb[28].mxu1 %vm696_vm3, %v4942_v42  ;;  %v6131_v46 = vld [vmem:[%s6292_s28 + $0x24] sm:$0xf] }
 0x114   : > { %v3774_v5 = vrot.slane %v8398_v45, 4  ;;  %v3777_v18 = vrot.slane %v8399_v6, 5  ;;  %v3741_v36 = vrot.slane %v3740_v43, 4  ;;  %v3745_v37 = vrot.slane %v3743_v38, 5  ;;  %5544 = vmatprep.mubr.msk.bf16.mxu1 %vm696_vm3, %v5008_v23 }
 0x115   : > { %v3787_v19 = vrot.slane %v8400_v47, 4  ;;  %v3823_v62 = vshll.u32 %v7190_v56, 16  ;;  %v3754_v29 = vor.u32 %v3753_v11, %v3750_v27  ;;  %v3764_v54 = vor.u32 %v3763_v44, %v7652_v17  ;;  %v7698_v11 = vld [vmem:[%s6292_s28 + $0xbc] sm:$0x1] }
 0x116   : > { %v3767_v58 = vshll.u32 %v7657_v22, 16  ;;  %v3833_v2 = vshrl.u32 %v7198_v34, 16  ;;  %v3712_v25 = vsel %vm6318_vm4, %v3707_v41, %v7605_v50  ;;  %v3722_v56 = vsel %vm6318_vm4, %v3717_v28, %v3721_v57  ;;  %v6132_v50 = vld [vmem:[%s6292_s28 + $0x28] sm:$0xf] }
 0x117   : > { %v3805_v0 = vshll.u32 %v7166_v3, 16  ;;  %v5009_v49 = vcombine.low %v6129_v10, %v6130_v30  ;;  %v3778_v42 = vor.u32 %v3777_v18, %v3774_v5  ;;  %v3788_v52 = vor.u32 %v3787_v19, %v7663_v8 }
 0x118   : > { %v3791_v63 = vshll.u32 %v7669_v33, 16  ;;  %v5010_v51 = vcombine.low %v6131_v46, %v6132_v50  ;;  %v3736_v39 = vsel %vm6318_vm4, %v3731_v31, %v7616_v13  ;;  %v3746_v23 = vsel %vm6318_vm4, %v3741_v36, %v3745_v37  ;;  %v7716_v31 = vld [vmem:[%s6292_s28 + $0xc8] sm:$0x1]  ;;  %v8402_v37 = vld [vmem:[#allocation2_spill] sm:$0xff] }
 0x119   : > { %v3829_v43 = vshll.u32 %v7198_v34, 16  ;;  %v5213_v38 = vcombine.low %v3712_v25, %v3722_v56  ;;  %v3755_v20 = vrot.slane %v3754_v29, 4  ;;  %v3765_v27 = vrot.slane %v3764_v54, 4  ;;  %v6133_v25 = vld [vmem:[%s6292_s28 + $0x30] sm:$0xf] }
 0x11a   : > { %v3769_v35 = vrot.slane %v3767_v58, 5  ;;  %v8401_v7 = vshrl.u32 %v7163_v14, 16  ;;  %v3801_v60 = vrot.slane %v3799_v1, 5  ;;  %v7704_v41 = vrot.slane %v3805_v0, 5  ;;  %v6134_v56 = vld [vmem:[%s6292_s28 + $0x34] sm:$0xf] }
 0x11b   : > { %v3811_v13 = vrot.slane %v3809_v15, 4  ;;  %v5214_v28 = vcombine.low %v3736_v39, %v3746_v23  ;;  %v3779_v34 = vrot.slane %v3778_v42, 4  ;;  %v3789_v57 = vrot.slane %v3788_v52, 4  ;;  %5545 = vmatmul.mubr.msk.bf16.vlgmr.msra.gmra.mrb[0].mxu1 %vm696_vm3, %v5009_v49  ;;  %5697 = vmatmul.mubr.msk.bf16.gmra.mrb[16].mxu0 %vm696_vm3, %v5213_v38  ;;  %v6135_v52 = vld [vmem:[%s6292_s28 + $0x3c] sm:$0xf] }
 0x11c   : > { %v3798_v44 = vrot.slane %v8401_v7, 4  ;;  %v3793_v45 = vrot.slane %v3791_v63, 5  ;;  %v3822_v5 = vrot.slane %v3820_v21, 4  ;;  %v3825_v6 = vrot.slane %v3823_v62, 5  ;;  %5747 = vmatpush3.bf16.msra.mxu1 %v8402_v37  ;;  %5548 = vmatprep.mubr.msk.bf16.mxu1 %vm696_vm3, %v5010_v51  ;;  %v6136_v63 = vld [vmem:[%s6292_s28 + $0x40] sm:$0xf] }
 0x11d   : > { %v7708_v18 = vrot.slane %v3829_v43, 5  ;;  %v3835_v47 = vrot.slane %v3833_v2, 4  ;;  %v3844_v19 = vshrl.u32 %v7222_v59, 16  ;;  %v3760_v14 = vsel %vm6318_vm4, %v3755_v20, %v7652_v17  ;;  %5700 = vmatprep.mubr.msk.bf16.mxu0 %vm696_vm3, %v5214_v28  ;;  %v7743_v20 = vld [vmem:[%s6292_s28 + $0xd4] sm:$0x1] }
 0x11e   : > { %v3815_v1 = vshll.u32 %v7698_v11, 16  ;;  %v3847_v3 = vshll.u32 %v7222_v59, 16  ;;  %v3770_v15 = vsel %vm6318_vm4, %v3765_v27, %v3769_v35  ;;  %v3802_v21 = vor.u32 %v3801_v60, %v3798_v44  ;;  %v6137_v44 = vld [vmem:[%s6292_s28 + $0x1c] sm:$0xf] }
 0x11f   : > { %v3812_v36 = vor.u32 %v3811_v13, %v7704_v41  ;;  %v3857_v17 = vshrl.u32 %v7243_v48, 16  ;;  %v3784_v59 = vsel %vm6318_vm4, %v3779_v34, %v7663_v8  ;;  %v3853_v62 = vshll.u32 %v7243_v48, 16  ;;  %v7754_v13 = vld [vmem:[%s6292_s28 + $0x78] sm:$0xf] }
 0x120   : > { %v3794_v29 = vsel %vm6318_vm4, %v3789_v57, %v3793_v45  ;;  %v3826_v54 = vor.u32 %v3825_v6, %v3822_v5  ;;  %v3836_v58 = vor.u32 %v3835_v47, %v7708_v18  ;;  %v3839_v2 = vshll.u32 %v7716_v31, 16  ;;  %v7763_v45 = vld [vmem:[%s6292_s28 + $0x7c] sm:$0xf] }
 0x121   : > { %v5011_v0 = vcombine.low %v6133_v25, %v6134_v56  ;;  %v5215_v10 = vcombine.low %v3760_v14, %v3770_v15  ;;  %v3817_v8 = vrot.slane %v3815_v1, 5  ;;  %v3803_v30 = vrot.slane %v3802_v21, 4  ;;  %v6141_v14 = vld [vmem:[%s6292_s28 + $0x4c] sm:$0xf]  ;;  %v6142_v15 = vld [vmem:[%s6292_s28 + $0x54] sm:$0xf] }
 0x122   : > { %v3813_v49 = vrot.slane %v3812_v36, 4  ;;  %v3846_v48 = vrot.slane %v3844_v19, 4  ;;  %v3849_v42 = vrot.slane %v3847_v3, 5  ;;  %v5012_v46 = vcombine.low %v6135_v52, %v6136_v63  ;;  %v6140_v19 = vld [vmem:[%s6292_s28 + $0x48] sm:$0xf] }
 0x123   : > { %v5216_v50 = vcombine.low %v3784_v59, %v3794_v29  ;;  %v7740_v51 = vrot.slane %v3853_v62, 5  ;;  %v3859_v39 = vrot.slane %v3857_v17, 4  ;;  %v3827_v23 = vrot.slane %v3826_v54, 4  ;;  %5549 = vmatmul.mubr.msk.bf16.gmra.mrb[4].mxu1 %vm696_vm3, %v5011_v0  ;;  %5701 = vmatmul.mubr.msk.bf16.gmra.mrb[20].mxu0 %vm696_vm3, %v5215_v10  ;;  %v6143_v21 = vld [vmem:[%s6292_s28 + $0x58] sm:$0xf] }
 0x124   : > { %v3837_v43 = vrot.slane %v3836_v58, 4  ;;  %v3841_v38 = vrot.slane %v3839_v2, 5  ;;  %v3808_v27 = vsel %vm6318_vm4, %v3803_v30, %v7704_v41  ;;  %v3818_v35 = vsel %vm6318_vm4, %v3813_v49, %v3817_v8  ;;  %5552 = vmatprep.mubr.msk.bf16.mxu1 %vm696_vm3, %v5012_v46  ;;  %v6144_v17 = vld [vmem:[%s6292_s28 + $0x28] sm:$0xf]  ;;  %v6145_v62 = vld [vmem:[%s6292_s28 + $0x18] sm:$0xf] }
 0x125   : > { %v3850_v7 = vor.u32 %v3849_v42, %v3846_v48  ;;  %v4179_v60 = vrot.slane %v6137_v44, 5  ;;  %v2222_v28 = vshrl.u32 %v7754_v13, 16  ;;  %5704 = vmatprep.mubr.msk.bf16.mxu0 %vm696_vm3, %v5216_v50  ;;  %v3860_v41 = vor.u32 %v3859_v39, %v7740_v51  ;;  %v8403_v58 = vld [vmem:[#allocation15_spill] sm:$0xff]  ;;  %v6146_v0 = vld [vmem:[%s6292_s28 + $0x34] sm:$0xf] }
 0x126   : > { %v3863_v34 = vshll.u32 %v7743_v20, 16  ;;  %v2225_v57 = vshll.u32 %v7754_v13, 16  ;;  %v2231_v5 = vshll.u32 %v7763_v45, 16  ;;  %v3832_v6 = vsel %vm6318_vm4, %v3827_v23, %v7708_v18  ;;  %v6147_v42 = vld [vmem:[%s6292_s28 + $0x24] sm:$0xf] }
 0x127   : > { %v3842_v47 = vsel %vm6318_vm4, %v3837_v43, %v3841_v38  ;;  %v5013_v1 = vcombine.low %v6140_v19, %v6141_v14  ;;  %v5217_v3 = vcombine.low %v3808_v27, %v3818_v35  ;;  %v5014_v36 = vcombine.low %v6142_v15, %v6143_v21  ;;  %v6148_v43 = vld [vmem:[%s6292_s28 + $0x30] sm:$0xf]  ;;  %v7828_v15 = vld [vmem:[%s6292_s28 + $0x84] sm:$0xf]  ;;  %v7831_v21 = vld [vmem:[%s6292_s28 + $0x88] sm:$0xf] }
 0x128   : > { %v4186_v37 = vrot.slane %v6144_v17, 5  ;;  %v3851_v59 = vrot.slane %v3850_v7, 4  ;;  %v5236_v29 = vrot.slane %v6145_v62, 9  ;;  %v4181_v54 = vrot.slane %v4179_v60, 4  ;;  %v6149_v7 = vld [vmem:[%s6292_s28 + $0x40] sm:$0xf] }
 0x129   : > { %v4182_v18 = vrot.slane %v8403_v58, 5  ;;  %v5218_v2 = vcombine.low %v3832_v6, %v3842_v47  ;;  %v3861_v25 = vrot.slane %v3860_v41, 4  ;;  %v3865_v56 = vrot.slane %v3863_v34, 5  ;;  %v6151_v34 = vld [vmem:[%s6292_s28 + $0x60] sm:$0xf] }
 0x12a   : > { %v4193_v10 = vrot.slane %v6146_v0, 5  ;;  %v7779_v8 = vrot.slane %v2222_v28, 4  ;;  %v7781_v30 = vrot.slane %v2225_v57, 5  ;;  %v2235_v49 = vshrl.u32 %v7763_v45, 16  ;;  %v7807_v28 = vld [vmem:[%s6292_s28 + $0x80] sm:$0x1] }
 0x12b   : > { %v7784_v48 = vrot.slane %v2231_v5, 5  ;;  %v5237_v52 = vrot.slane %v6147_v42, 9  ;;  %v4188_v63 = vrot.slane %v4186_v37, 4  ;;  %v4189_v46 = vrot.slane %v7284_v24, 5  ;;  %5553 = vmatmul.mubr.msk.bf16.gmra.mrb[8].mxu1 %vm696_vm3, %v5013_v1  ;;  %5705 = vmatmul.mubr.msk.bf16.gmra.mrb[24].mxu0 %vm696_vm3, %v5217_v3  ;;  %v6152_v57 = vld [vmem:[%s6292_s28 + $0x64] sm:$0xf] }
 0x12c   : > { %v3856_v50 = vsel %vm6318_vm4, %v3851_v59, %v7740_v51  ;;  %v4180_v39 = vsel %vm6584_vm7, %v5236_v29, %v4179_v60  ;;  %v4183_v23 = vsel %vm6584_vm7, %v4181_v54, %v4182_v18  ;;  %v5238_v24 = vrot.slane %v6148_v43, 9  ;;  %5556 = vmatprep.mubr.msk.bf16.mxu1 %vm696_vm3, %v5014_v36  ;;  %5708 = vmatprep.mubr.msk.bf16.mxu0 %vm696_vm3, %v5218_v2  ;;  %v8404_v51 = vld [vmem:[#allocation16_spill] sm:$0xff]  ;;  %v6153_v6 = vld [vmem:[%s6292_s28 + $0x6c] sm:$0xf]  ;;  %v6157_v62 = vld [vmem:[%s6292_s28 + $0x3c] sm:$0xf] }
 0x12d   : > { %v3866_v38 = vsel %vm6318_vm4, %v3861_v25, %v3865_v56  ;;  %v4195_v27 = vrot.slane %v4193_v10, 4  ;;  %v4196_v35 = vrot.slane %v8404_v51, 5  ;;  %v4200_v44 = vrot.slane %v6149_v7, 5  ;;  %v7814_v47 = vld [vmem:[%s6292_s28 + $0x70] sm:$0xf] }
 0x12e   : > { %v7804_v60 = vrot.slane %v2235_v49, 4  ;;  %v2241_v41 = vshll.u32 %v7807_v28, 16  ;;  %v5015_v5 = vcombine.low %v6151_v34, %v6152_v57  ;;  %v5016_v19 = vcombine.low %v6153_v6, %v7814_v47  ;;  %v7845_v58 = vld [vmem:[%s6292_s28 + $0x94] sm:$0xf]  ;;  %v7848_v18 = vld [vmem:[%s6292_s28 + $0x90] sm:$0xf] }
 0x12f   : > { %v5017_v14 = vcombine.low %v7754_v13, %v7763_v45  ;;  %v7821_v1 = vsel %vm6584_vm7, %v5237_v52, %v4186_v37  ;;  %v7825_v3 = vsel %vm6584_vm7, %v4188_v63, %v4189_v46  ;;  %v5018_v36 = vcombine.low %v7828_v15, %v7831_v21  ;;  %v7857_v63 = vld [vmem:[%s6292_s28 + $0x9c] sm:$0xf]  ;;  %v7860_v46 = vld [vmem:[%s6292_s28 + $0xa0] sm:$0xf]  ;;  %v6164_v43 = vld [vmem:[%s6292_s28 + $0x58] sm:$0xf] }
 0x130   : > { %v5219_v17 = vcombine.low %v3856_v50, %v3866_v38  ;;  %v5253_v59 = vcombine.low %v4180_v39, %v4183_v23  ;;  %v7837_v37 = vsel %vm6584_vm7, %v5238_v24, %v4193_v10  ;;  %v5239_v29 = vrot.slane %v6157_v62, 9  ;;  %v6160_v10 = vld [vmem:[%s6292_s28 + $0x4c] sm:$0xf]  ;;  %v6163_v39 = vld [vmem:[%s6292_s28 + $0x48] sm:$0xf] }
 0x131   : > { %v7842_v54 = vsel %vm6584_vm7, %v4195_v27, %v4196_v35  ;;  %v5019_v2 = vcombine.low %v7848_v18, %v7845_v58  ;;  %v4202_v25 = vrot.slane %v4200_v44, 4  ;;  %v4203_v56 = vrot.slane %v7387_v55, 5  ;;  %v6165_v24 = vld [vmem:[%s6292_s28 + $0x64] sm:$0xf]  ;;  %v6166_v7 = vld [vmem:[%s6292_s28 + $0x70] sm:$0xf] }
 0x132   : > { %v5254_v0 = vcombine.low %v7821_v1, %v7825_v3  ;;  %v4207_v49 = vrot.slane %v6160_v10, 5  ;;  %v2198_v42 = vshrl.u32 %v6153_v6, 16  ;;  %v2201_v52 = vshll.u32 %v6153_v6, 16  ;;  %v6168_v62 = vld [vmem:[%s6292_s28 + $0x60] sm:$0xf] }
 0x133   : > { %v5020_v50 = vcombine.low %v7857_v63, %v7860_v46  ;;  %v5240_v23 = vrot.slane %v6163_v39, 9  ;;  %v4214_v55 = vrot.slane %v6164_v43, 5  ;;  %v4221_v38 = vrot.slane %v6165_v24, 5  ;;  %5557 = vmatmul.mubr.msk.bf16.gmra.mrb[12].mxu1 %vm696_vm3, %v5015_v5  ;;  %5709 = vmatmul.mubr.msk.bf16.gmra.mrb[28].mxu0 %vm696_vm3, %v5219_v17  ;;  %v6167_v5 = vld [vmem:[%s6292_s28 + $0x54] sm:$0xf] }
 0x134   : > { %v5255_v27 = vcombine.low %v7837_v37, %v7842_v54  ;;  %v7873_v51 = vsel %vm6584_vm7, %v5239_v29, %v4200_v44  ;;  %v4210_v35 = vrot.slane %v7420_v61, 5  ;;  %v4228_v34 = vrot.slane %v6166_v7, 5  ;;  %5560 = vmatprep.mubr.msk.bf16.mxu1 %vm696_vm3, %v5016_v19  ;;  %5714 = vmatprep.mubr.msk.bf16.mxu0 %vm696_vm3, %v5253_v59  ;;  %v6171_v10 = vld [vmem:[%s6292_s28 + $0x6c] sm:$0xf]  ;;  %v7960_v45 = vld [vmem:[%s6292_s28 + $0xc4] sm:$0xf] }
 0x135   : > { %v7881_v57 = vsel %vm6584_vm7, %v4202_v25, %v4203_v56  ;;  %v5241_v6 = vrot.slane %v6167_v5, 9  ;;  %v2207_v44 = vshll.u32 %v7814_v47, 16  ;;  %v2211_v1 = vshrl.u32 %v7814_v47, 16  ;;  %v7890_v25 = vld [vmem:[%s6292_s28 + $0xac] sm:$0xf] }
 0x136   : > { %v4209_v61 = vrot.slane %v4207_v49, 4  ;;  %v4217_v3 = vrot.slane %v7460_v4, 5  ;;  %v2200_v17 = vrot.slane %v2198_v42, 4  ;;  %v2203_v19 = vrot.slane %v2201_v52, 5  ;;  %v7893_v56 = vld [vmem:[%s6292_s28 + $0xa8] sm:$0xf] }
 0x137   : > { %v4216_v37 = vrot.slane %v4214_v55, 4  ;;  %v5242_v59 = vrot.slane %v6168_v62, 9  ;;  %v4223_v29 = vrot.slane %v4221_v38, 4  ;;  %v4224_v54 = vrot.slane %v7510_v53, 5  ;;  %v7917_v62 = vld [vmem:[%s6292_s28 + $0xb4] sm:$0xf] }
 0x138   : > { %v5021_v47 = vcombine.low %v7893_v56, %v7890_v25  ;;  %v5243_v39 = vrot.slane %v6171_v10, 9  ;;  %v4230_v4 = vrot.slane %v4228_v34, 4  ;;  %v4231_v42 = vrot.slane %v7553_v26, 5  ;;  %v7914_v26 = vld [vmem:[%s6292_s28 + $0xb8] sm:$0xf] }
 0x139   : > { %v5256_v52 = vcombine.low %v7873_v51, %v7881_v57  ;;  %v7903_v43 = vsel %vm6584_vm7, %v5240_v23, %v4207_v49  ;;  %v7905_v53 = vrot.slane %v2207_v44, 5  ;;  %v2213_v24 = vrot.slane %v2211_v1, 4  ;;  %v6174_v57 = vld [vmem:[%s6292_s28 + $0x7c] sm:$0xf]  ;;  %v6175_v1 = vld [vmem:[%s6292_s28 + $0x74] sm:$0x1] }
 0x13a   : > { %v4211_v7 = vsel %vm6584_vm7, %v4209_v61, %v4210_v35  ;;  %v7911_v5 = vsel %vm6584_vm7, %v5241_v6, %v4214_v55  ;;  %v5022_v49 = vcombine.low %v7917_v62, %v7914_v26  ;;  %v2204_v23 = vor.u32 %v2203_v19, %v2200_v17 }
 0x13b   : > { %v7923_v51 = vsel %vm6584_vm7, %v4216_v37, %v4217_v3  ;;  %v7927_v35 = vsel %vm6584_vm7, %v5242_v59, %v4221_v38  ;;  %v7931_v55 = vsel %vm6584_vm7, %v4223_v29, %v4224_v54  ;;  %v4235_v6 = vrot.slane %v6174_v57, 5  ;;  %5561 = vmatmul.mubr.msk.bf16.gmra.mrb[16].mxu1 %vm696_vm3, %v5017_v14  ;;  %5715 = vmatmul.mubr.msk.bf16.vlgmr.msra.gmra.mrb[0].mxu0 %vm696_vm3, %v5254_v0  ;;  %v6176_v3 = vld [vmem:[%s6292_s28 + $0x78] sm:$0xf]  ;;  %v7963_v14 = vld [vmem:[%s6292_s28 + $0xc0] sm:$0xf] }
 0x13c   : > { %v7941_v44 = vsel %vm6584_vm7, %v5243_v39, %v4228_v34  ;;  %v7945_v38 = vsel %vm6584_vm7, %v4230_v4, %v4231_v42  ;;  %v2217_v61 = vshll.u32 %v6175_v1, 16  ;;  %v5244_v17 = vrot.slane %v6176_v3, 9  ;;  %5564 = vmatprep.mubr.msk.bf16.mxu1 %vm696_vm3, %v5018_v36  ;;  %5718 = vmatprep.mubr.msk.bf16.mxu0 %vm696_vm3, %v5255_v27  ;;  %v6179_v4 = vld [vmem:[%s6292_s28 + $0x84] sm:$0xf]  ;;  %v6180_v57 = vld [vmem:[%s6292_s28 + $0x88] sm:$0xf] }
 0x13d   : > { %v7951_v19 = vrot.slane %v2241_v41, 5  ;;  %v5257_v13 = vcombine.low %v7903_v43, %v4211_v7  ;;  %v5023_v0 = vcombine.low %v7963_v14, %v7960_v45  ;;  %v2214_v28 = vor.u32 %v2213_v24, %v7905_v53  ;;  %v6181_v1 = vld [vmem:[%s6292_s28 + $0x94] sm:$0xf] }
 0x13e   : > { %v5258_v41 = vcombine.low %v7911_v5, %v7923_v51  ;;  %v7970_v34 = vrot.slane %v2204_v23, 4  ;;  %v2228_v36 = vor.u32 %v7781_v30, %v7779_v8  ;;  %v2238_v27 = vor.u32 %v7804_v60, %v7784_v48 }
 0x13f   : > { %v5259_v37 = vcombine.low %v7927_v35, %v7931_v55  ;;  %v5260_v59 = vcombine.low %v7941_v44, %v7945_v38  ;;  %v4237_v29 = vrot.slane %v4235_v6, 4  ;;  %v4238_v54 = vrot.slane %v7565_v9, 5 }
 0x140   : > { %v7981_v10 = vrot.slane %v2217_v61, 5  ;;  %v7985_v39 = vsel %vm6584_vm7, %v5244_v17, %v4235_v6  ;;  %v2246_v8 = vshrl.u32 %v7828_v15, 16  ;;  %v2249_v30 = vshll.u32 %v7828_v15, 16 }
 0x141   : > { %v7989_v60 = vrot.slane %v2214_v28, 4  ;;  %v5245_v42 = vrot.slane %v6179_v4, 9  ;;  %v2255_v43 = vshll.u32 %v7831_v21, 16  ;;  %v2259_v24 = vshrl.u32 %v7831_v21, 16 }
 0x142   : > { %v2210_v9 = vsel %vm6318_vm4, %v7970_v34, %v7905_v53  ;;  %v7998_v7 = vrot.slane %v2228_v36, 4  ;;  %v8000_v23 = vrot.slane %v2238_v27, 4  ;;  %v4242_v6 = vrot.slane %v6180_v57, 5 }
 0x143   : > { %v8005_v15 = vsel %vm6584_vm7, %v4237_v29, %v4238_v54  ;;  %v4249_v61 = vrot.slane %v6181_v1, 5  ;;  %v2270_v3 = vshrl.u32 %v7848_v18, 16  ;;  %v2273_v21 = vshll.u32 %v7848_v18, 16  ;;  %5565 = vmatmul.mubr.msk.bf16.gmra.mrb[20].mxu1 %vm696_vm3, %v5019_v2  ;;  %5719 = vmatmul.mubr.msk.bf16.gmra.mrb[4].mxu0 %vm696_vm3, %v5256_v52  ;;  %v6182_v54 = vld [vmem:[%s6292_s28 + $0x8c] sm:$0x1] }
 0x144   : > { %v2248_v17 = vrot.slane %v2246_v8, 4  ;;  %v2251_v28 = vrot.slane %v2249_v30, 5  ;;  %v2279_v36 = vshll.u32 %v7845_v58, 16  ;;  %v2283_v27 = vshrl.u32 %v7845_v58, 16  ;;  %5568 = vmatprep.mubr.msk.bf16.mxu1 %vm696_vm3, %v5020_v50  ;;  %5722 = vmatprep.mubr.msk.bf16.mxu0 %vm696_vm3, %v5257_v13  ;;  %v6183_v30 = vld [vmem:[%s6292_s28 + $0x90] sm:$0xf] }
 0x145   : > { %v2220_v18 = vsel %vm6318_vm4, %v7989_v60, %v7981_v10  ;;  %v4245_v2 = vrot.slane %v7610_v16, 5  ;;  %v8027_v52 = vrot.slane %v2255_v43, 5  ;;  %v2261_v29 = vrot.slane %v2259_v24, 4 }
 0x146   : > { %v5261_v58 = vcombine.low %v7985_v39, %v8005_v15  ;;  %v2234_v50 = vsel %vm6318_vm4, %v7998_v7, %v7784_v48  ;;  %v4244_v13 = vrot.slane %v4242_v6, 4  ;;  %v2265_v8 = vshll.u32 %v6182_v54, 16 }
 0x147   : > { %v5246_v4 = vrot.slane %v6183_v30, 9  ;;  %v4251_v10 = vrot.slane %v4249_v61, 4  ;;  %v2272_v60 = vrot.slane %v2270_v3, 4  ;;  %v2275_v16 = vrot.slane %v2273_v21, 5  ;;  %v6184_v3 = vld [vmem:[%s6292_s28 + $0xa0] sm:$0xf] }
 0x148   : > { %v2252_v43 = vor.u32 %v2251_v28, %v2248_v17  ;;  %v4252_v24 = vrot.slane %v7627_v40, 5  ;;  %v8038_v57 = vrot.slane %v2279_v36, 5  ;;  %v2285_v1 = vrot.slane %v2283_v27, 4 }
 0x149   : > { %v2244_v48 = vsel %vm6318_vm4, %v8000_v23, %v7951_v19  ;;  %v8046_v7 = vsel %vm6584_vm7, %v5245_v42, %v4242_v6  ;;  %v2262_v54 = vor.u32 %v2261_v29, %v8027_v52  ;;  %v4256_v21 = vrot.slane %v6184_v3, 5 }
 0x14a   : > { %v8052_v40 = vsel %vm6584_vm7, %v4244_v13, %v4245_v2  ;;  %v2267_v17 = vrot.slane %v2265_v8, 5  ;;  %v2294_v28 = vshrl.u32 %v7857_v63, 16  ;;  %v2297_v36 = vshll.u32 %v7857_v63, 16  ;;  %v6185_v2 = vld [vmem:[%s6292_s28 + $0x98] sm:$0x1] }
 0x14b   : > { %v8058_v19 = vsel %vm6584_vm7, %v5246_v4, %v4249_v61  ;;  %v2276_v42 = vor.u32 %v2275_v16, %v2272_v60  ;;  %v2303_v23 = vshll.u32 %v7860_v46, 16  ;;  %v2307_v6 = vshrl.u32 %v7860_v46, 16  ;;  %5569 = vmatmul.mubr.msk.bf16.gmra.mrb[24].mxu1 %vm696_vm3, %v5021_v47  ;;  %5723 = vmatmul.mubr.msk.bf16.gmra.mrb[8].mxu0 %vm696_vm3, %v5258_v41  ;;  %v6186_v47 = vld [vmem:[%s6292_s28 + $0x9c] sm:$0xf]  ;;  %v6187_v60 = vld [vmem:[%s6292_s28 + $0xac] sm:$0xf] }
 0x14c   : > { %v2253_v63 = vrot.slane %v2252_v43, 4  ;;  %v8072_v61 = vsel %vm6584_vm7, %v4251_v10, %v4252_v24  ;;  %v2286_v27 = vor.u32 %v2285_v1, %v8038_v57  ;;  %v2289_v29 = vshll.u32 %v6185_v2, 16  ;;  %5572 = vmatprep.mubr.msk.bf16.mxu1 %vm696_vm3, %v5022_v49  ;;  %5726 = vmatprep.mubr.msk.bf16.mxu0 %vm696_vm3, %v5259_v37  ;;  %v6188_v43 = vld [vmem:[%s6292_s28 + $0xa4] sm:$0x1] }
 0x14d   : > { %v2263_v46 = vrot.slane %v2262_v54, 4  ;;  %v5247_v5 = vrot.slane %v6186_v47, 9  ;;  %v4258_v51 = vrot.slane %v4256_v21, 4  ;;  %v4259_v41 = vrot.slane %v7657_v22, 5 }
 0x14e   : > { %v5049_v13 = vcombine.low %v2210_v9, %v2220_v18  ;;  %v8091_v8 = vcombine.low %v2234_v50, %v2244_v48  ;;  %v2296_v49 = vrot.slane %v2294_v28, 4  ;;  %v2299_v35 = vrot.slane %v2297_v36, 5 }
 0x14f   : > { %v5262_v55 = vcombine.low %v8046_v7, %v8052_v40  ;;  %v2277_v37 = vrot.slane %v2276_v42, 4  ;;  %v8095_v30 = vrot.slane %v2303_v23, 5  ;;  %v2309_v4 = vrot.slane %v2307_v6, 4 }
 0x150   : > { %v2258_v22 = vsel %vm6318_vm4, %v2253_v63, %v8027_v52  ;;  %v5263_v53 = vcombine.low %v8058_v19, %v8072_v61  ;;  %v2287_v34 = vrot.slane %v2286_v27, 4  ;;  %v2291_v9 = vrot.slane %v2289_v29, 5 }
 0x151   : > { %v2268_v18 = vsel %vm6318_vm4, %v2263_v46, %v2267_v17  ;;  %v8106_v50 = vsel %vm6584_vm7, %v5247_v5, %v4256_v21  ;;  %v8110_v10 = vsel %vm6584_vm7, %v4258_v51, %v4259_v41  ;;  %v4263_v16 = vrot.slane %v6187_v60, 5  ;;  %v6194_v60 = vld [vmem:[%s6292_s28 + $0xc4] sm:$0xf] }
 0x152   : > { %v2300_v52 = vor.u32 %v2299_v35, %v2296_v49  ;;  %v2313_v24 = vshll.u32 %v6188_v43, 16  ;;  %v2318_v1 = vshrl.u32 %v7893_v56, 16  ;;  %v2321_v48 = vshll.u32 %v7893_v56, 16  ;;  %v6191_v35 = vld [vmem:[%s6292_s28 + $0xb4] sm:$0xf] }
 0x153   : > { %v2282_v54 = vsel %vm6318_vm4, %v2277_v37, %v8038_v57  ;;  %v2310_v3 = vor.u32 %v2309_v4, %v8095_v30  ;;  %v2327_v21 = vshll.u32 %v7890_v25, 16  ;;  %v2331_v17 = vshrl.u32 %v7890_v25, 16  ;;  %5573 = vmatmul.mubr.msk.bf16.gmra.mrb[28].mxu1 %vm696_vm3, %v5023_v0  ;;  %5727 = vmatmul.mubr.msk.bf16.gmra.mrb[12].mxu0 %vm696_vm3, %v5260_v59  ;;  %v6189_v57 = vld [vmem:[%s6292_s28 + $0xa8] sm:$0xf] }
 0x154   : > { %v2292_v56 = vsel %vm6318_vm4, %v2287_v34, %v2291_v9  ;;  %v5248_v28 = vrot.slane %v6189_v57, 9  ;;  %v2342_v36 = vshrl.u32 %v7917_v62, 16  ;;  %v2345_v42 = vshll.u32 %v7917_v62, 16  ;;  %5594 = vmatprep.mubr.msk.bf16.mxu1 %vm696_vm3, %v5049_v13  ;;  %5730 = vmatprep.mubr.msk.bf16.mxu0 %vm696_vm3, %v5261_v58  ;;  %v6190_v13 = vld [vmem:[%s6292_s28 + $0xb0] sm:$0x1] }
 0x155   : > { %v4265_v25 = vrot.slane %v4263_v16, 4  ;;  %v4266_v44 = vrot.slane %v7669_v33, 5  ;;  %v2351_v38 = vshll.u32 %v7914_v26, 16  ;;  %v2355_v0 = vshrl.u32 %v7914_v26, 16  ;;  %v6192_v34 = vld [vmem:[%s6292_s28 + $0xb8] sm:$0xf] }
 0x156   : > { %v5051_v59 = vcombine.low %v2258_v22, %v2268_v18  ;;  %v2301_v23 = vrot.slane %v2300_v52, 4  ;;  %v2320_v6 = vrot.slane %v2318_v1, 4  ;;  %v2323_v63 = vrot.slane %v2321_v48, 5  ;;  %v6193_v18 = vld [vmem:[%s6292_s28 + $0xbc] sm:$0x1] }
 0x157   : > { %v2311_v62 = vrot.slane %v2310_v3, 4  ;;  %v2315_v27 = vrot.slane %v2313_v24, 5  ;;  %v8143_v2 = vrot.slane %v2327_v21, 5  ;;  %v2333_v39 = vrot.slane %v2331_v17, 4  ;;  %v6195_v17 = vld [vmem:[%s6292_s28 + $0xc0] sm:$0xf] }
 0x158   : > { %v5052_v15 = vcombine.low %v2282_v54, %v2292_v56  ;;  %v5264_v33 = vcombine.low %v8106_v50, %v8110_v10  ;;  %v2344_v58 = vrot.slane %v2342_v36, 4  ;;  %v2347_v29 = vrot.slane %v2345_v42, 5 }
 0x159   : > { %v4264_v26 = vsel %vm6584_vm7, %v5248_v28, %v4263_v16  ;;  %v4267_v46 = vsel %vm6584_vm7, %v4265_v25, %v4266_v44  ;;  %v8151_v47 = vrot.slane %v2351_v38, 5  ;;  %v2357_v5 = vrot.slane %v2355_v0, 4 }
 0x15a   : > { %v2306_v51 = vsel %vm6318_vm4, %v2301_v23, %v8095_v30  ;;  %v2324_v41 = vor.u32 %v2323_v63, %v2320_v6  ;;  %v2337_v49 = vshll.u32 %v6190_v13, 16  ;;  %v5249_v37 = vrot.slane %v6191_v35, 9 }
 0x15b   : > { %v2316_v4 = vsel %vm6318_vm4, %v2311_v62, %v2315_v27  ;;  %v2334_v22 = vor.u32 %v2333_v39, %v8143_v2  ;;  %v4270_v9 = vrot.slane %v6192_v34, 5  ;;  %v2361_v50 = vshll.u32 %v6193_v18, 16  ;;  %5595 = vmatmul.mubr.msk.bf16.vlgmr.msra.gmra.mrb[16].mxu1 %vm696_vm3, %v8091_v8  ;;  %5731 = vmatmul.mubr.msk.bf16.gmra.mrb[16].mxu0 %vm696_vm3, %v5262_v55  ;;  %v6197_v27 = vld [vmem:[%s6292_s28 + $0xd0] sm:$0xf] }
 0x15c   : > { %v5265_v30 = vcombine.low %v4264_v26, %v4267_v46  ;;  %v2348_v10 = vor.u32 %v2347_v29, %v2344_v58  ;;  %v4277_v16 = vrot.slane %v6194_v60, 5  ;;  %v2366_v52 = vshrl.u32 %v7963_v14, 16  ;;  %5598 = vmatprep.mubr.msk.bf16.mxu1 %vm696_vm3, %v5051_v59  ;;  %5734 = vmatprep.mubr.msk.bf16.mxu0 %vm696_vm3, %v5263_v53  ;;  %v6196_v59 = vld [vmem:[%s6292_s28 + $0xc8] sm:$0x1]  ;;  %v6198_v26 = vld [vmem:[%s6292_s28 + $0xcc] sm:$0xf]  ;;  %s203_s28 = scalar_lea.vmem %s8292_s3, %s4844_s12 }
 0x15d   : > { %v2358_v8 = vor.u32 %v2357_v5, %v8151_v47  ;;  %v2369_v7 = vshll.u32 %v7963_v14, 16  ;;  %v2375_v40 = vshll.u32 %v7960_v45, 16  ;;  %v2379_v55 = vshrl.u32 %v7960_v45, 16 }
 0x15e   : > { %v5053_v43 = vcombine.low %v2306_v51, %v2316_v4  ;;  %v2325_v24 = vrot.slane %v2324_v41, 4  ;;  %v2339_v1 = vrot.slane %v2337_v49, 5  ;;  %v4273_v48 = vrot.slane %v7698_v11, 5 }
 0x15f   : > { %v2335_v54 = vrot.slane %v2334_v22, 4  ;;  %v4272_v3 = vrot.slane %v4270_v9, 4  ;;  %v2363_v21 = vrot.slane %v2361_v50, 5  ;;  %v5250_v19 = vrot.slane %v6195_v17, 9 }
 0x160   : > { %v2349_v61 = vrot.slane %v2348_v10, 4  ;;  %v4279_v53 = vrot.slane %v4277_v16, 4  ;;  %v4280_v56 = vrot.slane %v7716_v31, 5  ;;  %v2368_v14 = vrot.slane %v2366_v52, 4 }
 0x161   : > { %v2359_v57 = vrot.slane %v2358_v8, 4  ;;  %v2371_v28 = vrot.slane %v2369_v7, 5  ;;  %v2377_v36 = vrot.slane %v2375_v40, 5  ;;  %v2381_v45 = vrot.slane %v2379_v55, 4 }
 0x162   : > { %v2330_v42 = vsel %vm6318_vm4, %v2325_v24, %v8143_v2  ;;  %v2340_v11 = vsel %vm6318_vm4, %v2335_v54, %v2339_v1  ;;  %v4271_v25 = vsel %vm6584_vm7, %v5249_v37, %v4270_v9  ;;  %v4274_v44 = vsel %vm6584_vm7, %v4272_v3, %v4273_v48 }
 0x163   : > { %5599 = vmatmul.mubr.msk.bf16.gmra.mrb[20].mxu1 %vm696_vm3, %v5052_v15  ;;  %5735 = vmatmul.mubr.msk.bf16.gmra.mrb[20].mxu0 %vm696_vm3, %v5264_v33  ;;  %v2354_v31 = vsel %vm6318_vm4, %v2349_v61, %v8151_v47  ;;  %v4278_v38 = vsel %vm6584_vm7, %v5250_v19, %v4277_v16  ;;  %v4281_v0 = vsel %vm6584_vm7, %v4279_v53, %v4280_v56  ;;  %v2385_v23 = vshll.u32 %v6196_v59, 16 }
 0x164   : > { %5602 = vmatprep.mubr.msk.bf16.mxu1 %vm696_vm3, %v5053_v43  ;;  %5738 = vmatprep.mubr.msk.bf16.mxu0 %vm696_vm3, %v5265_v30  ;;  %v2364_v6 = vsel %vm6318_vm4, %v2359_v57, %v2363_v21  ;;  %v2372_v63 = vor.u32 %v2371_v28, %v2368_v14  ;;  %v2382_v62 = vor.u32 %v2381_v45, %v2377_v36  ;;  %v4284_v2 = vrot.slane %v6197_v27, 5 }
 0x165   : > { %v5054_v39 = vcombine.low %v2330_v42, %v2340_v11  ;;  %v5266_v15 = vcombine.low %v4271_v25, %v4274_v44  ;;  %v5055_v33 = vcombine.low %v2354_v31, %v2364_v6  ;;  %v5267_v58 = vcombine.low %v4278_v38, %v4281_v0 }
 0x166   : > { %v2387_v29 = vrot.slane %v2385_v23, 5  ;;  %v5251_v46 = vrot.slane %v6198_v26, 9  ;;  %v2373_v47 = vrot.slane %v2372_v63, 4  ;;  %v2383_v5 = vrot.slane %v2382_v62, 4 }
 0x167   : > { %v4286_v51 = vrot.slane %v4284_v2, 4  ;;  %v4287_v41 = vrot.slane %v7743_v20, 5 }
 0x168   : > { %v4285_v13 = vsel %vm6584_vm7, %v5251_v46, %v4284_v2  ;;  %v2378_v49 = vsel %vm6318_vm4, %v2373_v47, %v2377_v36  ;;  %v2388_v35 = vsel %vm6318_vm4, %v2383_v5, %v2387_v29 }
 0x169   : > { %v4288_v20 = vsel %vm6584_vm7, %v4286_v51, %v4287_v41  ;;  %v5056_v37 = vcombine.low %v2378_v49, %v2388_v35 }
 0x16a   : > { %v5268_v4 = vcombine.low %v4285_v13, %v4288_v20 }
 0x16b   : > { %5603 = vmatmul.mubr.msk.bf16.gmra.mrb[24].mxu1 %vm696_vm3, %v5054_v39  ;;  %5739 = vmatmul.mubr.msk.bf16.gmra.mrb[24].mxu0 %vm696_vm3, %v5266_v15 }
 0x16c   : > { %5606 = vmatprep.mubr.msk.bf16.mxu1 %vm696_vm3, %v5055_v33  ;;  %5742 = vmatprep.mubr.msk.bf16.mxu0 %vm696_vm3, %v5267_v58 }
 0x173   : > { %5607 = vmatmul.mubr.msk.bf16.gmra.mrb[28].mxu1 %vm696_vm3, %v5056_v37  ;;  %5743 = vmatmul.mubr.msk.bf16.gmra.mrb[28].mxu0 %vm696_vm3, %v5268_v4 }
 0x1ee   : > { %v5546_v22 = vpop.f32.mrb[0].mxu1 }
 0x1ef   : > { %v1846_v34 = vpop.f32.mrb[1].mxu1 }
 0x1f0   : > { %v5547_v9 = vpop.f32.mrb[2].mxu1 }
 0x1f1   : > { %v1849_v18 = vpop.f32.mrb[3].mxu1 }
 0x1f6   : > { %v5550_v50 = vpop.f32.mrb[4].mxu1 }
 0x1f7   : > { %v1862_v30 = vpop.f32.mrb[5].mxu1 }
 0x1f8   : > { %v5551_v10 = vpop.f32.mrb[6].mxu1 }
 0x1f9   : > { %v1865_v60 = vpop.f32.mrb[7].mxu1 }
 0x1fe   : > { %v5554_v32 = vpop.f32.mrb[8].mxu1 }
 0x1ff   : > { %v1878_v16 = vpop.f32.mrb[9].mxu1 }
 0x200   : > { %v5555_v52 = vpop.f32.mrb[10].mxu1 }
 0x201   : > { %v8224_v12 = vpop.f32.mrb[11].mxu1 }
 0x206   : > { %v8226_v8 = vpop.f32.mrb[12].mxu1 }
 0x207   : > { %v8228_v7 = vpop.f32.mrb[13].mxu1 }
 0x208   : > { %v8230_v40 = vpop.f32.mrb[14].mxu1 }
 0x209   : > { %v8232_v55 = vpop.f32.mrb[15].mxu1 }
 0x20e   : > { %v5716_v43 = vpop.f32.mrb[0].mxu0 }
 0x20f   : > { %v5748_v24 = vadd.f32 %v5716_v43, %v5546_v22  ;;  %v4424_v1 = vpop.f32.mrb[1].mxu0 }
 0x210   : > { %v5749_v48 = vadd.f32 %v4424_v1, %v1846_v34  ;;  %v5717_v54 = vpop.f32.mrb[2].mxu0 }
 0x211   : > { %4585 = vst [vmem:[%s8237_s25 + $0x10] sm:$0xff] %v5748_v24  ;;  %v5750_v3 = vadd.f32 %v5717_v54, %v5547_v9  ;;  %v4427_v21 = vpop.f32.mrb[3].mxu0  ;;  %v4654_v56 = vmul.f32 %v5748_v24, %v5748_v24 }
 0x212   : > { %4583 = vst [vmem:[%s8237_s25] sm:$0xff] %v5749_v48  ;;  %v5751_v17 = vadd.f32 %v4427_v21, %v1849_v18  ;;  %v4652_v19 = vmul.f32 %v5749_v48, %v5749_v48 }
 0x213   : > { %4586 = vst [vmem:[%s8237_s25 + $0x18] sm:$0xff] %v5750_v3  ;;  %v4655_v42 = vmul.f32 %v5750_v3, %v5750_v3 }
 0x214   : > { %4584 = vst [vmem:[%s8237_s25 + $0x8] sm:$0xff] %v5751_v17  ;;  %v4615_v61 = vadd.f32 %v5751_v17, %v5749_v48  ;;  %v4653_v53 = vmul.f32 %v5751_v17, %v5751_v17 }
 0x216   : > { %v4616_v14 = vadd.f32 %v5748_v24, %v4615_v61  ;;  %v4684_v57 = vadd.f32 %v4653_v53, %v4652_v19  ;;  %v5720_v28 = vpop.f32.mrb[4].mxu0 }
 0x217   : > { %v5752_v36 = vadd.f32 %v5720_v28, %v5550_v50  ;;  %v4440_v45 = vpop.f32.mrb[5].mxu0 }
 0x218   : > { %v4685_v11 = vadd.f32 %v4684_v57, %v4654_v56  ;;  %v5753_v25 = vadd.f32 %v4440_v45, %v1862_v30  ;;  %v4617_v44 = vadd.f32 %v5750_v3, %v4616_v14  ;;  %v5721_v31 = vpop.f32.mrb[6].mxu0 }
 0x219   : > { %4589 = vst [vmem:[%s8237_s25 + $0x30] sm:$0xff] %v5752_v36  ;;  %v5754_v38 = vadd.f32 %v5721_v31, %v5551_v10  ;;  %v4443_v0 = vpop.f32.mrb[7].mxu0  ;;  %v4658_v39 = vmul.f32 %v5752_v36, %v5752_v36 }
 0x21a   : > { %4587 = vst [vmem:[%s8237_s25 + $0x20] sm:$0xff] %v5753_v25  ;;  %v4618_v59 = vadd.f32 %v5753_v25, %v4617_v44  ;;  %v4656_v23 = vmul.f32 %v5753_v25, %v5753_v25  ;;  %v4686_v6 = vadd.f32 %v4685_v11, %v4655_v42  ;;  %v5755_v63 = vadd.f32 %v4443_v0, %v1865_v60 }
 0x21b   : > { %4590 = vst [vmem:[%s8237_s25 + $0x38] sm:$0xff] %v5754_v38  ;;  %v4659_v46 = vmul.f32 %v5754_v38, %v5754_v38 }
 0x21c   : > { %v4687_v62 = vadd.f32 %v4686_v6, %v4656_v23  ;;  %4588 = vst [vmem:[%s8237_s25 + $0x28] sm:$0xff] %v5755_v63  ;;  %v4619_v27 = vadd.f32 %v5755_v63, %v4618_v59  ;;  %v4657_v2 = vmul.f32 %v5755_v63, %v5755_v63 }
 0x21e   : > { %v4620_v15 = vadd.f32 %v5752_v36, %v4619_v27  ;;  %v4688_v33 = vadd.f32 %v4687_v62, %v4657_v2  ;;  %v5724_v58 = vpop.f32.mrb[8].mxu0 }
 0x21f   : > { %v5756_v29 = vadd.f32 %v5724_v58, %v5554_v32  ;;  %v4456_v26 = vpop.f32.mrb[9].mxu0 }
 0x220   : > { %v4689_v47 = vadd.f32 %v4688_v33, %v4658_v39  ;;  %v5757_v5 = vadd.f32 %v4456_v26, %v1878_v16  ;;  %v4621_v51 = vadd.f32 %v5754_v38, %v4620_v15  ;;  %v5725_v41 = vpop.f32.mrb[10].mxu0 }
 0x221   : > { %4593 = vst [vmem:[%s8237_s25 + $0x50] sm:$0xff] %v5756_v29  ;;  %v5758_v13 = vadd.f32 %v5725_v41, %v5555_v52  ;;  %v4459_v49 = vpop.f32.mrb[11].mxu0  ;;  %v4662_v18 = vmul.f32 %v5756_v29, %v5756_v29 }
 0x222   : > { %4591 = vst [vmem:[%s8237_s25 + $0x40] sm:$0xff] %v5757_v5  ;;  %v4622_v35 = vadd.f32 %v5757_v5, %v4621_v51  ;;  %v4660_v20 = vmul.f32 %v5757_v5, %v5757_v5  ;;  %v4690_v37 = vadd.f32 %v4689_v47, %v4659_v46  ;;  %v5759_v4 = vadd.f32 %v4459_v49, %v8224_v12 }
 0x223   : > { %4594 = vst [vmem:[%s8237_s25 + $0x58] sm:$0xff] %v5758_v13  ;;  %v4663_v16 = vmul.f32 %v5758_v13, %v5758_v13 }
 0x224   : > { %v4691_v22 = vadd.f32 %v4690_v37, %v4660_v20  ;;  %4592 = vst [vmem:[%s8237_s25 + $0x48] sm:$0xff] %v5759_v4  ;;  %v4623_v34 = vadd.f32 %v5759_v4, %v4622_v35  ;;  %v4661_v9 = vmul.f32 %v5759_v4, %v5759_v4 }
 0x226   : > { %v4624_v50 = vadd.f32 %v5756_v29, %v4623_v34  ;;  %v4692_v30 = vadd.f32 %v4691_v22, %v4661_v9  ;;  %v5728_v10 = vpop.f32.mrb[12].mxu0 }
 0x227   : > { %v5760_v60 = vadd.f32 %v5728_v10, %v8226_v8  ;;  %v4472_v32 = vpop.f32.mrb[13].mxu0 }
 0x228   : > { %v4693_v52 = vadd.f32 %v4692_v30, %v4662_v18  ;;  %v5761_v12 = vadd.f32 %v4472_v32, %v8228_v7  ;;  %v4625_v43 = vadd.f32 %v5758_v13, %v4624_v50  ;;  %v5729_v24 = vpop.f32.mrb[14].mxu0 }
 0x229   : > { %4597 = vst [vmem:[%s8237_s25 + $0x70] sm:$0xff] %v5760_v60  ;;  %v5762_v1 = vadd.f32 %v5729_v24, %v8230_v40  ;;  %v4475_v48 = vpop.f32.mrb[15].mxu0  ;;  %v4666_v53 = vmul.f32 %v5760_v60, %v5760_v60 }
 0x22a   : > { %4595 = vst [vmem:[%s8237_s25 + $0x60] sm:$0xff] %v5761_v12  ;;  %v4626_v54 = vadd.f32 %v5761_v12, %v4625_v43  ;;  %v4664_v3 = vmul.f32 %v5761_v12, %v5761_v12  ;;  %v4694_v21 = vadd.f32 %v4693_v52, %v4663_v16  ;;  %v5763_v17 = vadd.f32 %v4475_v48, %v8232_v55 }
 0x22b   : > { %4598 = vst [vmem:[%s8237_s25 + $0x78] sm:$0xff] %v5762_v1  ;;  %v4667_v45 = vmul.f32 %v5762_v1, %v5762_v1 }
 0x22c   : > { %v4695_v8 = vadd.f32 %v4694_v21, %v4664_v3  ;;  %4596 = vst [vmem:[%s8237_s25 + $0x68] sm:$0xff] %v5763_v17  ;;  %v4627_v19 = vadd.f32 %v5763_v17, %v4626_v54  ;;  %v4665_v61 = vmul.f32 %v5763_v17, %v5763_v17 }
 0x22e   : > { %v4628_v7 = vadd.f32 %v5760_v60, %v4627_v19  ;;  %v4696_v56 = vadd.f32 %v4695_v8, %v4665_v61  ;;  %v5596_v14 = vpop.f32.mrb[16].mxu1  ;;  %v5732_v57 = vpop.f32.mrb[16].mxu0 }
 0x22f   : > { %v5764_v40 = vadd.f32 %v5732_v57, %v5596_v14  ;;  %v2588_v28 = vpop.f32.mrb[17].mxu1  ;;  %v4488_v36 = vpop.f32.mrb[17].mxu0 }
 0x230   : > { %v4697_v42 = vadd.f32 %v4696_v56, %v4666_v53  ;;  %v5765_v55 = vadd.f32 %v4488_v36, %v2588_v28  ;;  %v4629_v11 = vadd.f32 %v5762_v1, %v4628_v7  ;;  %v5597_v25 = vpop.f32.mrb[18].mxu1  ;;  %v5733_v44 = vpop.f32.mrb[18].mxu0 }
 0x231   : > { %4601 = vst [vmem:[%s8237_s25 + $0x90] sm:$0xff] %v5764_v40  ;;  %v5766_v31 = vadd.f32 %v5733_v44, %v5597_v25  ;;  %v2591_v38 = vpop.f32.mrb[19].mxu1  ;;  %v4491_v0 = vpop.f32.mrb[19].mxu0  ;;  %v4670_v39 = vmul.f32 %v5764_v40, %v5764_v40 }
 0x232   : > { %4599 = vst [vmem:[%s8237_s25 + $0x80] sm:$0xff] %v5765_v55  ;;  %v4630_v59 = vadd.f32 %v5765_v55, %v4629_v11  ;;  %v4668_v23 = vmul.f32 %v5765_v55, %v5765_v55  ;;  %v4698_v6 = vadd.f32 %v4697_v42, %v4667_v45  ;;  %v5767_v63 = vadd.f32 %v4491_v0, %v2591_v38 }
 0x233   : > { %4602 = vst [vmem:[%s8237_s25 + $0x98] sm:$0xff] %v5766_v31  ;;  %v4671_v5 = vmul.f32 %v5766_v31, %v5766_v31 }
 0x234   : > { %v4699_v62 = vadd.f32 %v4698_v6, %v4668_v23  ;;  %4600 = vst [vmem:[%s8237_s25 + $0x88] sm:$0xff] %v5767_v63  ;;  %v4631_v27 = vadd.f32 %v5767_v63, %v4630_v59  ;;  %v4669_v2 = vmul.f32 %v5767_v63, %v5767_v63 }
 0x236   : > { %v4632_v15 = vadd.f32 %v5764_v40, %v4631_v27  ;;  %v4700_v33 = vadd.f32 %v4699_v62, %v4669_v2  ;;  %v5600_v58 = vpop.f32.mrb[20].mxu1  ;;  %v5736_v29 = vpop.f32.mrb[20].mxu0 }
 0x237   : > { %v5768_v26 = vadd.f32 %v5736_v29, %v5600_v58  ;;  %v2604_v46 = vpop.f32.mrb[21].mxu1  ;;  %v4504_v47 = vpop.f32.mrb[21].mxu0 }
 0x238   : > { %v4701_v51 = vadd.f32 %v4700_v33, %v4670_v39  ;;  %v5769_v41 = vadd.f32 %v4504_v47, %v2604_v46  ;;  %v4633_v13 = vadd.f32 %v5766_v31, %v4632_v15  ;;  %v5601_v49 = vpop.f32.mrb[22].mxu1  ;;  %v5737_v35 = vpop.f32.mrb[22].mxu0 }
 0x239   : > { %4605 = vst [vmem:[%s8237_s25 + $0xb0] sm:$0xff] %v5768_v26  ;;  %v5770_v20 = vadd.f32 %v5737_v35, %v5601_v49  ;;  %v2607_v37 = vpop.f32.mrb[23].mxu1  ;;  %v4507_v4 = vpop.f32.mrb[23].mxu0  ;;  %v4674_v60 = vmul.f32 %v5768_v26, %v5768_v26 }
 0x23a   : > { %4603 = vst [vmem:[%s8237_s25 + $0xa0] sm:$0xff] %v5769_v41  ;;  %v4634_v22 = vadd.f32 %v5769_v41, %v4633_v13  ;;  %v4672_v34 = vmul.f32 %v5769_v41, %v5769_v41  ;;  %v4702_v9 = vadd.f32 %v4701_v51, %v4671_v5  ;;  %v5771_v18 = vadd.f32 %v4507_v4, %v2607_v37 }
 0x23b   : > { %4606 = vst [vmem:[%s8237_s25 + $0xb8] sm:$0xff] %v5770_v20  ;;  %v4675_v48 = vmul.f32 %v5770_v20, %v5770_v20 }
 0x23c   : > { %v4703_v50 = vadd.f32 %v4702_v9, %v4672_v34  ;;  %4604 = vst [vmem:[%s8237_s25 + $0xa8] sm:$0xff] %v5771_v18  ;;  %v4635_v30 = vadd.f32 %v5771_v18, %v4634_v22  ;;  %v4673_v10 = vmul.f32 %v5771_v18, %v5771_v18 }
 0x23e   : > { %v4636_v32 = vadd.f32 %v5768_v26, %v4635_v30  ;;  %v4704_v16 = vadd.f32 %v4703_v50, %v4673_v10  ;;  %v5604_v52 = vpop.f32.mrb[24].mxu1  ;;  %v5740_v12 = vpop.f32.mrb[24].mxu0 }
 0x23f   : > { %v5772_v43 = vadd.f32 %v5740_v12, %v5604_v52  ;;  %v2620_v24 = vpop.f32.mrb[25].mxu1  ;;  %v4520_v1 = vpop.f32.mrb[25].mxu0 }
 0x240   : > { %v4705_v54 = vadd.f32 %v4704_v16, %v4674_v60  ;;  %v5773_v3 = vadd.f32 %v4520_v1, %v2620_v24  ;;  %v4637_v21 = vadd.f32 %v5770_v20, %v4636_v32  ;;  %v5605_v17 = vpop.f32.mrb[26].mxu1  ;;  %v5741_v8 = vpop.f32.mrb[26].mxu0 }
 0x241   : > { %4609 = vst [vmem:[%s8237_s25 + $0xd0] sm:$0xff] %v5772_v43  ;;  %v5774_v19 = vadd.f32 %v5741_v8, %v5605_v17  ;;  %v2623_v61 = vpop.f32.mrb[27].mxu1  ;;  %v4523_v53 = vpop.f32.mrb[27].mxu0  ;;  %v4678_v45 = vmul.f32 %v5772_v43, %v5772_v43 }
 0x242   : > { %4607 = vst [vmem:[%s8237_s25 + $0xc0] sm:$0xff] %v5773_v3  ;;  %v4638_v7 = vadd.f32 %v5773_v3, %v4637_v21  ;;  %v4676_v56 = vmul.f32 %v5773_v3, %v5773_v3  ;;  %v4706_v14 = vadd.f32 %v4705_v54, %v4675_v48  ;;  %v5775_v57 = vadd.f32 %v4523_v53, %v2623_v61 }
 0x243   : > { %4610 = vst [vmem:[%s8237_s25 + $0xd8] sm:$0xff] %v5774_v19  ;;  %v4679_v0 = vmul.f32 %v5774_v19, %v5774_v19 }
 0x244   : > { %v4707_v40 = vadd.f32 %v4706_v14, %v4676_v56  ;;  %4608 = vst [vmem:[%s8237_s25 + $0xc8] sm:$0xff] %v5775_v57  ;;  %v4639_v28 = vadd.f32 %v5775_v57, %v4638_v7  ;;  %v4677_v36 = vmul.f32 %v5775_v57, %v5775_v57 }
 0x246   : > { %v4640_v42 = vadd.f32 %v5772_v43, %v4639_v28  ;;  %v4708_v55 = vadd.f32 %v4707_v40, %v4677_v36  ;;  %v5608_v11 = vpop.f32.mrb[28].mxu1  ;;  %v5744_v25 = vpop.f32.mrb[28].mxu0 }
 0x247   : > { %v5776_v44 = vadd.f32 %v5744_v25, %v5608_v11  ;;  %v2636_v31 = vpop.f32.mrb[29].mxu1  ;;  %v4536_v38 = vpop.f32.mrb[29].mxu0 }
 0x248   : > { %v4709_v59 = vadd.f32 %v4708_v55, %v4678_v45  ;;  %v5777_v23 = vadd.f32 %v4536_v38, %v2636_v31  ;;  %v4641_v6 = vadd.f32 %v5774_v19, %v4640_v42  ;;  %v5609_v63 = vpop.f32.mrb[30].mxu1  ;;  %v5745_v62 = vpop.f32.mrb[30].mxu0 }
 0x249   : > { %4613 = vst [vmem:[%s8237_s25 + $0xf0] sm:$0xff] %v5776_v44  ;;  %v5778_v27 = vadd.f32 %v5745_v62, %v5609_v63  ;;  %v2639_v2 = vpop.f32.mrb[31].mxu1  ;;  %v4539_v39 = vpop.f32.mrb[31].mxu0  ;;  %v4682_v5 = vmul.f32 %v5776_v44, %v5776_v44 }
 0x24a   : > { %4611 = vst [vmem:[%s8237_s25 + $0xe0] sm:$0xff] %v5777_v23  ;;  %v4642_v15 = vadd.f32 %v5777_v23, %v4641_v6  ;;  %v4680_v33 = vmul.f32 %v5777_v23, %v5777_v23  ;;  %v4710_v58 = vadd.f32 %v4709_v59, %v4679_v0  ;;  %v5779_v29 = vadd.f32 %v4539_v39, %v2639_v2 }
 0x24b   : > { %4614 = vst [vmem:[%s8237_s25 + $0xf8] sm:$0xff] %v5778_v27  ;;  %v4683_v13 = vmul.f32 %v5778_v27, %v5778_v27 }
 0x24c   : > { %v4711_v26 = vadd.f32 %v4710_v58, %v4680_v33  ;;  %4612 = vst [vmem:[%s8237_s25 + $0xe8] sm:$0xff] %v5779_v29  ;;  %v4643_v46 = vadd.f32 %v5779_v29, %v4642_v15  ;;  %v4681_v47 = vmul.f32 %v5779_v29, %v5779_v29 }
 0x24e   : > { %v4644_v51 = vadd.f32 %v5776_v44, %v4643_v46  ;;  %v4712_v41 = vadd.f32 %v4711_v26, %v4681_v47 }
 0x250   : > { %v4645_v49 = vadd.f32 %v5778_v27, %v4644_v51  ;;  %v4713_v35 = vadd.f32 %v4712_v41, %v4682_v5 }
 0x252   : > { %v4646_v20 = vrot.slane %v4645_v49, 4  ;;  %v4714_v37 = vadd.f32 %v4713_v35, %v4683_v13 }
 0x254   : > { %v4647_v4 = vadd.f32 %v4646_v20, %v4645_v49  ;;  %v4715_v22 = vrot.slane %v4714_v37, 4 }
 0x256   : > { %v4648_v34 = vrot.slane %v4647_v4, 2  ;;  %v4716_v9 = vadd.f32 %v4715_v22, %v4714_v37 }
 0x258   : > { %v4649_v18 = vadd.f32 %v4648_v34, %v4647_v4  ;;  %v4717_v50 = vrot.slane %v4716_v9, 2 }
 0x25a   : > { %v4650_v30 = vrot.slane %v4649_v18, 1  ;;  %v4718_v10 = vadd.f32 %v4717_v50, %v4716_v9 }
 0x25c   : > { %v4719_v60 = vrot.slane %v4718_v10, 1  ;;  %v4651_v32 = vadd.f32 %v4650_v30, %v4649_v18 }
 0x25e   : > { %v4720_v16 = vadd.f32 %v4719_v60, %v4718_v10 }
 0x260   : > { %v4722_v52 = vsel %vm4721_vm8, %v4651_v32, %v4720_v16 }
 0x261   : > { %4723 = vst [vmem:[%s203_s28] sm:$0x3] %v4722_v52 }
 0x262 PF: > { %s14_s14 = sadd.s32 1, %s6221_s14   ;;  %s8405_s12 = smov %s6217_s13 }
 0x263   : > { %p11_p6 = scmp.ge.s32.totalorder %s14_s14, 4   ;;  %s8406_s13 = smov %s8408_s15 }
 0x265   :  { %13 = sbr.rel (!%p11_p6) target bundleno = 2 (0x2), region = 81 }

</bundles_post_ra>
